<compile_context>
chip_gen: v7x
topology: tpu7x:2x2x1
jax: 0.10.0
libtpu: 0.0.40
codegen_flags: <defaults>
</compile_context>

<pallas_src>
import jax
import jax.numpy as jnp
from jax import lax
from jax.experimental import pallas as pl
from jax.experimental.pallas import tpu as pltpu

_EPS = 1e-5  # torch.nn.InstanceNorm2d default eps


def _conv3x3_mxu(x_hwc, w_ref, b_ref, pad_ref, acc_ref):
    """3x3 'same' conv with reflection padding as 9 shifted MXU matmuls.

    x_hwc:   (H, W, C)    f32 activations for the current image
    w_ref:   (3, 3, C, C) bf16 weights (HWIO)
    b_ref:   (1, C)       f32 bias
    pad_ref: (H+2, W+2, C) f32 VMEM scratch (reflection-padded activations)
    acc_ref: (H*W, C)      f32 VMEM accumulator scratch
    returns  (H*W, C) f32
    """
    h, w, c = x_hwc.shape
    hw = h * w

    # Reflection pad (PyTorch ReflectionPad2d(1)): rows first, then columns
    # (column pass also fixes the corners).
    pad_ref[1:h + 1, 1:w + 1, :] = x_hwc
    pad_ref[0:1, 1:w + 1, :] = x_hwc[1:2]
    pad_ref[h + 1:h + 2, 1:w + 1, :] = x_hwc[h - 2:h - 1]
    pad_ref[:, 0:1, :] = pad_ref[:, 2:3, :]
    pad_ref[:, w + 1:w + 2, :] = pad_ref[:, w - 1:w, :]

    # 9 shifted matmuls on the MXU: bf16 operands, f32 accumulation in VMEM.
    acc_ref[...] = jnp.zeros_like(acc_ref)
    for ky in range(3):
        for kx in range(3):
            patch = pad_ref[ky:ky + h, kx:kx + w, :].reshape(hw, c)
            acc_ref[...] += jnp.dot(
                patch.astype(jnp.bfloat16),
                w_ref[ky, kx],
                preferred_element_type=jnp.float32,
            )
    return acc_ref[...] + b_ref[...]


def _instance_norm(y, hw):
    """Per-channel InstanceNorm over the flattened spatial axis (f32, two-pass)."""
    mean = jnp.sum(y, axis=0, keepdims=True) * (1.0 / hw)
    yc = y - mean
    var = jnp.sum(yc * yc, axis=0, keepdims=True) * (1.0 / hw)
    return yc * lax.rsqrt(var + _EPS)  # rsqrt -> EUP slot


def _residual_kernel(x_ref, w1_ref, b1_ref, w2_ref, b2_ref, o_ref,
                     pad_ref, acc_ref):
    h, w, c = x_ref.shape
    hw = h * w

    # Conv1 -> InstanceNorm -> ReLU (fully fused, no HBM writeback).
    y = _conv3x3_mxu(x_ref[...], w1_ref, b1_ref, pad_ref, acc_ref)
    y = jnp.maximum(_instance_norm(y, hw), 0.0)

    # Conv2 -> InstanceNorm.
    z = _conv3x3_mxu(y.reshape(h, w, c), w2_ref, b2_ref, pad_ref, acc_ref)
    z = _instance_norm(z, hw)

    # Residual add against the already-resident input block (no extra HBM read).
    o_ref[...] = (z.reshape(h, w, c) + x_ref[...]).astype(o_ref.dtype)


def _round_up(v, m):
    return (v + m - 1) // m * m


@jax.jit
def residual_forward(x_nchw, w1, b1, w2, b2):
    """Forward pass of the PyTorch `Residual` module.

    x_nchw : (N, C, H, W) float32
    w1, w2 : (C, C, 3, 3) float32 (PyTorch OIHW conv weights)
    b1, b2 : (C,)         float32 conv biases
    """
    n, c, h, w = x_nchw.shape
    cp = max(128, _round_up(c, 128))  # lane-dense channel padding

    # Layout changes happen once, in the XLA wrapper (not inside the kernel).
    x = jnp.transpose(x_nchw, (0, 2, 3, 1))                         # NHWC
    x = jnp.pad(x, ((0, 0), (0, 0), (0, 0), (0, cp - c)))

    def prep_w(wt):
        wt = jnp.transpose(wt, (2, 3, 1, 0))                        # HWIO
        wt = jnp.pad(wt, ((0, 0), (0, 0), (0, cp - c), (0, cp - c)))
        return wt.astype(jnp.bfloat16)                              # MXU operand dtype

    def prep_b(bias):
        return jnp.pad(bias, (0, cp - c)).reshape(1, cp).astype(jnp.float32)

    w1p, w2p = prep_w(w1), prep_w(w2)
    b1p, b2p = prep_b(b1), prep_b(b2)

    out = pl.pallas_call(
        _residual_kernel,
        out_shape=jax.ShapeDtypeStruct((n, h, w, cp), jnp.float32),
        grid=(n,),
        in_specs=[
            pl.BlockSpec((None, h, w, cp), lambda i: (i, 0, 0, 0)),   # x (per image)
            pl.BlockSpec((3, 3, cp, cp), lambda i: (0, 0, 0, 0)),     # w1 (resident)
            pl.BlockSpec((1, cp), lambda i: (0, 0)),                  # b1 (resident)
            pl.BlockSpec((3, 3, cp, cp), lambda i: (0, 0, 0, 0)),     # w2 (resident)
            pl.BlockSpec((1, cp), lambda i: (0, 0)),                  # b2 (resident)
        ],
        out_specs=pl.BlockSpec((None, h, w, cp), lambda i: (i, 0, 0, 0)),
        scratch_shapes=[
            pltpu.VMEM((h + 2, w + 2, cp), jnp.float32),  # reflection-padded activations
            pltpu.VMEM((h * w, cp), jnp.float32),         # f32 conv accumulator
        ],
        compiler_params=pltpu.CompilerParams(
            dimension_semantics=("parallel",),
            vmem_limit_bytes=64 * 1024 * 1024,
        ),
    )(x, w1p, b1p, w2p, b2p)

    # TODO(synk): for very large H*W on v7x (64 MiB VMEM) add a spatial
    # row-block grid axis with a 1-row halo and a two-pass InstanceNorm sweep.

    out = out[..., :c]                                               # drop channel pad
    return jnp.transpose(out, (0, 3, 1, 2))                          # back to NCHW


if __name__ == "__main__":
    key = jax.random.PRNGKey(0)
    kx, kw1, kb1, kw2, kb2 = jax.random.split(key, 5)
    n, c, h, w = 2, 4, 16, 16

    x = jax.random.normal(kx, (n, c, h, w), dtype=jnp.float32)
    w1 = 0.1 * jax.random.normal(kw1, (c, c, 3, 3), dtype=jnp.float32)
    b1 = 0.1 * jax.random.normal(kb1, (c,), dtype=jnp.float32)
    w2 = 0.1 * jax.random.normal(kw2, (c, c, 3, 3), dtype=jnp.float32)
    b2 = 0.1 * jax.random.normal(kb2, (c,), dtype=jnp.float32)

    out = residual_forward(x, w1, b1, w2, b2)
    jax.block_until_ready(out)
    print("KERNEL_OK")
</pallas_src>

<mosaic_0001>
module attributes {stable_mosaic.version = 11 : i64} {
  func.func @_residual_kernel(%arg0: i32, %arg1: memref<1x16x16x128xf32, #tpu.memory_space<vmem>>, %arg2: memref<3x3x128x128xbf16, #tpu.memory_space<vmem>>, %arg3: memref<1x128xf32, #tpu.memory_space<vmem>>, %arg4: memref<3x3x128x128xbf16, #tpu.memory_space<vmem>>, %arg5: memref<1x128xf32, #tpu.memory_space<vmem>>, %arg6: memref<1x16x16x128xf32, #tpu.memory_space<vmem>>, %arg7: memref<18x18x128xf32, #tpu.memory_space<vmem>>, %arg8: memref<256x128xf32, #tpu.memory_space<vmem>>) attributes {dimension_semantics = [#tpu.dimension_semantics<parallel>], iteration_bounds = array<i64: 2>, scalar_prefetch = 0 : i64, scratch_operands = 2 : i64, tpu.core_type = #tpu.core_type<tc>, window_params = [{transform_indices = @transform_0, window_bounds = array<i64: 1, 16, 16, 128>}, {pipeline_mode = #tpu.pipeline_mode<synchronous>, transform_indices = @transform_1, window_bounds = array<i64: 3, 3, 128, 128>}, {pipeline_mode = #tpu.pipeline_mode<synchronous>, transform_indices = @transform_2, window_bounds = array<i64: 1, 128>}, {pipeline_mode = #tpu.pipeline_mode<synchronous>, transform_indices = @transform_3, window_bounds = array<i64: 3, 3, 128, 128>}, {pipeline_mode = #tpu.pipeline_mode<synchronous>, transform_indices = @transform_4, window_bounds = array<i64: 1, 128>}, {transform_indices = @transform_5, window_bounds = array<i64: 1, 16, 16, 128>}]} {
    %c0 = arith.constant 0 : index
    %c0_0 = arith.constant 0 : index
    %c0_1 = arith.constant 0 : index
    %c0_2 = arith.constant 0 : index
    %0 = vector.load %arg1[%c0, %c0_0, %c0_1, %c0_2] : memref<1x16x16x128xf32, #tpu.memory_space<vmem>>, vector<1x16x16x128xf32>
    %1 = vector.shape_cast %0 : vector<1x16x16x128xf32> to vector<16x16x128xf32>
    %c1 = arith.constant 1 : index
    %c1_3 = arith.constant 1 : index
    %c0_4 = arith.constant 0 : index
    %2 = vector.load %arg7[%c1, %c1_3, %c0_4] : memref<18x18x128xf32, #tpu.memory_space<vmem>>, vector<16x16x128xf32>
    tpu.vector_store %arg7[%c1, %c1_3, %c0_4], %1 {strides = array<i32>} : memref<18x18x128xf32, #tpu.memory_space<vmem>>, vector<16x16x128xf32>,
    %3 = vector.extract_strided_slice %1 {offsets = [1, 0, 0], sizes = [1, 16, 128], strides = [1, 1, 1]} : vector<16x16x128xf32> to vector<1x16x128xf32>
    %c0_5 = arith.constant 0 : index
    %c1_6 = arith.constant 1 : index
    %c0_7 = arith.constant 0 : index
    %4 = vector.load %arg7[%c0_5, %c1_6, %c0_7] : memref<18x18x128xf32, #tpu.memory_space<vmem>>, vector<1x16x128xf32>
    tpu.vector_store %arg7[%c0_5, %c1_6, %c0_7], %3 {strides = array<i32>} : memref<18x18x128xf32, #tpu.memory_space<vmem>>, vector<1x16x128xf32>,
    %5 = vector.extract_strided_slice %1 {offsets = [14, 0, 0], sizes = [1, 16, 128], strides = [1, 1, 1]} : vector<16x16x128xf32> to vector<1x16x128xf32>
    %c17 = arith.constant 17 : index
    %c1_8 = arith.constant 1 : index
    %c0_9 = arith.constant 0 : index
    %6 = vector.load %arg7[%c17, %c1_8, %c0_9] : memref<18x18x128xf32, #tpu.memory_space<vmem>>, vector<1x16x128xf32>
    tpu.vector_store %arg7[%c17, %c1_8, %c0_9], %5 {strides = array<i32>} : memref<18x18x128xf32, #tpu.memory_space<vmem>>, vector<1x16x128xf32>,
    %c0_10 = arith.constant 0 : index
    %c2 = arith.constant 2 : index
    %c0_11 = arith.constant 0 : index
    %7 = vector.load %arg7[%c0_10, %c2, %c0_11] : memref<18x18x128xf32, #tpu.memory_space<vmem>>, vector<18x1x128xf32>
    %c0_12 = arith.constant 0 : index
    %c0_13 = arith.constant 0 : index
    %c0_14 = arith.constant 0 : index
    %8 = vector.load %arg7[%c0_12, %c0_13, %c0_14] : memref<18x18x128xf32, #tpu.memory_space<vmem>>, vector<18x1x128xf32>
    tpu.vector_store %arg7[%c0_12, %c0_13, %c0_14], %7 {strides = array<i32>} : memref<18x18x128xf32, #tpu.memory_space<vmem>>, vector<18x1x128xf32>,
    %c0_15 = arith.constant 0 : index
    %c15 = arith.constant 15 : index
    %c0_16 = arith.constant 0 : index
    %9 = vector.load %arg7[%c0_15, %c15, %c0_16] : memref<18x18x128xf32, #tpu.memory_space<vmem>>, vector<18x1x128xf32>
    %c0_17 = arith.constant 0 : index
    %c17_18 = arith.constant 17 : index
    %c0_19 = arith.constant 0 : index
    %10 = vector.load %arg7[%c0_17, %c17_18, %c0_19] : memref<18x18x128xf32, #tpu.memory_space<vmem>>, vector<18x1x128xf32>
    tpu.vector_store %arg7[%c0_17, %c17_18, %c0_19], %9 {strides = array<i32>} : memref<18x18x128xf32, #tpu.memory_space<vmem>>, vector<18x1x128xf32>,
    %cst = arith.constant 0.000000e+00 : f32
    %11 = vector.broadcast %cst : f32 to vector<256x128xf32>
    %c0_20 = arith.constant 0 : index
    %c0_21 = arith.constant 0 : index
    %12 = vector.load %arg8[%c0_20, %c0_21] : memref<256x128xf32, #tpu.memory_space<vmem>>, vector<256x128xf32>
    tpu.vector_store %arg8[%c0_20, %c0_21], %11 {strides = array<i32>} : memref<256x128xf32, #tpu.memory_space<vmem>>, vector<256x128xf32>,
    %c0_22 = arith.constant 0 : index
    %c0_23 = arith.constant 0 : index
    %c0_24 = arith.constant 0 : index
    %13 = vector.load %arg7[%c0_22, %c0_23, %c0_24] : memref<18x18x128xf32, #tpu.memory_space<vmem>>, vector<16x16x128xf32>
    %14 = vector.shape_cast %13 : vector<16x16x128xf32> to vector<256x128xf32>
    %c0_25 = arith.constant 0 : index
    %c0_26 = arith.constant 0 : index
    %15 = vector.load %arg8[%c0_25, %c0_26] : memref<256x128xf32, #tpu.memory_space<vmem>>, vector<256x128xf32>
    %16 = arith.truncf %14 : vector<256x128xf32> to vector<256x128xbf16>
    %c0_27 = arith.constant 0 : index
    %c0_28 = arith.constant 0 : index
    %c0_29 = arith.constant 0 : index
    %c0_30 = arith.constant 0 : index
    %17 = vector.load %arg2[%c0_27, %c0_28, %c0_29, %c0_30] : memref<3x3x128x128xbf16, #tpu.memory_space<vmem>>, vector<1x1x128x128xbf16>
    %18 = vector.shape_cast %17 : vector<1x1x128x128xbf16> to vector<128x128xbf16>
    %cst_31 = arith.constant dense<0.000000e+00> : vector<256x128xf32>
    %19 = tpu.matmul %16, %18, %cst_31 {dimension_numbers = #tpu.dot_dimension_numbers<[1], [0], [0], [1], [0, 0, 1, 1], [], []>} : vector<256x128xbf16>, vector<128x128xbf16>, vector<256x128xf32> -> vector<256x128xf32>
    %20 = arith.addf %15, %19 : vector<256x128xf32>
    %c0_32 = arith.constant 0 : index
    %c0_33 = arith.constant 0 : index
    %21 = vector.load %arg8[%c0_32, %c0_33] : memref<256x128xf32, #tpu.memory_space<vmem>>, vector<256x128xf32>
    tpu.vector_store %arg8[%c0_32, %c0_33], %20 {strides = array<i32>} : memref<256x128xf32, #tpu.memory_space<vmem>>, vector<256x128xf32>,
    %c0_34 = arith.constant 0 : index
    %c1_35 = arith.constant 1 : index
    %c0_36 = arith.constant 0 : index
    %22 = vector.load %arg7[%c0_34, %c1_35, %c0_36] : memref<18x18x128xf32, #tpu.memory_space<vmem>>, vector<16x16x128xf32>
    %23 = vector.shape_cast %22 : vector<16x16x128xf32> to vector<256x128xf32>
    %c0_37 = arith.constant 0 : index
    %c0_38 = arith.constant 0 : index
    %24 = vector.load %arg8[%c0_37, %c0_38] : memref<256x128xf32, #tpu.memory_space<vmem>>, vector<256x128xf32>
    %25 = arith.truncf %23 : vector<256x128xf32> to vector<256x128xbf16>
    %c0_39 = arith.constant 0 : index
    %c1_40 = arith.constant 1 : index
    %c0_41 = arith.constant 0 : index
    %c0_42 = arith.constant 0 : index
    %26 = vector.load %arg2[%c0_39, %c1_40, %c0_41, %c0_42] : memref<3x3x128x128xbf16, #tpu.memory_space<vmem>>, vector<1x1x128x128xbf16>
    %27 = vector.shape_cast %26 : vector<1x1x128x128xbf16> to vector<128x128xbf16>
    %cst_43 = arith.constant dense<0.000000e+00> : vector<256x128xf32>
    %28 = tpu.matmul %25, %27, %cst_43 {dimension_numbers = #tpu.dot_dimension_numbers<[1], [0], [0], [1], [0, 0, 1, 1], [], []>} : vector<256x128xbf16>, vector<128x128xbf16>, vector<256x128xf32> -> vector<256x128xf32>
    %29 = arith.addf %24, %28 : vector<256x128xf32>
    %c0_44 = arith.constant 0 : index
    %c0_45 = arith.constant 0 : index
    %30 = vector.load %arg8[%c0_44, %c0_45] : memref<256x128xf32, #tpu.memory_space<vmem>>, vector<256x128xf32>
    tpu.vector_store %arg8[%c0_44, %c0_45], %29 {strides = array<i32>} : memref<256x128xf32, #tpu.memory_space<vmem>>, vector<256x128xf32>,
    %c0_46 = arith.constant 0 : index
    %c2_47 = arith.constant 2 : index
    %c0_48 = arith.constant 0 : index
    %31 = vector.load %arg7[%c0_46, %c2_47, %c0_48] : memref<18x18x128xf32, #tpu.memory_space<vmem>>, vector<16x16x128xf32>
    %32 = vector.shape_cast %31 : vector<16x16x128xf32> to vector<256x128xf32>
    %c0_49 = arith.constant 0 : index
    %c0_50 = arith.constant 0 : index
    %33 = vector.load %arg8[%c0_49, %c0_50] : memref<256x128xf32, #tpu.memory_space<vmem>>, vector<256x128xf32>
    %34 = arith.truncf %32 : vector<256x128xf32> to vector<256x128xbf16>
    %c0_51 = arith.constant 0 : index
    %c2_52 = arith.constant 2 : index
    %c0_53 = arith.constant 0 : index
    %c0_54 = arith.constant 0 : index
    %35 = vector.load %arg2[%c0_51, %c2_52, %c0_53, %c0_54] : memref<3x3x128x128xbf16, #tpu.memory_space<vmem>>, vector<1x1x128x128xbf16>
    %36 = vector.shape_cast %35 : vector<1x1x128x128xbf16> to vector<128x128xbf16>
    %cst_55 = arith.constant dense<0.000000e+00> : vector<256x128xf32>
    %37 = tpu.matmul %34, %36, %cst_55 {dimension_numbers = #tpu.dot_dimension_numbers<[1], [0], [0], [1], [0, 0, 1, 1], [], []>} : vector<256x128xbf16>, vector<128x128xbf16>, vector<256x128xf32> -> vector<256x128xf32>
    %38 = arith.addf %33, %37 : vector<256x128xf32>
    %c0_56 = arith.constant 0 : index
    %c0_57 = arith.constant 0 : index
    %39 = vector.load %arg8[%c0_56, %c0_57] : memref<256x128xf32, #tpu.memory_space<vmem>>, vector<256x128xf32>
    tpu.vector_store %arg8[%c0_56, %c0_57], %38 {strides = array<i32>} : memref<256x128xf32, #tpu.memory_space<vmem>>, vector<256x128xf32>,
    %c1_58 = arith.constant 1 : index
    %c0_59 = arith.constant 0 : index
    %c0_60 = arith.constant 0 : index
    %40 = vector.load %arg7[%c1_58, %c0_59, %c0_60] : memref<18x18x128xf32, #tpu.memory_space<vmem>>, vector<16x16x128xf32>
    %41 = vector.shape_cast %40 : vector<16x16x128xf32> to vector<256x128xf32>
    %c0_61 = arith.constant 0 : index
    %c0_62 = arith.constant 0 : index
    %42 = vector.load %arg8[%c0_61, %c0_62] : memref<256x128xf32, #tpu.memory_space<vmem>>, vector<256x128xf32>
    %43 = arith.truncf %41 : vector<256x128xf32> to vector<256x128xbf16>
    %c1_63 = arith.constant 1 : index
    %c0_64 = arith.constant 0 : index
    %c0_65 = arith.constant 0 : index
    %c0_66 = arith.constant 0 : index
    %44 = vector.load %arg2[%c1_63, %c0_64, %c0_65, %c0_66] : memref<3x3x128x128xbf16, #tpu.memory_space<vmem>>, vector<1x1x128x128xbf16>
    %45 = vector.shape_cast %44 : vector<1x1x128x128xbf16> to vector<128x128xbf16>
    %cst_67 = arith.constant dense<0.000000e+00> : vector<256x128xf32>
    %46 = tpu.matmul %43, %45, %cst_67 {dimension_numbers = #tpu.dot_dimension_numbers<[1], [0], [0], [1], [0, 0, 1, 1], [], []>} : vector<256x128xbf16>, vector<128x128xbf16>, vector<256x128xf32> -> vector<256x128xf32>
    %47 = arith.addf %42, %46 : vector<256x128xf32>
    %c0_68 = arith.constant 0 : index
    %c0_69 = arith.constant 0 : index
    %48 = vector.load %arg8[%c0_68, %c0_69] : memref<256x128xf32, #tpu.memory_space<vmem>>, vector<256x128xf32>
    tpu.vector_store %arg8[%c0_68, %c0_69], %47 {strides = array<i32>} : memref<256x128xf32, #tpu.memory_space<vmem>>, vector<256x128xf32>,
    %c1_70 = arith.constant 1 : index
    %c1_71 = arith.constant 1 : index
    %c0_72 = arith.constant 0 : index
    %49 = vector.load %arg7[%c1_70, %c1_71, %c0_72] : memref<18x18x128xf32, #tpu.memory_space<vmem>>, vector<16x16x128xf32>
    %50 = vector.shape_cast %49 : vector<16x16x128xf32> to vector<256x128xf32>
    %c0_73 = arith.constant 0 : index
    %c0_74 = arith.constant 0 : index
    %51 = vector.load %arg8[%c0_73, %c0_74] : memref<256x128xf32, #tpu.memory_space<vmem>>, vector<256x128xf32>
    %52 = arith.truncf %50 : vector<256x128xf32> to vector<256x128xbf16>
    %c1_75 = arith.constant 1 : index
    %c1_76 = arith.constant 1 : index
    %c0_77 = arith.constant 0 : index
    %c0_78 = arith.constant 0 : index
    %53 = vector.load %arg2[%c1_75, %c1_76, %c0_77, %c0_78] : memref<3x3x128x128xbf16, #tpu.memory_space<vmem>>, vector<1x1x128x128xbf16>
    %54 = vector.shape_cast %53 : vector<1x1x128x128xbf16> to vector<128x128xbf16>
    %cst_79 = arith.constant dense<0.000000e+00> : vector<256x128xf32>
    %55 = tpu.matmul %52, %54, %cst_79 {dimension_numbers = #tpu.dot_dimension_numbers<[1], [0], [0], [1], [0, 0, 1, 1], [], []>} : vector<256x128xbf16>, vector<128x128xbf16>, vector<256x128xf32> -> vector<256x128xf32>
    %56 = arith.addf %51, %55 : vector<256x128xf32>
    %c0_80 = arith.constant 0 : index
    %c0_81 = arith.constant 0 : index
    %57 = vector.load %arg8[%c0_80, %c0_81] : memref<256x128xf32, #tpu.memory_space<vmem>>, vector<256x128xf32>
    tpu.vector_store %arg8[%c0_80, %c0_81], %56 {strides = array<i32>} : memref<256x128xf32, #tpu.memory_space<vmem>>, vector<256x128xf32>,
    %c1_82 = arith.constant 1 : index
    %c2_83 = arith.constant 2 : index
    %c0_84 = arith.constant 0 : index
    %58 = vector.load %arg7[%c1_82, %c2_83, %c0_84] : memref<18x18x128xf32, #tpu.memory_space<vmem>>, vector<16x16x128xf32>
    %59 = vector.shape_cast %58 : vector<16x16x128xf32> to vector<256x128xf32>
    %c0_85 = arith.constant 0 : index
    %c0_86 = arith.constant 0 : index
    %60 = vector.load %arg8[%c0_85, %c0_86] : memref<256x128xf32, #tpu.memory_space<vmem>>, vector<256x128xf32>
    %61 = arith.truncf %59 : vector<256x128xf32> to vector<256x128xbf16>
    %c1_87 = arith.constant 1 : index
    %c2_88 = arith.constant 2 : index
    %c0_89 = arith.constant 0 : index
    %c0_90 = arith.constant 0 : index
    %62 = vector.load %arg2[%c1_87, %c2_88, %c0_89, %c0_90] : memref<3x3x128x128xbf16, #tpu.memory_space<vmem>>, vector<1x1x128x128xbf16>
    %63 = vector.shape_cast %62 : vector<1x1x128x128xbf16> to vector<128x128xbf16>
    %cst_91 = arith.constant dense<0.000000e+00> : vector<256x128xf32>
    %64 = tpu.matmul %61, %63, %cst_91 {dimension_numbers = #tpu.dot_dimension_numbers<[1], [0], [0], [1], [0, 0, 1, 1], [], []>} : vector<256x128xbf16>, vector<128x128xbf16>, vector<256x128xf32> -> vector<256x128xf32>
    %65 = arith.addf %60, %64 : vector<256x128xf32>
    %c0_92 = arith.constant 0 : index
    %c0_93 = arith.constant 0 : index
    %66 = vector.load %arg8[%c0_92, %c0_93] : memref<256x128xf32, #tpu.memory_space<vmem>>, vector<256x128xf32>
    tpu.vector_store %arg8[%c0_92, %c0_93], %65 {strides = array<i32>} : memref<256x128xf32, #tpu.memory_space<vmem>>, vector<256x128xf32>,
    %c2_94 = arith.constant 2 : index
    %c0_95 = arith.constant 0 : index
    %c0_96 = arith.constant 0 : index
    %67 = vector.load %arg7[%c2_94, %c0_95, %c0_96] : memref<18x18x128xf32, #tpu.memory_space<vmem>>, vector<16x16x128xf32>
    %68 = vector.shape_cast %67 : vector<16x16x128xf32> to vector<256x128xf32>
    %c0_97 = arith.constant 0 : index
    %c0_98 = arith.constant 0 : index
    %69 = vector.load %arg8[%c0_97, %c0_98] : memref<256x128xf32, #tpu.memory_space<vmem>>, vector<256x128xf32>
    %70 = arith.truncf %68 : vector<256x128xf32> to vector<256x128xbf16>
    %c2_99 = arith.constant 2 : index
    %c0_100 = arith.constant 0 : index
    %c0_101 = arith.constant 0 : index
    %c0_102 = arith.constant 0 : index
    %71 = vector.load %arg2[%c2_99, %c0_100, %c0_101, %c0_102] : memref<3x3x128x128xbf16, #tpu.memory_space<vmem>>, vector<1x1x128x128xbf16>
    %72 = vector.shape_cast %71 : vector<1x1x128x128xbf16> to vector<128x128xbf16>
    %cst_103 = arith.constant dense<0.000000e+00> : vector<256x128xf32>
    %73 = tpu.matmul %70, %72, %cst_103 {dimension_numbers = #tpu.dot_dimension_numbers<[1], [0], [0], [1], [0, 0, 1, 1], [], []>} : vector<256x128xbf16>, vector<128x128xbf16>, vector<256x128xf32> -> vector<256x128xf32>
    %74 = arith.addf %69, %73 : vector<256x128xf32>
    %c0_104 = arith.constant 0 : index
    %c0_105 = arith.constant 0 : index
    %75 = vector.load %arg8[%c0_104, %c0_105] : memref<256x128xf32, #tpu.memory_space<vmem>>, vector<256x128xf32>
    tpu.vector_store %arg8[%c0_104, %c0_105], %74 {strides = array<i32>} : memref<256x128xf32, #tpu.memory_space<vmem>>, vector<256x128xf32>,
    %c2_106 = arith.constant 2 : index
    %c1_107 = arith.constant 1 : index
    %c0_108 = arith.constant 0 : index
    %76 = vector.load %arg7[%c2_106, %c1_107, %c0_108] : memref<18x18x128xf32, #tpu.memory_space<vmem>>, vector<16x16x128xf32>
    %77 = vector.shape_cast %76 : vector<16x16x128xf32> to vector<256x128xf32>
    %c0_109 = arith.constant 0 : index
    %c0_110 = arith.constant 0 : index
    %78 = vector.load %arg8[%c0_109, %c0_110] : memref<256x128xf32, #tpu.memory_space<vmem>>, vector<256x128xf32>
    %79 = arith.truncf %77 : vector<256x128xf32> to vector<256x128xbf16>
    %c2_111 = arith.constant 2 : index
    %c1_112 = arith.constant 1 : index
    %c0_113 = arith.constant 0 : index
    %c0_114 = arith.constant 0 : index
    %80 = vector.load %arg2[%c2_111, %c1_112, %c0_113, %c0_114] : memref<3x3x128x128xbf16, #tpu.memory_space<vmem>>, vector<1x1x128x128xbf16>
    %81 = vector.shape_cast %80 : vector<1x1x128x128xbf16> to vector<128x128xbf16>
    %cst_115 = arith.constant dense<0.000000e+00> : vector<256x128xf32>
    %82 = tpu.matmul %79, %81, %cst_115 {dimension_numbers = #tpu.dot_dimension_numbers<[1], [0], [0], [1], [0, 0, 1, 1], [], []>} : vector<256x128xbf16>, vector<128x128xbf16>, vector<256x128xf32> -> vector<256x128xf32>
    %83 = arith.addf %78, %82 : vector<256x128xf32>
    %c0_116 = arith.constant 0 : index
    %c0_117 = arith.constant 0 : index
    %84 = vector.load %arg8[%c0_116, %c0_117] : memref<256x128xf32, #tpu.memory_space<vmem>>, vector<256x128xf32>
    tpu.vector_store %arg8[%c0_116, %c0_117], %83 {strides = array<i32>} : memref<256x128xf32, #tpu.memory_space<vmem>>, vector<256x128xf32>,
    %c2_118 = arith.constant 2 : index
    %c2_119 = arith.constant 2 : index
    %c0_120 = arith.constant 0 : index
    %85 = vector.load %arg7[%c2_118, %c2_119, %c0_120] : memref<18x18x128xf32, #tpu.memory_space<vmem>>, vector<16x16x128xf32>
    %86 = vector.shape_cast %85 : vector<16x16x128xf32> to vector<256x128xf32>
    %c0_121 = arith.constant 0 : index
    %c0_122 = arith.constant 0 : index
    %87 = vector.load %arg8[%c0_121, %c0_122] : memref<256x128xf32, #tpu.memory_space<vmem>>, vector<256x128xf32>
    %88 = arith.truncf %86 : vector<256x128xf32> to vector<256x128xbf16>
    %c2_123 = arith.constant 2 : index
    %c2_124 = arith.constant 2 : index
    %c0_125 = arith.constant 0 : index
    %c0_126 = arith.constant 0 : index
    %89 = vector.load %arg2[%c2_123, %c2_124, %c0_125, %c0_126] : memref<3x3x128x128xbf16, #tpu.memory_space<vmem>>, vector<1x1x128x128xbf16>
    %90 = vector.shape_cast %89 : vector<1x1x128x128xbf16> to vector<128x128xbf16>
    %cst_127 = arith.constant dense<0.000000e+00> : vector<256x128xf32>
    %91 = tpu.matmul %88, %90, %cst_127 {dimension_numbers = #tpu.dot_dimension_numbers<[1], [0], [0], [1], [0, 0, 1, 1], [], []>} : vector<256x128xbf16>, vector<128x128xbf16>, vector<256x128xf32> -> vector<256x128xf32>
    %92 = arith.addf %87, %91 : vector<256x128xf32>
    %c0_128 = arith.constant 0 : index
    %c0_129 = arith.constant 0 : index
    %93 = vector.load %arg8[%c0_128, %c0_129] : memref<256x128xf32, #tpu.memory_space<vmem>>, vector<256x128xf32>
    tpu.vector_store %arg8[%c0_128, %c0_129], %92 {strides = array<i32>} : memref<256x128xf32, #tpu.memory_space<vmem>>, vector<256x128xf32>,
    %c0_130 = arith.constant 0 : index
    %c0_131 = arith.constant 0 : index
    %94 = vector.load %arg8[%c0_130, %c0_131] : memref<256x128xf32, #tpu.memory_space<vmem>>, vector<256x128xf32>
    %c0_132 = arith.constant 0 : index
    %c0_133 = arith.constant 0 : index
    %95 = vector.load %arg3[%c0_132, %c0_133] : memref<1x128xf32, #tpu.memory_space<vmem>>, vector<1x128xf32>
    %96 = vector.broadcast %95 : vector<1x128xf32> to vector<256x128xf32>
    %97 = arith.addf %94, %96 : vector<256x128xf32>
    %cst_134 = arith.constant dense<0.000000e+00> : vector<128xf32>
    %98 = vector.multi_reduction <add>, %97, %cst_134 [0] : vector<256x128xf32> to vector<128xf32>
    %99 = vector.shape_cast %98 : vector<128xf32> to vector<1x128xf32>
    %cst_135 = arith.constant 3.906250e-03 : f32
    %100 = vector.broadcast %cst_135 : f32 to vector<1x128xf32>
    %101 = arith.mulf %99, %100 : vector<1x128xf32>
    %102 = vector.broadcast %101 : vector<1x128xf32> to vector<256x128xf32>
    %103 = arith.subf %97, %102 : vector<256x128xf32>
    %104 = arith.mulf %103, %103 : vector<256x128xf32>
    %cst_136 = arith.constant dense<0.000000e+00> : vector<128xf32>
    %105 = vector.multi_reduction <add>, %104, %cst_136 [0] : vector<256x128xf32> to vector<128xf32>
    %106 = vector.shape_cast %105 : vector<128xf32> to vector<1x128xf32>
    %cst_137 = arith.constant 3.906250e-03 : f32
    %107 = vector.broadcast %cst_137 : f32 to vector<1x128xf32>
    %108 = arith.mulf %106, %107 : vector<1x128xf32>
    %cst_138 = arith.constant 9.99999974E-6 : f32
    %109 = vector.broadcast %cst_138 : f32 to vector<1x128xf32>
    %110 = arith.addf %108, %109 : vector<1x128xf32>
    %111 = math.rsqrt %110 : vector<1x128xf32>
    %112 = vector.broadcast %111 : vector<1x128xf32> to vector<256x128xf32>
    %113 = arith.mulf %103, %112 : vector<256x128xf32>
    %cst_139 = arith.constant 0.000000e+00 : f32
    %114 = vector.broadcast %cst_139 : f32 to vector<256x128xf32>
    %115 = arith.maximumf %113, %114 : vector<256x128xf32>
    %116 = vector.shape_cast %115 : vector<256x128xf32> to vector<16x16x128xf32>
    %c1_140 = arith.constant 1 : index
    %c1_141 = arith.constant 1 : index
    %c0_142 = arith.constant 0 : index
    %117 = vector.load %arg7[%c1_140, %c1_141, %c0_142] : memref<18x18x128xf32, #tpu.memory_space<vmem>>, vector<16x16x128xf32>
    tpu.vector_store %arg7[%c1_140, %c1_141, %c0_142], %116 {strides = array<i32>} : memref<18x18x128xf32, #tpu.memory_space<vmem>>, vector<16x16x128xf32>,
    %118 = vector.extract_strided_slice %116 {offsets = [1, 0, 0], sizes = [1, 16, 128], strides = [1, 1, 1]} : vector<16x16x128xf32> to vector<1x16x128xf32>
    %c0_143 = arith.constant 0 : index
    %c1_144 = arith.constant 1 : index
    %c0_145 = arith.constant 0 : index
    %119 = vector.load %arg7[%c0_143, %c1_144, %c0_145] : memref<18x18x128xf32, #tpu.memory_space<vmem>>, vector<1x16x128xf32>
    tpu.vector_store %arg7[%c0_143, %c1_144, %c0_145], %118 {strides = array<i32>} : memref<18x18x128xf32, #tpu.memory_space<vmem>>, vector<1x16x128xf32>,
    %120 = vector.extract_strided_slice %116 {offsets = [14, 0, 0], sizes = [1, 16, 128], strides = [1, 1, 1]} : vector<16x16x128xf32> to vector<1x16x128xf32>
    %c17_146 = arith.constant 17 : index
    %c1_147 = arith.constant 1 : index
    %c0_148 = arith.constant 0 : index
    %121 = vector.load %arg7[%c17_146, %c1_147, %c0_148] : memref<18x18x128xf32, #tpu.memory_space<vmem>>, vector<1x16x128xf32>
    tpu.vector_store %arg7[%c17_146, %c1_147, %c0_148], %120 {strides = array<i32>} : memref<18x18x128xf32, #tpu.memory_space<vmem>>, vector<1x16x128xf32>,
    %c0_149 = arith.constant 0 : index
    %c2_150 = arith.constant 2 : index
    %c0_151 = arith.constant 0 : index
    %122 = vector.load %arg7[%c0_149, %c2_150, %c0_151] : memref<18x18x128xf32, #tpu.memory_space<vmem>>, vector<18x1x128xf32>
    %c0_152 = arith.constant 0 : index
    %c0_153 = arith.constant 0 : index
    %c0_154 = arith.constant 0 : index
    %123 = vector.load %arg7[%c0_152, %c0_153, %c0_154] : memref<18x18x128xf32, #tpu.memory_space<vmem>>, vector<18x1x128xf32>
    tpu.vector_store %arg7[%c0_152, %c0_153, %c0_154], %122 {strides = array<i32>} : memref<18x18x128xf32, #tpu.memory_space<vmem>>, vector<18x1x128xf32>,
    %c0_155 = arith.constant 0 : index
    %c15_156 = arith.constant 15 : index
    %c0_157 = arith.constant 0 : index
    %124 = vector.load %arg7[%c0_155, %c15_156, %c0_157] : memref<18x18x128xf32, #tpu.memory_space<vmem>>, vector<18x1x128xf32>
    %c0_158 = arith.constant 0 : index
    %c17_159 = arith.constant 17 : index
    %c0_160 = arith.constant 0 : index
    %125 = vector.load %arg7[%c0_158, %c17_159, %c0_160] : memref<18x18x128xf32, #tpu.memory_space<vmem>>, vector<18x1x128xf32>
    tpu.vector_store %arg7[%c0_158, %c17_159, %c0_160], %124 {strides = array<i32>} : memref<18x18x128xf32, #tpu.memory_space<vmem>>, vector<18x1x128xf32>,
    %cst_161 = arith.constant 0.000000e+00 : f32
    %126 = vector.broadcast %cst_161 : f32 to vector<256x128xf32>
    %c0_162 = arith.constant 0 : index
    %c0_163 = arith.constant 0 : index
    %127 = vector.load %arg8[%c0_162, %c0_163] : memref<256x128xf32, #tpu.memory_space<vmem>>, vector<256x128xf32>
    tpu.vector_store %arg8[%c0_162, %c0_163], %126 {strides = array<i32>} : memref<256x128xf32, #tpu.memory_space<vmem>>, vector<256x128xf32>,
    %c0_164 = arith.constant 0 : index
    %c0_165 = arith.constant 0 : index
    %c0_166 = arith.constant 0 : index
    %128 = vector.load %arg7[%c0_164, %c0_165, %c0_166] : memref<18x18x128xf32, #tpu.memory_space<vmem>>, vector<16x16x128xf32>
    %129 = vector.shape_cast %128 : vector<16x16x128xf32> to vector<256x128xf32>
    %c0_167 = arith.constant 0 : index
    %c0_168 = arith.constant 0 : index
    %130 = vector.load %arg8[%c0_167, %c0_168] : memref<256x128xf32, #tpu.memory_space<vmem>>, vector<256x128xf32>
    %131 = arith.truncf %129 : vector<256x128xf32> to vector<256x128xbf16>
    %c0_169 = arith.constant 0 : index
    %c0_170 = arith.constant 0 : index
    %c0_171 = arith.constant 0 : index
    %c0_172 = arith.constant 0 : index
    %132 = vector.load %arg4[%c0_169, %c0_170, %c0_171, %c0_172] : memref<3x3x128x128xbf16, #tpu.memory_space<vmem>>, vector<1x1x128x128xbf16>
    %133 = vector.shape_cast %132 : vector<1x1x128x128xbf16> to vector<128x128xbf16>
    %cst_173 = arith.constant dense<0.000000e+00> : vector<256x128xf32>
    %134 = tpu.matmul %131, %133, %cst_173 {dimension_numbers = #tpu.dot_dimension_numbers<[1], [0], [0], [1], [0, 0, 1, 1], [], []>} : vector<256x128xbf16>, vector<128x128xbf16>, vector<256x128xf32> -> vector<256x128xf32>
    %135 = arith.addf %130, %134 : vector<256x128xf32>
    %c0_174 = arith.constant 0 : index
    %c0_175 = arith.constant 0 : index
    %136 = vector.load %arg8[%c0_174, %c0_175] : memref<256x128xf32, #tpu.memory_space<vmem>>, vector<256x128xf32>
    tpu.vector_store %arg8[%c0_174, %c0_175], %135 {strides = array<i32>} : memref<256x128xf32, #tpu.memory_space<vmem>>, vector<256x128xf32>,
    %c0_176 = arith.constant 0 : index
    %c1_177 = arith.constant 1 : index
    %c0_178 = arith.constant 0 : index
    %137 = vector.load %arg7[%c0_176, %c1_177, %c0_178] : memref<18x18x128xf32, #tpu.memory_space<vmem>>, vector<16x16x128xf32>
    %138 = vector.shape_cast %137 : vector<16x16x128xf32> to vector<256x128xf32>
    %c0_179 = arith.constant 0 : index
    %c0_180 = arith.constant 0 : index
    %139 = vector.load %arg8[%c0_179, %c0_180] : memref<256x128xf32, #tpu.memory_space<vmem>>, vector<256x128xf32>
    %140 = arith.truncf %138 : vector<256x128xf32> to vector<256x128xbf16>
    %c0_181 = arith.constant 0 : index
    %c1_182 = arith.constant 1 : index
    %c0_183 = arith.constant 0 : index
    %c0_184 = arith.constant 0 : index
    %141 = vector.load %arg4[%c0_181, %c1_182, %c0_183, %c0_184] : memref<3x3x128x128xbf16, #tpu.memory_space<vmem>>, vector<1x1x128x128xbf16>
    %142 = vector.shape_cast %141 : vector<1x1x128x128xbf16> to vector<128x128xbf16>
    %cst_185 = arith.constant dense<0.000000e+00> : vector<256x128xf32>
    %143 = tpu.matmul %140, %142, %cst_185 {dimension_numbers = #tpu.dot_dimension_numbers<[1], [0], [0], [1], [0, 0, 1, 1], [], []>} : vector<256x128xbf16>, vector<128x128xbf16>, vector<256x128xf32> -> vector<256x128xf32>
    %144 = arith.addf %139, %143 : vector<256x128xf32>
    %c0_186 = arith.constant 0 : index
    %c0_187 = arith.constant 0 : index
    %145 = vector.load %arg8[%c0_186, %c0_187] : memref<256x128xf32, #tpu.memory_space<vmem>>, vector<256x128xf32>
    tpu.vector_store %arg8[%c0_186, %c0_187], %144 {strides = array<i32>} : memref<256x128xf32, #tpu.memory_space<vmem>>, vector<256x128xf32>,
    %c0_188 = arith.constant 0 : index
    %c2_189 = arith.constant 2 : index
    %c0_190 = arith.constant 0 : index
    %146 = vector.load %arg7[%c0_188, %c2_189, %c0_190] : memref<18x18x128xf32, #tpu.memory_space<vmem>>, vector<16x16x128xf32>
    %147 = vector.shape_cast %146 : vector<16x16x128xf32> to vector<256x128xf32>
    %c0_191 = arith.constant 0 : index
    %c0_192 = arith.constant 0 : index
    %148 = vector.load %arg8[%c0_191, %c0_192] : memref<256x128xf32, #tpu.memory_space<vmem>>, vector<256x128xf32>
    %149 = arith.truncf %147 : vector<256x128xf32> to vector<256x128xbf16>
    %c0_193 = arith.constant 0 : index
    %c2_194 = arith.constant 2 : index
    %c0_195 = arith.constant 0 : index
    %c0_196 = arith.constant 0 : index
    %150 = vector.load %arg4[%c0_193, %c2_194, %c0_195, %c0_196] : memref<3x3x128x128xbf16, #tpu.memory_space<vmem>>, vector<1x1x128x128xbf16>
    %151 = vector.shape_cast %150 : vector<1x1x128x128xbf16> to vector<128x128xbf16>
    %cst_197 = arith.constant dense<0.000000e+00> : vector<256x128xf32>
    %152 = tpu.matmul %149, %151, %cst_197 {dimension_numbers = #tpu.dot_dimension_numbers<[1], [0], [0], [1], [0, 0, 1, 1], [], []>} : vector<256x128xbf16>, vector<128x128xbf16>, vector<256x128xf32> -> vector<256x128xf32>
    %153 = arith.addf %148, %152 : vector<256x128xf32>
    %c0_198 = arith.constant 0 : index
    %c0_199 = arith.constant 0 : index
    %154 = vector.load %arg8[%c0_198, %c0_199] : memref<256x128xf32, #tpu.memory_space<vmem>>, vector<256x128xf32>
    tpu.vector_store %arg8[%c0_198, %c0_199], %153 {strides = array<i32>} : memref<256x128xf32, #tpu.memory_space<vmem>>, vector<256x128xf32>,
    %c1_200 = arith.constant 1 : index
    %c0_201 = arith.constant 0 : index
    %c0_202 = arith.constant 0 : index
    %155 = vector.load %arg7[%c1_200, %c0_201, %c0_202] : memref<18x18x128xf32, #tpu.memory_space<vmem>>, vector<16x16x128xf32>
    %156 = vector.shape_cast %155 : vector<16x16x128xf32> to vector<256x128xf32>
    %c0_203 = arith.constant 0 : index
    %c0_204 = arith.constant 0 : index
    %157 = vector.load %arg8[%c0_203, %c0_204] : memref<256x128xf32, #tpu.memory_space<vmem>>, vector<256x128xf32>
    %158 = arith.truncf %156 : vector<256x128xf32> to vector<256x128xbf16>
    %c1_205 = arith.constant 1 : index
    %c0_206 = arith.constant 0 : index
    %c0_207 = arith.constant 0 : index
    %c0_208 = arith.constant 0 : index
    %159 = vector.load %arg4[%c1_205, %c0_206, %c0_207, %c0_208] : memref<3x3x128x128xbf16, #tpu.memory_space<vmem>>, vector<1x1x128x128xbf16>
    %160 = vector.shape_cast %159 : vector<1x1x128x128xbf16> to vector<128x128xbf16>
    %cst_209 = arith.constant dense<0.000000e+00> : vector<256x128xf32>
    %161 = tpu.matmul %158, %160, %cst_209 {dimension_numbers = #tpu.dot_dimension_numbers<[1], [0], [0], [1], [0, 0, 1, 1], [], []>} : vector<256x128xbf16>, vector<128x128xbf16>, vector<256x128xf32> -> vector<256x128xf32>
    %162 = arith.addf %157, %161 : vector<256x128xf32>
    %c0_210 = arith.constant 0 : index
    %c0_211 = arith.constant 0 : index
    %163 = vector.load %arg8[%c0_210, %c0_211] : memref<256x128xf32, #tpu.memory_space<vmem>>, vector<256x128xf32>
    tpu.vector_store %arg8[%c0_210, %c0_211], %162 {strides = array<i32>} : memref<256x128xf32, #tpu.memory_space<vmem>>, vector<256x128xf32>,
    %c1_212 = arith.constant 1 : index
    %c1_213 = arith.constant 1 : index
    %c0_214 = arith.constant 0 : index
    %164 = vector.load %arg7[%c1_212, %c1_213, %c0_214] : memref<18x18x128xf32, #tpu.memory_space<vmem>>, vector<16x16x128xf32>
    %165 = vector.shape_cast %164 : vector<16x16x128xf32> to vector<256x128xf32>
    %c0_215 = arith.constant 0 : index
    %c0_216 = arith.constant 0 : index
    %166 = vector.load %arg8[%c0_215, %c0_216] : memref<256x128xf32, #tpu.memory_space<vmem>>, vector<256x128xf32>
    %167 = arith.truncf %165 : vector<256x128xf32> to vector<256x128xbf16>
    %c1_217 = arith.constant 1 : index
    %c1_218 = arith.constant 1 : index
    %c0_219 = arith.constant 0 : index
    %c0_220 = arith.constant 0 : index
    %168 = vector.load %arg4[%c1_217, %c1_218, %c0_219, %c0_220] : memref<3x3x128x128xbf16, #tpu.memory_space<vmem>>, vector<1x1x128x128xbf16>
    %169 = vector.shape_cast %168 : vector<1x1x128x128xbf16> to vector<128x128xbf16>
    %cst_221 = arith.constant dense<0.000000e+00> : vector<256x128xf32>
    %170 = tpu.matmul %167, %169, %cst_221 {dimension_numbers = #tpu.dot_dimension_numbers<[1], [0], [0], [1], [0, 0, 1, 1], [], []>} : vector<256x128xbf16>, vector<128x128xbf16>, vector<256x128xf32> -> vector<256x128xf32>
    %171 = arith.addf %166, %170 : vector<256x128xf32>
    %c0_222 = arith.constant 0 : index
    %c0_223 = arith.constant 0 : index
    %172 = vector.load %arg8[%c0_222, %c0_223] : memref<256x128xf32, #tpu.memory_space<vmem>>, vector<256x128xf32>
    tpu.vector_store %arg8[%c0_222, %c0_223], %171 {strides = array<i32>} : memref<256x128xf32, #tpu.memory_space<vmem>>, vector<256x128xf32>,
    %c1_224 = arith.constant 1 : index
    %c2_225 = arith.constant 2 : index
    %c0_226 = arith.constant 0 : index
    %173 = vector.load %arg7[%c1_224, %c2_225, %c0_226] : memref<18x18x128xf32, #tpu.memory_space<vmem>>, vector<16x16x128xf32>
    %174 = vector.shape_cast %173 : vector<16x16x128xf32> to vector<256x128xf32>
    %c0_227 = arith.constant 0 : index
    %c0_228 = arith.constant 0 : index
    %175 = vector.load %arg8[%c0_227, %c0_228] : memref<256x128xf32, #tpu.memory_space<vmem>>, vector<256x128xf32>
    %176 = arith.truncf %174 : vector<256x128xf32> to vector<256x128xbf16>
    %c1_229 = arith.constant 1 : index
    %c2_230 = arith.constant 2 : index
    %c0_231 = arith.constant 0 : index
    %c0_232 = arith.constant 0 : index
    %177 = vector.load %arg4[%c1_229, %c2_230, %c0_231, %c0_232] : memref<3x3x128x128xbf16, #tpu.memory_space<vmem>>, vector<1x1x128x128xbf16>
    %178 = vector.shape_cast %177 : vector<1x1x128x128xbf16> to vector<128x128xbf16>
    %cst_233 = arith.constant dense<0.000000e+00> : vector<256x128xf32>
    %179 = tpu.matmul %176, %178, %cst_233 {dimension_numbers = #tpu.dot_dimension_numbers<[1], [0], [0], [1], [0, 0, 1, 1], [], []>} : vector<256x128xbf16>, vector<128x128xbf16>, vector<256x128xf32> -> vector<256x128xf32>
    %180 = arith.addf %175, %179 : vector<256x128xf32>
    %c0_234 = arith.constant 0 : index
    %c0_235 = arith.constant 0 : index
    %181 = vector.load %arg8[%c0_234, %c0_235] : memref<256x128xf32, #tpu.memory_space<vmem>>, vector<256x128xf32>
    tpu.vector_store %arg8[%c0_234, %c0_235], %180 {strides = array<i32>} : memref<256x128xf32, #tpu.memory_space<vmem>>, vector<256x128xf32>,
    %c2_236 = arith.constant 2 : index
    %c0_237 = arith.constant 0 : index
    %c0_238 = arith.constant 0 : index
    %182 = vector.load %arg7[%c2_236, %c0_237, %c0_238] : memref<18x18x128xf32, #tpu.memory_space<vmem>>, vector<16x16x128xf32>
    %183 = vector.shape_cast %182 : vector<16x16x128xf32> to vector<256x128xf32>
    %c0_239 = arith.constant 0 : index
    %c0_240 = arith.constant 0 : index
    %184 = vector.load %arg8[%c0_239, %c0_240] : memref<256x128xf32, #tpu.memory_space<vmem>>, vector<256x128xf32>
    %185 = arith.truncf %183 : vector<256x128xf32> to vector<256x128xbf16>
    %c2_241 = arith.constant 2 : index
    %c0_242 = arith.constant 0 : index
    %c0_243 = arith.constant 0 : index
    %c0_244 = arith.constant 0 : index
    %186 = vector.load %arg4[%c2_241, %c0_242, %c0_243, %c0_244] : memref<3x3x128x128xbf16, #tpu.memory_space<vmem>>, vector<1x1x128x128xbf16>
    %187 = vector.shape_cast %186 : vector<1x1x128x128xbf16> to vector<128x128xbf16>
    %cst_245 = arith.constant dense<0.000000e+00> : vector<256x128xf32>
    %188 = tpu.matmul %185, %187, %cst_245 {dimension_numbers = #tpu.dot_dimension_numbers<[1], [0], [0], [1], [0, 0, 1, 1], [], []>} : vector<256x128xbf16>, vector<128x128xbf16>, vector<256x128xf32> -> vector<256x128xf32>
    %189 = arith.addf %184, %188 : vector<256x128xf32>
    %c0_246 = arith.constant 0 : index
    %c0_247 = arith.constant 0 : index
    %190 = vector.load %arg8[%c0_246, %c0_247] : memref<256x128xf32, #tpu.memory_space<vmem>>, vector<256x128xf32>
    tpu.vector_store %arg8[%c0_246, %c0_247], %189 {strides = array<i32>} : memref<256x128xf32, #tpu.memory_space<vmem>>, vector<256x128xf32>,
    %c2_248 = arith.constant 2 : index
    %c1_249 = arith.constant 1 : index
    %c0_250 = arith.constant 0 : index
    %191 = vector.load %arg7[%c2_248, %c1_249, %c0_250] : memref<18x18x128xf32, #tpu.memory_space<vmem>>, vector<16x16x128xf32>
    %192 = vector.shape_cast %191 : vector<16x16x128xf32> to vector<256x128xf32>
    %c0_251 = arith.constant 0 : index
    %c0_252 = arith.constant 0 : index
    %193 = vector.load %arg8[%c0_251, %c0_252] : memref<256x128xf32, #tpu.memory_space<vmem>>, vector<256x128xf32>
    %194 = arith.truncf %192 : vector<256x128xf32> to vector<256x128xbf16>
    %c2_253 = arith.constant 2 : index
    %c1_254 = arith.constant 1 : index
    %c0_255 = arith.constant 0 : index
    %c0_256 = arith.constant 0 : index
    %195 = vector.load %arg4[%c2_253, %c1_254, %c0_255, %c0_256] : memref<3x3x128x128xbf16, #tpu.memory_space<vmem>>, vector<1x1x128x128xbf16>
    %196 = vector.shape_cast %195 : vector<1x1x128x128xbf16> to vector<128x128xbf16>
    %cst_257 = arith.constant dense<0.000000e+00> : vector<256x128xf32>
    %197 = tpu.matmul %194, %196, %cst_257 {dimension_numbers = #tpu.dot_dimension_numbers<[1], [0], [0], [1], [0, 0, 1, 1], [], []>} : vector<256x128xbf16>, vector<128x128xbf16>, vector<256x128xf32> -> vector<256x128xf32>
    %198 = arith.addf %193, %197 : vector<256x128xf32>
    %c0_258 = arith.constant 0 : index
    %c0_259 = arith.constant 0 : index
    %199 = vector.load %arg8[%c0_258, %c0_259] : memref<256x128xf32, #tpu.memory_space<vmem>>, vector<256x128xf32>
    tpu.vector_store %arg8[%c0_258, %c0_259], %198 {strides = array<i32>} : memref<256x128xf32, #tpu.memory_space<vmem>>, vector<256x128xf32>,
    %c2_260 = arith.constant 2 : index
    %c2_261 = arith.constant 2 : index
    %c0_262 = arith.constant 0 : index
    %200 = vector.load %arg7[%c2_260, %c2_261, %c0_262] : memref<18x18x128xf32, #tpu.memory_space<vmem>>, vector<16x16x128xf32>
    %201 = vector.shape_cast %200 : vector<16x16x128xf32> to vector<256x128xf32>
    %c0_263 = arith.constant 0 : index
    %c0_264 = arith.constant 0 : index
    %202 = vector.load %arg8[%c0_263, %c0_264] : memref<256x128xf32, #tpu.memory_space<vmem>>, vector<256x128xf32>
    %203 = arith.truncf %201 : vector<256x128xf32> to vector<256x128xbf16>
    %c2_265 = arith.constant 2 : index
    %c2_266 = arith.constant 2 : index
    %c0_267 = arith.constant 0 : index
    %c0_268 = arith.constant 0 : index
    %204 = vector.load %arg4[%c2_265, %c2_266, %c0_267, %c0_268] : memref<3x3x128x128xbf16, #tpu.memory_space<vmem>>, vector<1x1x128x128xbf16>
    %205 = vector.shape_cast %204 : vector<1x1x128x128xbf16> to vector<128x128xbf16>
    %cst_269 = arith.constant dense<0.000000e+00> : vector<256x128xf32>
    %206 = tpu.matmul %203, %205, %cst_269 {dimension_numbers = #tpu.dot_dimension_numbers<[1], [0], [0], [1], [0, 0, 1, 1], [], []>} : vector<256x128xbf16>, vector<128x128xbf16>, vector<256x128xf32> -> vector<256x128xf32>
    %207 = arith.addf %202, %206 : vector<256x128xf32>
    %c0_270 = arith.constant 0 : index
    %c0_271 = arith.constant 0 : index
    %208 = vector.load %arg8[%c0_270, %c0_271] : memref<256x128xf32, #tpu.memory_space<vmem>>, vector<256x128xf32>
    tpu.vector_store %arg8[%c0_270, %c0_271], %207 {strides = array<i32>} : memref<256x128xf32, #tpu.memory_space<vmem>>, vector<256x128xf32>,
    %c0_272 = arith.constant 0 : index
    %c0_273 = arith.constant 0 : index
    %209 = vector.load %arg8[%c0_272, %c0_273] : memref<256x128xf32, #tpu.memory_space<vmem>>, vector<256x128xf32>
    %c0_274 = arith.constant 0 : index
    %c0_275 = arith.constant 0 : index
    %210 = vector.load %arg5[%c0_274, %c0_275] : memref<1x128xf32, #tpu.memory_space<vmem>>, vector<1x128xf32>
    %211 = vector.broadcast %210 : vector<1x128xf32> to vector<256x128xf32>
    %212 = arith.addf %209, %211 : vector<256x128xf32>
    %cst_276 = arith.constant dense<0.000000e+00> : vector<128xf32>
    %213 = vector.multi_reduction <add>, %212, %cst_276 [0] : vector<256x128xf32> to vector<128xf32>
    %214 = vector.shape_cast %213 : vector<128xf32> to vector<1x128xf32>
    %cst_277 = arith.constant 3.906250e-03 : f32
    %215 = vector.broadcast %cst_277 : f32 to vector<1x128xf32>
    %216 = arith.mulf %214, %215 : vector<1x128xf32>
    %217 = vector.broadcast %216 : vector<1x128xf32> to vector<256x128xf32>
    %218 = arith.subf %212, %217 : vector<256x128xf32>
    %219 = arith.mulf %218, %218 : vector<256x128xf32>
    %cst_278 = arith.constant dense<0.000000e+00> : vector<128xf32>
    %220 = vector.multi_reduction <add>, %219, %cst_278 [0] : vector<256x128xf32> to vector<128xf32>
    %221 = vector.shape_cast %220 : vector<128xf32> to vector<1x128xf32>
    %cst_279 = arith.constant 3.906250e-03 : f32
    %222 = vector.broadcast %cst_279 : f32 to vector<1x128xf32>
    %223 = arith.mulf %221, %222 : vector<1x128xf32>
    %cst_280 = arith.constant 9.99999974E-6 : f32
    %224 = vector.broadcast %cst_280 : f32 to vector<1x128xf32>
    %225 = arith.addf %223, %224 : vector<1x128xf32>
    %226 = math.rsqrt %225 : vector<1x128xf32>
    %227 = vector.broadcast %226 : vector<1x128xf32> to vector<256x128xf32>
    %228 = arith.mulf %218, %227 : vector<256x128xf32>
    %229 = vector.shape_cast %228 : vector<256x128xf32> to vector<16x16x128xf32>
    %c0_281 = arith.constant 0 : index
    %c0_282 = arith.constant 0 : index
    %c0_283 = arith.constant 0 : index
    %c0_284 = arith.constant 0 : index
    %230 = vector.load %arg1[%c0_281, %c0_282, %c0_283, %c0_284] : memref<1x16x16x128xf32, #tpu.memory_space<vmem>>, vector<1x16x16x128xf32>
    %231 = vector.shape_cast %230 : vector<1x16x16x128xf32> to vector<16x16x128xf32>
    %232 = arith.addf %229, %231 : vector<16x16x128xf32>
    %c0_285 = arith.constant 0 : index
    %c0_286 = arith.constant 0 : index
    %c0_287 = arith.constant 0 : index
    %c0_288 = arith.constant 0 : index
    %233 = vector.load %arg6[%c0_285, %c0_286, %c0_287, %c0_288] : memref<1x16x16x128xf32, #tpu.memory_space<vmem>>, vector<1x16x16x128xf32>
    %234 = vector.shape_cast %233 : vector<1x16x16x128xf32> to vector<16x16x128xf32>
    %235 = vector.shape_cast %232 : vector<16x16x128xf32> to vector<1x16x16x128xf32>
    tpu.vector_store %arg6[%c0_285, %c0_286, %c0_287, %c0_288], %235 {strides = array<i32>} : memref<1x16x16x128xf32, #tpu.memory_space<vmem>>, vector<1x16x16x128xf32>,
    return
  }
  func.func @transform_0(%arg0: i32) -> (i32, i32, i32, i32) {
    %c0_i32 = arith.constant 0 : i32
    %c0_i32_0 = arith.constant 0 : i32
    %c0_i32_1 = arith.constant 0 : i32
    %c0_i32_2 = arith.constant 0 : i32
    return %arg0, %c0_i32, %c0_i32_0, %c0_i32_1 : i32, i32, i32, i32
  }
  func.func @transform_1(%arg0: i32) -> (i32, i32, i32, i32) {
    %c0_i32 = arith.constant 0 : i32
    %c0_i32_0 = arith.constant 0 : i32
    %c0_i32_1 = arith.constant 0 : i32
    %c0_i32_2 = arith.constant 0 : i32
    %c0_i32_3 = arith.constant 0 : i32
    return %c0_i32, %c0_i32_0, %c0_i32_1, %c0_i32_2 : i32, i32, i32, i32
  }
  func.func @transform_2(%arg0: i32) -> (i32, i32) {
    %c0_i32 = arith.constant 0 : i32
    %c0_i32_0 = arith.constant 0 : i32
    %c0_i32_1 = arith.constant 0 : i32
    return %c0_i32, %c0_i32_0 : i32, i32
  }
  func.func @transform_3(%arg0: i32) -> (i32, i32, i32, i32) {
    %c0_i32 = arith.constant 0 : i32
    %c0_i32_0 = arith.constant 0 : i32
    %c0_i32_1 = arith.constant 0 : i32
    %c0_i32_2 = arith.constant 0 : i32
    %c0_i32_3 = arith.constant 0 : i32
    return %c0_i32, %c0_i32_0, %c0_i32_1, %c0_i32_2 : i32, i32, i32, i32
  }
  func.func @transform_4(%arg0: i32) -> (i32, i32) {
    %c0_i32 = arith.constant 0 : i32
    %c0_i32_0 = arith.constant 0 : i32
    %c0_i32_1 = arith.constant 0 : i32
    return %c0_i32, %c0_i32_0 : i32, i32
  }
  func.func @transform_5(%arg0: i32) -> (i32, i32, i32, i32) {
    %c0_i32 = arith.constant 0 : i32
    %c0_i32_0 = arith.constant 0 : i32
    %c0_i32_1 = arith.constant 0 : i32
    %c0_i32_2 = arith.constant 0 : i32
    return %arg0, %c0_i32, %c0_i32_0, %c0_i32_1 : i32, i32, i32, i32
  }
}

</mosaic_0001>

<bundles_post_ra>
// kernel: residual_forward.1
= control target key start
LH: loop header
LB: loop body
LE: loop exit
PB: predicated region body
PF: predicated region fallthrough
CT: control target
= control target key end

     0   :  { %10 = vsyncpa [#allocation5], 0  ;;  %s12077_s0 = inlined_call_operand.hbm [shape: f32[2,16,16,128], index: 0, kind: input, shape index: {}]   ;;  %s12078_s1 = inlined_call_operand.hbm [shape: bf16[3,3,128,128], index: 1, kind: input, shape index: {}]   ;;  %s12079_s2 = inlined_call_operand.hbm [shape: f32[1,128], index: 2, kind: input, shape index: {}]   ;;  %s12080_s3 = inlined_call_operand.hbm [shape: bf16[3,3,128,128], index: 3, kind: input, shape index: {}]   ;;  %s12081_s4 = inlined_call_operand.hbm [shape: f32[1,128], index: 4, kind: input, shape index: {}]   ;;  %s12082_s5 = inlined_call_operand.hbm [shape: f32[2,16,16,128], index: 5, kind: output, shape index: {}]  }
   0x1   :  { %12 = vsyncpa [#allocation5 + $0x1], 0 }
   0x2   :  { %13 = vsyncpa [#allocation8], 0 }
   0x3   :  { %14 = vsyncpa [#allocation11], 0 }
   0x4   :  { %15 = vsyncpa [#allocation6], 0 }
   0x5   :  { %17 = vsyncpa [#allocation6 + $0x1], 0  ;;  %s10493_s18 = smov 0   ;;  %s10495_s19 = smov 0  }
   0x6   :  { %s10497_s20 = smov 0   ;;  %s10499_s21 = smov 0  }
   0x7 LB: > { %s10514_s22 = sadd.s32 4294967295, %s10449_s21   ;;  %s8014_s23 = sadd.s32 4294967294, %s10449_s21   ;;  %s10449_s21 = sphi %s10499_s21, %s12105_s21   ;;  %s10445_s20 = sphi %s10497_s20, %s12104_s20   ;;  %s10441_s19 = sphi %s10495_s19, %s12103_s19   ;;  %s10437_s18 = sphi %s10493_s18, %s12102_s18  }
   0x8   : > { %p43_p0 = scmp.ne.s32.totalorder %s10441_s19, %s10437_s18  ;;  %p12083_p1 = scmp.eq.s32.totalorder %s10514_s22, 0 }
   0x9   : > { %p157_p3 = scmp.eq.s32.totalorder %s8014_s23, 1  ;;  %p8015_p5 = scmp.ge.s32.totalorder %s10449_s21, 1 }
   0xa   : > { %p10523_p4 = por %p12083_p1, %p43_p0  ;;  %p164_p7 = scmp.lt.s32.totalorder %s10449_s21, 3 }
   0xb   : > { %p10528_p6 = por %p157_p3, %p43_p0  ;;  %s10451_s27 = smov [#allocation7]  }
   0xc   : > { %s12086_s24 = scalar_select %p10523_p4, 1, 0 }
   0xd   : > { %s12087_s25 = scalar_select %p10528_p6, 1, 0 }
   0xe   : > { %p10533_p8 = pnand %p8015_p5, %p164_p7  ;;  %s176_s28 = sshll.u32 %s10451_s27, 4  ;;  %s10537_s28 = int_to_ptr.vmem [resolvable:$true] %s176_s28 }
   0xf   : > { %s10452_s30 = smov [#allocation10]   ;;  %s10453_s7 = smov [#allocation9]  }
  0x10   : > { %s12088_s26 = scalar_select %p10533_p8, 1, 0 }
  0x11   : > { %p10012_p9 = pneg %p10533_p8  ;;  %s200_s6 = sshll.u32 %s10452_s30, 4  ;;  %s10548_s6 = int_to_ptr.vmem [resolvable:$true] %s200_s6 }
  0x12   : > { %s10550_s8 = sshll.u32 %s10453_s7, 4  ;;  %s10233_s11 = scalar_lea.hbm %s12078_s1, 9216  ;;  %s191_s8 = int_to_ptr.vmem [resolvable:$true] %s10550_s8 }
  0x13   : > { %p10544_p11 = pnand %p10012_p9, %p12083_p1  ;;  %p10234_p12 = scmp.ne.s32.totalorder %s12078_s1, %s10233_s11 }
  0x14   : > { %p10240_p5 = scmp.lt.u32.totalorder %s10233_s11, %s12078_s1 }
  0x15   : > { %p10560_p13 = pneg %p10544_p11 }
  0x17   : > { %p10236_p0 = pnand %p10560_p13, %p10234_p12 }
  0x19   : > { %p10237_p3 = pneg %p10236_p0 }
  0x1b   : > { %p10242_p7 = pnand %p10240_p5, %p10237_p3 }
  0x1d   : > { %10245 = shalt.err (!%p10242_p7)
}
  0x1e   : > { %s10246_s17 = scalar_lea.vmem %s10537_s28, 9216  ;;  %p10254_p2 = scmp.lt.s32.totalorder %s10537_s28, %s10537_s28 }
  0x1f   : > { %p10247_p9 = scmp.ne.s32.totalorder %s10537_s28, %s10246_s17  ;;  %p10255_p6 = scmp.lt.s32.totalorder %s10246_s17, %s10246_s17 }
  0x21   : > { %p10249_p10 = pnand %p10247_p9, %p10560_p13  ;;  %p10256_p12 = por %p10255_p6, %p10254_p2 }
  0x23   : > { %p10250_p1 = pneg %p10249_p10 }
  0x25   : > { %p10257_p0 = pnand %p10256_p12, %p10250_p1 }
  0x27   : > { %10260 = shalt.err (!%p10257_p0)
}
  0x28   : > { %s10454_s23 = smov 64   ;;  %s10455_s27 = smov 4  }
  0x29   : > { %10015 = dma.hbm_to_vmem [thread:$0]  (!%p10544_p11), %s12078_s1, 9216, %s10537_s28, [#allocation8], %s10454_s23, %s10454_s23, %s10455_s27  }
  0x2a   : > { %s10261_s11 = scalar_lea.hbm %s12080_s3, 9216 }
  0x2b   : > { %p10262_p2 = scmp.ne.s32.totalorder %s12080_s3, %s10261_s11  ;;  %p10268_p10 = scmp.lt.u32.totalorder %s10261_s11, %s12080_s3 }
  0x2d   : > { %p10264_p1 = pnand %p10262_p2, %p10560_p13 }
  0x2f   : > { %p10265_p6 = pneg %p10264_p1 }
  0x31   : > { %p10270_p3 = pnand %p10268_p10, %p10265_p6 }
  0x33   : > { %10273 = shalt.err (!%p10270_p3)
}
  0x34   : > { %s10274_s28 = scalar_lea.vmem %s10548_s6, 9216  ;;  %p10282_p12 = scmp.lt.s32.totalorder %s10548_s6, %s10548_s6 }
  0x35   : > { %p10275_p5 = scmp.ne.s32.totalorder %s10548_s6, %s10274_s28  ;;  %p10283_p0 = scmp.lt.s32.totalorder %s10274_s28, %s10274_s28 }
  0x37   : > { %p10277_p7 = pnand %p10275_p5, %p10560_p13  ;;  %p10284_p2 = por %p10283_p0, %p10282_p12 }
  0x39   : > { %p10278_p9 = pneg %p10277_p7 }
  0x3b   : > { %p10285_p1 = pnand %p10284_p2, %p10278_p9 }
  0x3d   : > { %10288 = shalt.err (!%p10285_p1)
}
  0x3e   : > { %10021 = dma.hbm_to_vmem [thread:$0]  (!%p10544_p11), %s12080_s3, 9216, %s10548_s6, [#allocation11], %s10454_s23, %s10454_s23, %s10455_s27  }
  0x3f   : > { %s10289_s10 = scalar_lea.hbm %s12079_s2, 16 }
  0x40   : > { %p10290_p6 = scmp.ne.s32.totalorder %s12079_s2, %s10289_s10  ;;  %p10296_p5 = scmp.lt.u32.totalorder %s10289_s10, %s12079_s2 }
  0x42   : > { %p10292_p10 = pnand %p10290_p6, %p10560_p13 }
  0x44   : > { %p10293_p3 = pneg %p10292_p10 }
  0x46   : > { %p10298_p7 = pnand %p10296_p5, %p10293_p3 }
  0x48   : > { %10301 = shalt.err (!%p10298_p7)
}
  0x49   : > { %s10302_s16 = scalar_lea.vmem %s191_s8, 16  ;;  %s10309_s6 = scalar_lea.vmem %s191_s8, 32 }
  0x4a   : > { %p10303_p9 = scmp.ne.s32.totalorder %s191_s8, %s10302_s16  ;;  %p10310_p2 = scmp.lt.s32.totalorder %s191_s8, %s191_s8 }
  0x4b   : > { %p10311_p1 = scmp.lt.s32.totalorder %s10309_s6, %s10302_s16 }
  0x4c   : > { %p10305_p12 = pnand %p10303_p9, %p10560_p13 }
  0x4d   : > { %p10312_p4 = por %p10311_p1, %p10310_p2 }
  0x4e   : > { %p10306_p0 = pneg %p10305_p12 }
  0x50   : > { %p10313_p8 = pnand %p10312_p4, %p10306_p0 }
  0x52   : > { %10316 = shalt.err (!%p10313_p8)
}
  0x53   : > { %10018 = dma.hbm_to_vmem [thread:$0]  (!%p10544_p11), %s12079_s2, 16, %s191_s8, [#allocation8]  }
  0x54   : > { %s10456_s28 = smov [#allocation12]   ;;  %s10317_s9 = scalar_lea.hbm %s12081_s4, 16 }
  0x55   : > { %s214_s17 = sshll.u32 %s10456_s28, 4  ;;  %p10318_p6 = scmp.ne.s32.totalorder %s12081_s4, %s10317_s9  ;;  %s215_s17 = int_to_ptr.vmem [resolvable:$true] %s214_s17 }
  0x56   : > { %p10324_p10 = scmp.lt.u32.totalorder %s10317_s9, %s12081_s4 }
  0x57   : > { %p10320_p4 = pnand %p10318_p6, %p10560_p13 }
  0x59   : > { %p10321_p8 = pneg %p10320_p4 }
  0x5b   : > { %p10326_p3 = pnand %p10324_p10, %p10321_p8 }
  0x5d   : > { %10329 = shalt.err (!%p10326_p3)
}
  0x5e   : > { %s10330_s8 = scalar_lea.vmem %s215_s17, 16  ;;  %s10337_s15 = scalar_lea.vmem %s215_s17, 32 }
  0x5f   : > { %p10331_p5 = scmp.ne.s32.totalorder %s215_s17, %s10330_s8  ;;  %p10338_p12 = scmp.lt.s32.totalorder %s215_s17, %s215_s17 }
  0x60   : > { %p10339_p0 = scmp.lt.s32.totalorder %s10337_s15, %s10330_s8 }
  0x61   : > { %p10333_p7 = pnand %p10331_p5, %p10560_p13 }
  0x62   : > { %p10340_p2 = por %p10339_p0, %p10338_p12 }
  0x63   : > { %p10334_p9 = pneg %p10333_p7 }
  0x65   : > { %p10341_p1 = pnand %p10340_p2, %p10334_p9 }
  0x67   : > { %10344 = shalt.err (!%p10341_p1)
}
  0x68   : > { %10024 = dma.hbm_to_vmem [thread:$0]  (!%p10544_p11), %s12081_s4, 16, %s215_s17, [#allocation11]  }
  0x69   : > { %s10642_s14 = sadd.s32 1, %s10449_s21   ;;  %s30_s23 = sadd.s32 1, %s10445_s20 }
  0x6a   : > { %s27_s29 = ssub.s32 %s10449_s21, %s10642_s14  ;;  %p37_p13 = scmp.ne.s32.totalorder %s10445_s20, %s10441_s19 }
  0x6b   : > { %p28_p6 = scmp.eq.s32.totalorder %s27_s29, 0  ;;  %p38_p4 = scmp.eq.s32.totalorder %s10449_s21, 0 }
  0x6c   : > { %p12091_p8 = scmp.eq.s32.totalorder %s10514_s22, 1  ;;  %p10037_p3 = scmp.lt.s32.totalorder %s10449_s21, 2 }
  0x6d   : > { %s10658_s28 = scalar_select %p28_p6, %s10445_s20, %s30_s23  }
  0x6e   : > { %p10652_p10 = por %p12091_p8, %p37_p13  ;;  %p39_p5 = por %p38_p4, %p37_p13 }
  0x6f   : > { %s225_s30 = sand.u32 1, %s10445_s20   ;;  %s8182_s17 = sshll.u32 %s10449_s21, 12 }
  0x70   : > { %s8021_s7 = sshll.u32 %s225_s30, 8  ;;  %s10665_s11 = scalar_lea.hbm %s12077_s0, %s8182_s17 }
  0x71   : > { %s229_s12 = scalar_lea.vmem [#allocation4], %s8021_s7  ;;  %p10669_p11 = pnand %p10037_p3, %p39_p5 }
  0x72   : > { %s236_s13 = sshll.u32 %s229_s12, 4  ;;  %s10673_s15 = scalar_lea.sflag [#allocation5], %s225_s30  ;;  %s10667_s13 = int_to_ptr.vmem [resolvable:$true] %s236_s13 }
  0x73   : > { %s10345_s16 = scalar_lea.hbm %s10665_s11, 4096  ;;  %p10347_p9 = pneg %p10669_p11 }
  0x74   : > { %p10346_p7 = scmp.ne.s32.totalorder %s10665_s11, %s10345_s16  ;;  %s10350_s29 = scalar_lea.hbm %s12077_s0, 8192 }
  0x75   : > { %p10351_p2 = scmp.lt.u32.totalorder %s10665_s11, %s12077_s0  ;;  %p10352_p1 = scmp.lt.u32.totalorder %s10350_s29, %s10345_s16 }
  0x76   : > { %p10348_p12 = pnand %p10347_p9, %p10346_p7  ;;  %p10354_p6 = scmp.lt.u32.totalorder %s10345_s16, %s10665_s11 }
  0x77   : > { %p10353_p13 = por %p10352_p1, %p10351_p2 }
  0x78   : > { %p10349_p0 = pneg %p10348_p12 }
  0x79   : > { %p10355_p4 = por %p10354_p6, %p10353_p13 }
  0x7b   : > { %p10356_p8 = pnand %p10355_p4, %p10349_p0 }
  0x7d   : > { %10359 = shalt.err (!%p10356_p8)
}
  0x7e   : > { %s10360_s30 = scalar_lea.vmem %s10667_s13, 4096  ;;  %s10457_s9 = smov [#allocation4]  }
  0x7f   : > { %p10361_p3 = scmp.ne.s32.totalorder %s10667_s13, %s10360_s30  ;;  %s10365_s10 = sshll.u32 %s10457_s9, 4  ;;  %s10366_s10 = int_to_ptr.vmem [resolvable:$false] %s10365_s10 }
  0x80   : > { %s10367_s12 = scalar_lea.vmem %s10366_s10, 8192  ;;  %p10368_p12 = scmp.lt.s32.totalorder %s10667_s13, %s10366_s10 }
  0x81   : > { %p10363_p5 = pnand %p10361_p3, %p10347_p9  ;;  %p10369_p2 = scmp.lt.s32.totalorder %s10367_s12, %s10360_s30 }
  0x83   : > { %p10364_p7 = pneg %p10363_p5  ;;  %p10370_p1 = por %p10369_p2, %p10368_p12 }
  0x85   : > { %p10371_p13 = pnand %p10370_p1, %p10364_p7 }
  0x87   : > { %10374 = shalt.err (!%p10371_p13)
}
  0x88   : > { %s10458_s16 = smov 128   ;;  %s10459_s6 = smov 8  }
  0x89   : > { %10028 = dma.hbm_to_vmem [thread:$0]  (!%p10669_p11), %s10665_s11, 4096, %s10667_s13, %s10673_s15, %s10458_s16, %s10458_s16, %s10459_s6  }
  0x8a   : > { %p12094_p9 = scmp.ne.s32.totalorder %s12088_s26, 0 }
  0x8b   : > { %s10704_s23 = sand.u32 (!%p12094_p9), 1, %s10441_s19   ;;  %p12095_p0 = scmp.ne.s32.totalorder (!%p12094_p9), %s12086_s24, 0 }
  0x8c   : > { %248 = sbr.rel (%p12094_p9) target bundleno = 2075 (0x81b), region = 40  ;;  %s8025_s29 = sshll.u32 (!%p12094_p9), %s10704_s23, 8 }
  0x8d   : > { %s251_s7 = scalar_lea.sflag (!%p12094_p9), [#allocation5], %s10704_s23  ;;  %s10710_s17 = scalar_lea.vmem (!%p12094_p9), [#allocation4], %s8025_s29 }
  0x93   : > { %10420 = dma.done.wait (%p12095_p0), %s251_s7, 4096  }
  0x94   : > { %10422 = vsyncadd (%p12095_p0), %s251_s7, 4294963200  ;;  %p12096_p11 = scmp.eq.s32.totalorder %s10514_s22, 0 }
  0x96   : > { %10424 = dma.done.wait (%p12096_p11), [#allocation8], 9232   ;;  %p12097_p6 = pmov %p12096_p11 }
  0x98   : > { %10426 = vsyncadd (%p12097_p6), [#allocation8], 4294958064  ;;  %p12098_p4 = pmov %p12097_p6 }
  0x9a   : > { %10428 = dma.done.wait (%p12098_p4), [#allocation11], 9232   ;;  %p12099_p8 = pmov %p12098_p4 }
  0x9b   : > { %v10085_v0 = vld [vmem:[#allocation7] sm:$0xff]   ;;  %v10086_v1 = vld [vmem:[#allocation7 + $0x8] sm:$0xff]   ;;  %v10087_v2 = vld [vmem:[#allocation7 + $0x10] sm:$0xff]   ;;  %s11904_s24 = scalar_lea.vmem [#allocation13], %s8025_s29  ;;  %s8183_s26 = sshll.u32 %s10514_s22, 12 }
  0x9c   : > { %10430 = vsyncadd (%p12099_p8), [#allocation11], 4294958064  ;;  %8616 = vmatprep.subr.bf16.mxu0 %v10085_v0  ;;  %v10088_v3 = vld [vmem:[#allocation7 + $0x18] sm:$0xff]   ;;  %v300_v4 = vld [vmem:[%s10710_s17 + $0x10] sm:$0xff]  ;;  %s7903_s11 = sshll.u32 %s11904_s24, 4  ;;  %s12013_s15 = scalar_lea.hbm %s12082_s5, %s8183_s26  ;;  %s12017_s11 = int_to_ptr.vmem [resolvable:$true] %s7903_s11 }
  0x9d   : > { %8617 = vmatpush3.bf16.msra.mxu0 %v10085_v0  ;;  %v301_v5 = vld [vmem:[%s10710_s17 + $0x18] sm:$0xff]  ;;  %v10727_v6 = vld [vmem:[%s10710_s17] sm:$0xff]  ;;  %333 = vst [vmem:[#allocation2 + $0x31] sm:$0xff] %v300_v4  ;;  %363 = vst [vmem:[#allocation2 + $0x1] sm:$0xff] %v300_v4  ;;  %s7890_s22 = scalar_lea.sflag [#allocation6], %s10704_s23  ;;  %s10375_s30 = scalar_lea.vmem %s12017_s11, 4096 }
  0x9e   : > { %8618 = vmatprep.subr.bf16.mxu0 %v10086_v1  ;;  %334 = vst [vmem:[#allocation2 + $0x39] sm:$0xff] %v301_v5  ;;  %364 = vst [vmem:[#allocation2 + $0x9] sm:$0xff] %v301_v5  ;;  %v10730_v7 = vld [vmem:[%s10710_s17 + $0x8] sm:$0xff]  ;;  %v10733_v8 = vpack.c.bf16 %v301_v5, %v300_v4  ;;  %v10737_v9 = vld [vmem:[%s10710_s17 + $0x20] sm:$0xff]  ;;  %p10376_p3 = scmp.ne.s32.totalorder %s12017_s11, %s10375_s30  ;;  %s10460_s9 = smov [#allocation13]  }
  0x9f   : > { %331 = vst [vmem:[#allocation2 + $0x19] sm:$0xff] %v10727_v6  ;;  %332 = vst [vmem:[#allocation2 + $0x21] sm:$0xff] %v10730_v7  ;;  %v10740_v10 = vld [vmem:[%s10710_s17 + $0x28] sm:$0xff]  ;;  %v906_v11 = vpack.c.bf16 %v10730_v7, %v10727_v6  ;;  %v10089_v12 = vld [vmem:[#allocation7 + $0x20] sm:$0xff]   ;;  %s10379_s10 = sshll.u32 %s10460_s9, 4  ;;  %s10380_s10 = int_to_ptr.vmem [resolvable:$false] %s10379_s10 }
  0xa0   : > { %335 = vst [vmem:[#allocation2 + $0x49] sm:$0xff] %v10737_v9  ;;  %336 = vst [vmem:[#allocation2 + $0x51] sm:$0xff] %v10740_v10  ;;  %v908_v13 = vpack.c.bf16 %v10740_v10, %v10737_v9  ;;  %v10749_v14 = vld [vmem:[%s10710_s17 + $0x30] sm:$0xff]  ;;  %v10752_v15 = vld [vmem:[%s10710_s17 + $0x38] sm:$0xff]  ;;  %p10377_p5 = pnand %p10376_p3, %p10652_p10  ;;  %s10381_s12 = scalar_lea.vmem %s10380_s10, 8192 }
  0xa1   : > { %8619 = vmatpush3.bf16.msra.mxu0 %v10086_v1  ;;  %v10755_v16 = vld [vmem:[%s10710_s17 + $0x40] sm:$0xff]  ;;  %337 = vst [vmem:[#allocation2 + $0x61] sm:$0xff] %v10749_v14  ;;  %338 = vst [vmem:[#allocation2 + $0x69] sm:$0xff] %v10752_v15  ;;  %v10760_v17 = vld [vmem:[%s10710_s17 + $0x48] sm:$0xff]  ;;  %v909_v18 = vpack.c.bf16 %v10752_v15, %v10749_v14  ;;  %p10382_p12 = scmp.lt.s32.totalorder %s12017_s11, %s10380_s10  ;;  %p10383_p2 = scmp.lt.s32.totalorder %s10381_s12, %s10375_s30 }
  0xa2   : > { %8620 = vmatprep.subr.bf16.mxu0 %v10087_v2  ;;  %339 = vst [vmem:[#allocation2 + $0x79] sm:$0xff] %v10755_v16  ;;  %340 = vst [vmem:[#allocation2 + $0x81] sm:$0xff] %v10760_v17  ;;  %v308_v19 = vld [vmem:[%s10710_s17 + $0x50] sm:$0xff]  ;;  %v309_v20 = vld [vmem:[%s10710_s17 + $0x58] sm:$0xff]  ;;  %v910_v21 = vpack.c.bf16 %v10760_v17, %v10755_v16  ;;  %p10378_p7 = pneg %p10377_p5 }
  0xa3   : > { %341 = vst [vmem:[#allocation2 + $0x91] sm:$0xff] %v308_v19  ;;  %342 = vst [vmem:[#allocation2 + $0x99] sm:$0xff] %v309_v20  ;;  %v310_v22 = vld [vmem:[%s10710_s17 + $0x60] sm:$0xff]  ;;  %v311_v23 = vld [vmem:[%s10710_s17 + $0x68] sm:$0xff]  ;;  %v10772_v24 = vpack.c.bf16 %v309_v20, %v308_v19  ;;  %p10384_p1 = por %p10383_p2, %p10382_p12 }
  0xa4   : > { %v10090_v25 = vld [vmem:[#allocation7 + $0x28] sm:$0xff]   ;;  %v368_v26 = vld [vmem:[#allocation2 + $0x2] sm:$0x1]  ;;  %343 = vst [vmem:[#allocation2 + $0xa9] sm:$0xff] %v310_v22  ;;  %344 = vst [vmem:[#allocation2 + $0xb1] sm:$0xff] %v311_v23  ;;  %v10774_v28 = vpack.c.bf16 %v311_v23, %v310_v22 }
  0xa5   : > { %8621 = vmatpush3.bf16.msra.mxu0 %v10087_v2  ;;  %386 = vst [vmem:[#allocation2] sm:$0x1] %v368_v26  ;;  %v370_v29 = vld [vmem:[#allocation2 + $0x32] sm:$0x1]  ;;  %v312_v31 = vld [vmem:[%s10710_s17 + $0x70] sm:$0xff]  ;;  %v313_v32 = vld [vmem:[%s10710_s17 + $0x78] sm:$0xff]  ;;  %p10385_p13 = pnand %p10384_p1, %p10378_p7 }
  0xa6   : > { %8622 = vmatprep.subr.bf16.mxu0 %v10088_v3  ;;  %v369_v27 = vld [vmem:[#allocation2 + $0x1a] sm:$0x1]  ;;  %388 = vst [vmem:[#allocation2 + $0x30] sm:$0x1] %v370_v29  ;;  %v10091_v33 = vld [vmem:[#allocation7 + $0x30] sm:$0xff]   ;;  %345 = vst [vmem:[#allocation2 + $0xc1] sm:$0xff] %v312_v31  ;;  %v10778_v36 = vpack.c.bf16 %v313_v32, %v312_v31 }
  0xa7   : > { %387 = vst [vmem:[#allocation2 + $0x18] sm:$0x1] %v369_v27  ;;  %v371_v30 = vld [vmem:[#allocation2 + $0x4a] sm:$0x1]  ;;  %346 = vst [vmem:[#allocation2 + $0xc9] sm:$0xff] %v313_v32  ;;  %v314_v37 = vld [vmem:[%s10710_s17 + $0x80] sm:$0xff] }
  0xa8   : > { %389 = vst [vmem:[#allocation2 + $0x48] sm:$0x1] %v371_v30  ;;  %v372_v34 = vld [vmem:[#allocation2 + $0x62] sm:$0x1]  ;;  %v315_v38 = vld [vmem:[%s10710_s17 + $0x88] sm:$0xff]  ;;  %v473_v39 = vld [vmem:[#allocation2 + $0x8] sm:$0xff] }
  0xa9   : > { %8623 = vmatpush3.bf16.msra.mxu0 %v10088_v3  ;;  %v373_v35 = vld [vmem:[#allocation2 + $0x7a] sm:$0x1]  ;;  %390 = vst [vmem:[#allocation2 + $0x60] sm:$0x1] %v372_v34  ;;  %347 = vst [vmem:[#allocation2 + $0xd9] sm:$0xff] %v314_v37  ;;  %v10782_v41 = vpack.c.bf16 %v315_v38, %v314_v37  ;;  %v10092_v43 = vld [vmem:[#allocation7 + $0x38] sm:$0xff]  }
  0xaa   : > { %8624 = vmatprep.subr.bf16.mxu0 %v10089_v12  ;;  %391 = vst [vmem:[#allocation2 + $0x78] sm:$0x1] %v373_v35  ;;  %v374_v40 = vld [vmem:[#allocation2 + $0x92] sm:$0x1]  ;;  %348 = vst [vmem:[#allocation2 + $0xe1] sm:$0xff] %v315_v38  ;;  %v316_v46 = vld [vmem:[%s10710_s17 + $0x90] sm:$0xff] }
  0xab   : > { %392 = vst [vmem:[#allocation2 + $0x90] sm:$0x1] %v374_v40  ;;  %v375_v42 = vld [vmem:[#allocation2 + $0xaa] sm:$0x1]  ;;  %v475_v48 = vld [vmem:[#allocation2 + $0x20] sm:$0xff]  ;;  %v10093_v49 = vld [vmem:[#allocation7 + $0x40] sm:$0xff]  }
  0xac   : > { %v472_v44 = vld [vmem:[#allocation2] sm:$0xff]  ;;  %393 = vst [vmem:[#allocation2 + $0xa8] sm:$0x1] %v375_v42  ;;  %v317_v47 = vld [vmem:[%s10710_s17 + $0x98] sm:$0xff]  ;;  %349 = vst [vmem:[#allocation2 + $0xf1] sm:$0xff] %v316_v46 }
  0xad   : > { %8625 = vmatpush3.bf16.msra.mxu0 %v10089_v12  ;;  %v536_v45 = vpack.c.bf16 %v473_v39, %v472_v44  ;;  %350 = vst [vmem:[#allocation2 + $0xf9] sm:$0xff] %v317_v47  ;;  %v318_v50 = vld [vmem:[%s10710_s17 + $0xa0] sm:$0xff]  ;;  %v319_v51 = vld [vmem:[%s10710_s17 + $0xa8] sm:$0xff]  ;;  %v10788_v52 = vpack.c.bf16 %v317_v47, %v316_v46  ;;  %v376_v54 = vld [vmem:[#allocation2 + $0xc2] sm:$0x1] }
  0xae   : > { %8626 = vmatprep.subr.bf16.mxu0 %v10090_v25  ;;  %v474_v53 = vld [vmem:[#allocation2 + $0x18] sm:$0xff]  ;;  %351 = vst [vmem:[#allocation2 + $0x109] sm:$0xff] %v318_v50  ;;  %352 = vst [vmem:[#allocation2 + $0x111] sm:$0xff] %v319_v51  ;;  %v10790_v55 = vpack.c.bf16 %v319_v51, %v318_v50  ;;  %v476_v56 = vld [vmem:[#allocation2 + $0x30] sm:$0xff] }
  0xaf   : > { %8632 = vmatprep.mubr.bf16.mxu0 %v536_v45  ;;  %v477_v57 = vld [vmem:[#allocation2 + $0x38] sm:$0xff]  ;;  %394 = vst [vmem:[#allocation2 + $0xc0] sm:$0x1] %v376_v54  ;;  %v10792_v59 = vpack.c.bf16 %v475_v48, %v474_v53  ;;  %v320_v60 = vld [vmem:[%s10710_s17 + $0xb0] sm:$0xff]  ;;  %v321_v61 = vld [vmem:[%s10710_s17 + $0xb8] sm:$0xff] }
  0xb0   : > { %v377_v58 = vld [vmem:[#allocation2 + $0xda] sm:$0x1]  ;;  %v10796_v62 = vpack.c.bf16 %v477_v57, %v476_v56  ;;  %353 = vst [vmem:[#allocation2 + $0x121] sm:$0xff] %v320_v60  ;;  %354 = vst [vmem:[#allocation2 + $0x129] sm:$0xff] %v321_v61  ;;  %v322_v63 = vld [vmem:[%s10710_s17 + $0xc0] sm:$0xff]  ;;  %v10800_v1 = vpack.c.bf16 %v321_v61, %v320_v60 }
  0xb1   : > { %8627 = vmatpush3.bf16.msra.mxu0 %v10090_v25  ;;  %395 = vst [vmem:[#allocation2 + $0xd8] sm:$0x1] %v377_v58  ;;  %v323_v0 = vld [vmem:[%s10710_s17 + $0xc8] sm:$0xff]  ;;  %355 = vst [vmem:[#allocation2 + $0x139] sm:$0xff] %v322_v63  ;;  %v479_v4 = vld [vmem:[#allocation2 + $0x50] sm:$0xff] }
  0xb2   : > { %8628 = vmatprep.subr.bf16.mxu0 %v10091_v33  ;;  %v10094_v2 = vld [vmem:[#allocation7 + $0x48] sm:$0xff]   ;;  %356 = vst [vmem:[#allocation2 + $0x141] sm:$0xff] %v323_v0  ;;  %v10802_v3 = vpack.c.bf16 %v323_v0, %v322_v63  ;;  %v324_v12 = vld [vmem:[%s10710_s17 + $0xd0] sm:$0xff]  ;;  %v481_v19 = vld [vmem:[#allocation2 + $0x68] sm:$0xff] }
  0xb3   : > { %v378_v5 = vld [vmem:[#allocation2 + $0xf2] sm:$0x1]  ;;  %v10095_v20 = vld [vmem:[#allocation7 + $0x50] sm:$0xff]   ;;  %v325_v23 = vld [vmem:[%s10710_s17 + $0xd8] sm:$0xff]  ;;  %357 = vst [vmem:[#allocation2 + $0x151] sm:$0xff] %v324_v12 }
  0xb4   : > { %396 = vst [vmem:[#allocation2 + $0xf0] sm:$0x1] %v378_v5  ;;  %v478_v25 = vld [vmem:[#allocation2 + $0x48] sm:$0xff]  ;;  %358 = vst [vmem:[#allocation2 + $0x159] sm:$0xff] %v325_v23  ;;  %v326_v26 = vld [vmem:[%s10710_s17 + $0xe0] sm:$0xff]  ;;  %v10810_v29 = vpack.c.bf16 %v325_v23, %v324_v12 }
  0xb5   : > { %8629 = vmatpush3.bf16.msra.mxu0 %v10091_v33  ;;  %v379_v22 = vld [vmem:[#allocation2 + $0x10a] sm:$0x1]  ;;  %v327_v27 = vld [vmem:[%s10710_s17 + $0xe8] sm:$0xff]  ;;  %v480_v30 = vld [vmem:[#allocation2 + $0x60] sm:$0xff]  ;;  %359 = vst [vmem:[#allocation2 + $0x169] sm:$0xff] %v326_v26  ;;  %v10814_v32 = vpack.c.bf16 %v479_v4, %v478_v25 }
  0xb6   : > { %8630 = vmatprep.subr.bf16.mxu0 %v10092_v43  ;;  %397 = vst [vmem:[#allocation2 + $0x108] sm:$0x1] %v379_v22  ;;  %360 = vst [vmem:[#allocation2 + $0x171] sm:$0xff] %v327_v27  ;;  %v10812_v31 = vpack.c.bf16 %v327_v27, %v326_v26  ;;  %v10816_v34 = vpack.c.bf16 %v481_v19, %v480_v30  ;;  %v10096_v37 = vld [vmem:[#allocation7 + $0x58] sm:$0xff]   ;;  %v483_v39 = vld [vmem:[#allocation2 + $0x80] sm:$0xff] }
  0xb7   : > { %366 = vst [vmem:[#allocation2 + $0x199] sm:$0xff] %v326_v26  ;;  %367 = vst [vmem:[#allocation2 + $0x1a1] sm:$0xff] %v327_v27  ;;  %v380_v33 = vld [vmem:[#allocation2 + $0x122] sm:$0x1]  ;;  %v485_v40 = vld [vmem:[#allocation2 + $0x98] sm:$0xff] }
  0xb8   : > { %398 = vst [vmem:[#allocation2 + $0x120] sm:$0x1] %v380_v33  ;;  %v381_v35 = vld [vmem:[#allocation2 + $0x13a] sm:$0x1]  ;;  %v10097_v42 = vld [vmem:[#allocation7 + $0x60] sm:$0xff]   ;;  %v489_v51 = vld [vmem:[#allocation2 + $0xc8] sm:$0xff] }
  0xb9   : > { %8631 = vmatpush3.bf16.msra.mxu0 %v10092_v43  ;;  %399 = vst [vmem:[#allocation2 + $0x138] sm:$0x1] %v381_v35  ;;  %v482_v43 = vld [vmem:[#allocation2 + $0x78] sm:$0xff]  ;;  %v484_v45 = vld [vmem:[#allocation2 + $0x90] sm:$0xff]  ;;  %v405_v53 = vld [vmem:[#allocation2 + $0x27] sm:$0x1] }
  0xba   : > { %8664 = vmatprep.subr.bf16.mxu0 %v10093_v49  ;;  %v382_v38 = vld [vmem:[#allocation2 + $0x152] sm:$0x1]  ;;  %v10820_v46 = vpack.c.bf16 %v483_v39, %v482_v43  ;;  %v10822_v47 = vpack.c.bf16 %v485_v40, %v484_v45  ;;  %v10098_v48 = vld [vmem:[#allocation7 + $0x68] sm:$0xff]   ;;  %v486_v54 = vld [vmem:[#allocation2 + $0xa8] sm:$0xff]  ;;  %423 = vst [vmem:[#allocation2 + $0x29] sm:$0x1] %v405_v53 }
  0xbb   : > { %400 = vst [vmem:[#allocation2 + $0x150] sm:$0x1] %v382_v38  ;;  %v487_v50 = vld [vmem:[#allocation2 + $0xb0] sm:$0xff]  ;;  %v488_v56 = vld [vmem:[#allocation2 + $0xc0] sm:$0xff]  ;;  %v406_v58 = vld [vmem:[#allocation2 + $0x3f] sm:$0x1] }
  0xbc   : > { %8633 = vmatmul.mubr.bf16.vlgmr.msra.gmra.mrb[0].mxu0 %v10792_v59  ;;  %v383_v44 = vld [vmem:[#allocation2 + $0x16a] sm:$0x1]  ;;  %v10099_v57 = vld [vmem:[#allocation7 + $0x70] sm:$0xff]   ;;  %424 = vst [vmem:[#allocation2 + $0x41] sm:$0x1] %v406_v58  ;;  %v10826_v61 = vpack.c.bf16 %v487_v50, %v486_v54  ;;  %v10828_v0 = vpack.c.bf16 %v489_v51, %v488_v56  ;;  %v493_v19 = vld [vmem:[#allocation2 + $0xf8] sm:$0xff] }
  0xbd   : > { %8665 = vmatpush3.bf16.msra.mxu0 %v10093_v49  ;;  %8636 = vmatprep.mubr.bf16.mxu0 %v10796_v62  ;;  %401 = vst [vmem:[#allocation2 + $0x168] sm:$0x1] %v383_v44  ;;  %v404_v49 = vld [vmem:[#allocation2 + $0xf] sm:$0x1]  ;;  %v407_v60 = vld [vmem:[#allocation2 + $0x57] sm:$0x1] }
  0xbe   : > { %8666 = vmatprep.subr.bf16.mxu0 %v10094_v2  ;;  %422 = vst [vmem:[#allocation2 + $0x11] sm:$0x1] %v404_v49  ;;  %425 = vst [vmem:[#allocation2 + $0x59] sm:$0x1] %v407_v60  ;;  %v408_v63 = vld [vmem:[#allocation2 + $0x6f] sm:$0x1] }
  0xbf   : > { %426 = vst [vmem:[#allocation2 + $0x71] sm:$0x1] %v408_v63  ;;  %v10100_v4 = vld [vmem:[#allocation7 + $0x78] sm:$0xff]   ;;  %v410_v5 = vld [vmem:[#allocation2 + $0x9f] sm:$0x1]  ;;  %v491_v12 = vld [vmem:[#allocation2 + $0xe0] sm:$0xff] }
  0xc0   : > { %428 = vst [vmem:[#allocation2 + $0xa1] sm:$0x1] %v410_v5  ;;  %v490_v22 = vld [vmem:[#allocation2 + $0xd8] sm:$0xff]  ;;  %v492_v23 = vld [vmem:[#allocation2 + $0xf0] sm:$0xff]  ;;  %v412_v26 = vld [vmem:[#allocation2 + $0xcf] sm:$0x1] }
  0xc1   : > { %8667 = vmatpush3.bf16.msra.mxu0 %v10094_v2  ;;  %v409_v2 = vld [vmem:[#allocation2 + $0x87] sm:$0x1]  ;;  %v10101_v25 = vld [vmem:[#allocation7 + $0x80] sm:$0xff]   ;;  %430 = vst [vmem:[#allocation2 + $0xd1] sm:$0x1] %v412_v26  ;;  %v10832_v30 = vpack.c.bf16 %v491_v12, %v490_v22  ;;  %v10834_v33 = vpack.c.bf16 %v493_v19, %v492_v23  ;;  %v497_v39 = vld [vmem:[#allocation2 + $0x128] sm:$0xff] }
  0xc2   : > { %8668 = vmatprep.subr.bf16.mxu0 %v10095_v20  ;;  %427 = vst [vmem:[#allocation2 + $0x89] sm:$0x1] %v409_v2  ;;  %v413_v27 = vld [vmem:[#allocation2 + $0xe7] sm:$0x1]  ;;  %v414_v35 = vld [vmem:[#allocation2 + $0xff] sm:$0x1] }
  0xc3   : > { %431 = vst [vmem:[#allocation2 + $0xe9] sm:$0x1] %v413_v27  ;;  %432 = vst [vmem:[#allocation2 + $0x101] sm:$0x1] %v414_v35  ;;  %v495_v38 = vld [vmem:[#allocation2 + $0x110] sm:$0xff]  ;;  %v494_v40 = vld [vmem:[#allocation2 + $0x108] sm:$0xff] }
  0xc4   : > { %8637 = vmatmul.mubr.bf16.gmra.mrb[4].mxu0 %v10814_v32  ;;  %v10838_v43 = vpack.c.bf16 %v495_v38, %v494_v40  ;;  %v416_v44 = vld [vmem:[#allocation2 + $0x12f] sm:$0x1]  ;;  %v499_v49 = vld [vmem:[#allocation2 + $0x140] sm:$0xff]  ;;  %v498_v50 = vld [vmem:[#allocation2 + $0x138] sm:$0xff] }
  0xc5   : > { %8640 = vmatprep.mubr.bf16.mxu0 %v10816_v34  ;;  %8669 = vmatpush3.bf16.msra.mxu0 %v10095_v20  ;;  %v411_v20 = vld [vmem:[#allocation2 + $0xb7] sm:$0x1]  ;;  %434 = vst [vmem:[#allocation2 + $0x131] sm:$0x1] %v416_v44  ;;  %v501_v51 = vld [vmem:[#allocation2 + $0x158] sm:$0xff]  ;;  %v10844_v54 = vpack.c.bf16 %v499_v49, %v498_v50  ;;  %v502_v63 = vld [vmem:[#allocation2 + $0x168] sm:$0xff] }
  0xc6   : > { %8670 = vmatprep.subr.bf16.mxu0 %v10096_v37  ;;  %429 = vst [vmem:[#allocation2 + $0xb9] sm:$0x1] %v411_v20  ;;  %v500_v53 = vld [vmem:[#allocation2 + $0x150] sm:$0xff]  ;;  %v418_v56 = vld [vmem:[#allocation2 + $0x15f] sm:$0x1]  ;;  %v10103_v5 = vld [vmem:[#allocation7 + $0x90] sm:$0xff]  }
  0xc7   : > { %436 = vst [vmem:[#allocation2 + $0x161] sm:$0x1] %v418_v56  ;;  %v419_v58 = vld [vmem:[#allocation2 + $0x177] sm:$0x1]  ;;  %v10104_v12 = vld [vmem:[#allocation7 + $0x98] sm:$0xff]   ;;  %v10106_v6 = vld [vmem:[#allocation7 + $0xa8] sm:$0xff]  }
  0xc8   : > { %437 = vst [vmem:[#allocation2 + $0x179] sm:$0x1] %v419_v58  ;;  %v503_v60 = vld [vmem:[#allocation2 + $0x170] sm:$0xff]  ;;  %v10107_v7 = vld [vmem:[#allocation7 + $0xb0] sm:$0xff]   ;;  %v10114_v58 = vld [vmem:[#allocation7 + $0xe8] sm:$0xff]  }
  0xc9   : > { %8671 = vmatpush3.bf16.msra.mxu0 %v10096_v37  ;;  %v415_v37 = vld [vmem:[#allocation2 + $0x117] sm:$0x1]  ;;  %v10850_v2 = vpack.c.bf16 %v503_v60, %v502_v63  ;;  %v10873_v10 = vld [vmem:[%s10710_s17 + $0xf0] sm:$0xff]  ;;  %v1212_v15 = vld [vmem:[#allocation2 + $0xa] sm:$0xff] }
  0xca   : > { %8672 = vmatprep.subr.bf16.mxu0 %v10097_v42  ;;  %433 = vst [vmem:[#allocation2 + $0x119] sm:$0x1] %v415_v37  ;;  %v10105_v19 = vld [vmem:[#allocation7 + $0xa0] sm:$0xff]   ;;  %361 = vst [vmem:[#allocation2 + $0x181] sm:$0xff] %v10873_v10  ;;  %v1211_v14 = vld [vmem:[#allocation2 + $0x2] sm:$0xff] }
  0xcb   : > { %v10109_v9 = vld [vmem:[#allocation7 + $0xc0] sm:$0xff]   ;;  %v1275_v16 = vpack.c.bf16 %v1212_v15, %v1211_v14  ;;  %v1213_v17 = vld [vmem:[#allocation2 + $0x1a] sm:$0xff]  ;;  %v1219_v35 = vld [vmem:[#allocation2 + $0x62] sm:$0xff] }
  0xcc   : > { %8641 = vmatmul.mubr.bf16.gmra.mrb[8].mxu0 %v10820_v46  ;;  %v1216_v20 = vld [vmem:[#allocation2 + $0x3a] sm:$0xff]  ;;  %v1217_v26 = vld [vmem:[#allocation2 + $0x4a] sm:$0xff]  ;;  %v1218_v27 = vld [vmem:[#allocation2 + $0x52] sm:$0xff] }
  0xcd   : > { %8644 = vmatprep.mubr.bf16.mxu0 %v10822_v47  ;;  %8673 = vmatpush3.bf16.msra.mxu0 %v10097_v42  ;;  %v496_v42 = vld [vmem:[#allocation2 + $0x120] sm:$0xff]  ;;  %v1220_v37 = vld [vmem:[#allocation2 + $0x6a] sm:$0xff]  ;;  %v1223_v49 = vld [vmem:[#allocation2 + $0x92] sm:$0xff] }
  0xce   : > { %8674 = vmatprep.subr.bf16.mxu0 %v10098_v48  ;;  %v10840_v45 = vpack.c.bf16 %v497_v39, %v496_v42  ;;  %v10111_v38 = vld [vmem:[#allocation7 + $0xd0] sm:$0xff]   ;;  %v10891_v39 = vpack.c.bf16 %v1218_v27, %v1217_v26  ;;  %v10893_v40 = vpack.c.bf16 %v1220_v37, %v1219_v35  ;;  %v10112_v42 = vld [vmem:[#allocation7 + $0xd8] sm:$0xff]   ;;  %v1226_v63 = vld [vmem:[#allocation2 + $0xb2] sm:$0xff] }
  0xcf   : > { %v1221_v44 = vld [vmem:[#allocation2 + $0x7a] sm:$0xff]  ;;  %v1225_v60 = vld [vmem:[#allocation2 + $0xaa] sm:$0xff] }
  0xd0   : > { %v1224_v50 = vld [vmem:[#allocation2 + $0x9a] sm:$0xff]  ;;  %v10117_v15 = vld [vmem:[#allocation7 + $0x100] sm:$0xff]  }
  0xd1   : > { %8675 = vmatpush3.bf16.msra.mxu0 %v10098_v48  ;;  %v417_v48 = vld [vmem:[#allocation2 + $0x147] sm:$0x1]  ;;  %v10899_v56 = vpack.c.bf16 %v1224_v50, %v1223_v49  ;;  %v1232_v14 = vld [vmem:[#allocation2 + $0xfa] sm:$0xff]  ;;  %v1241_v49 = vld [vmem:[#allocation2 + $0x16a] sm:$0xff] }
  0xd2   : > { %8676 = vmatprep.subr.bf16.mxu0 %v10099_v57  ;;  %435 = vst [vmem:[#allocation2 + $0x149] sm:$0x1] %v417_v48  ;;  %v1222_v48 = vld [vmem:[#allocation2 + $0x82] sm:$0xff]  ;;  %v1237_v35 = vld [vmem:[#allocation2 + $0x13a] sm:$0xff]  ;;  %v1242_v50 = vld [vmem:[#allocation2 + $0x172] sm:$0xff] }
  0xd4   : > { %8645 = vmatmul.mubr.bf16.gmra.mrb[12].mxu0 %v10826_v61 }
  0xd5   : > { %8648 = vmatprep.mubr.bf16.mxu0 %v10828_v0  ;;  %8677 = vmatpush3.bf16.msra.mxu0 %v10099_v57  ;;  %v10846_v57 = vpack.c.bf16 %v501_v51, %v500_v53  ;;  %v10113_v51 = vld [vmem:[#allocation7 + $0xe0] sm:$0xff]   ;;  %v10897_v53 = vpack.c.bf16 %v1222_v48, %v1221_v44 }
  0xd6   : > { %8678 = vmatprep.subr.bf16.mxu0 %v10100_v4 }
  0xd9   : > { %8679 = vmatpush3.bf16.msra.mxu0 %v10100_v4  ;;  %v10102_v4 = vld [vmem:[#allocation7 + $0x88] sm:$0xff]   ;;  %v1238_v37 = vld [vmem:[#allocation2 + $0x142] sm:$0xff] }
  0xda   : > { %8712 = vmatprep.subr.bf16.mxu0 %v10101_v25  ;;  %v10921_v44 = vpack.c.bf16 %v1238_v37, %v1237_v35  ;;  %v10130_v35 = vld [vmem:[#allocation7 + $0x168] sm:$0xff]   ;;  %v10131_v37 = vld [vmem:[#allocation7 + $0x170] sm:$0xff]  }
  0xdc   : > { %8649 = vmatmul.mubr.bf16.gmra.mrb[16].mxu0 %v10832_v30 }
  0xdd   : > { %8652 = vmatprep.mubr.bf16.mxu0 %v10834_v33 }
  0xe4   : > { %8653 = vmatmul.mubr.bf16.gmra.mrb[20].mxu0 %v10838_v43 }
  0xe5   : > { %8656 = vmatprep.mubr.bf16.mxu0 %v10840_v45 }
  0xec   : > { %8657 = vmatmul.mubr.bf16.gmra.mrb[24].mxu0 %v10844_v54 }
  0xed   : > { %8660 = vmatprep.mubr.bf16.mxu0 %v10846_v57 }
  0xf4   : > { %8661 = vmatmul.mubr.bf16.gmra.mrb[28].mxu0 %v10850_v2 }
  0xf5   : > { %8680 = vmatprep.mubr.bf16.mxu0 %v10733_v8 }
  0xfc   : > { %8681 = vmatmul.mubr.bf16.vlgmr.msra.gmra.mrb[0].mxu0 %v906_v11  ;;  %v10879_v11 = vld [vmem:[%s10710_s17 + $0xf8] sm:$0xff] }
  0xfd   : > { %8713 = vmatpush3.bf16.msra.mxu0 %v10101_v25  ;;  %8684 = vmatprep.mubr.bf16.mxu0 %v10733_v8  ;;  %v10108_v8 = vld [vmem:[#allocation7 + $0xb8] sm:$0xff]   ;;  %362 = vst [vmem:[#allocation2 + $0x189] sm:$0xff] %v10879_v11  ;;  %v10110_v25 = vld [vmem:[#allocation7 + $0xc8] sm:$0xff]  }
  0xfe   : > { %8714 = vmatprep.subr.bf16.mxu0 %v10102_v4 }
 0x101   : > { %8715 = vmatpush3.bf16.msra.mxu0 %v10102_v4  ;;  %v1227_v4 = vld [vmem:[#allocation2 + $0xc2] sm:$0xff] }
 0x102   : > { %8716 = vmatprep.subr.bf16.mxu0 %v10103_v5 }
 0x104   : > { %8685 = vmatmul.mubr.bf16.gmra.mrb[4].mxu0 %v908_v13  ;;  %v384_v13 = vld [vmem:[#allocation2 + $0x182] sm:$0x1] }
 0x105   : > { %8688 = vmatprep.mubr.bf16.mxu0 %v909_v18  ;;  %8717 = vmatpush3.bf16.msra.mxu0 %v10103_v5  ;;  %402 = vst [vmem:[#allocation2 + $0x180] sm:$0x1] %v384_v13  ;;  %v1214_v18 = vld [vmem:[#allocation2 + $0x22] sm:$0xff]  ;;  %v1228_v5 = vld [vmem:[#allocation2 + $0xca] sm:$0xff]  ;;  %v1231_v13 = vld [vmem:[#allocation2 + $0xf2] sm:$0xff] }
 0x106   : > { %8718 = vmatprep.subr.bf16.mxu0 %v10104_v12  ;;  %v10885_v22 = vpack.c.bf16 %v1214_v18, %v1213_v17  ;;  %v10911_v17 = vpack.c.bf16 %v1232_v14, %v1231_v13  ;;  %v1233_v18 = vld [vmem:[#allocation2 + $0x10a] sm:$0xff]  ;;  %v1959_v13 = vld [vmem:[#allocation2 + $0x79] sm:$0xff]  ;;  %v1960_v14 = vld [vmem:[#allocation2 + $0x81] sm:$0xff] }
 0x109   : > { %8719 = vmatpush3.bf16.msra.mxu0 %v10104_v12  ;;  %v10115_v12 = vld [vmem:[#allocation7 + $0xf0] sm:$0xff]  }
 0x10a   : > { %8720 = vmatprep.subr.bf16.mxu0 %v10105_v19 }
 0x10c   : > { %8689 = vmatmul.mubr.bf16.gmra.mrb[8].mxu0 %v910_v21  ;;  %v1215_v21 = vld [vmem:[#allocation2 + $0x32] sm:$0xff] }
 0x10d   : > { %8692 = vmatprep.mubr.bf16.mxu0 %v10772_v24  ;;  %8721 = vmatpush3.bf16.msra.mxu0 %v10105_v19  ;;  %v10887_v23 = vpack.c.bf16 %v1216_v20, %v1215_v21  ;;  %v10903_v19 = vpack.c.bf16 %v1226_v63, %v1225_v60  ;;  %v1234_v21 = vld [vmem:[#allocation2 + $0x112] sm:$0xff]  ;;  %v1235_v20 = vld [vmem:[#allocation2 + $0x122] sm:$0xff] }
 0x10e   : > { %8722 = vmatprep.subr.bf16.mxu0 %v10106_v6  ;;  %v10915_v26 = vpack.c.bf16 %v1234_v21, %v1233_v18  ;;  %v10119_v60 = vld [vmem:[#allocation7 + $0x110] sm:$0xff]   ;;  %v10120_v63 = vld [vmem:[#allocation7 + $0x118] sm:$0xff]   ;;  %v10956_v21 = vpack.c.bf16 %v1960_v14, %v1959_v13  ;;  %v10149_v14 = vld [vmem:[#allocation7 + $0x200] sm:$0xff]  }
 0x10f   : > { %v2713_v13 = vld [vmem:[#allocation2 + $0x128] sm:$0xff] }
 0x111   : > { %8723 = vmatpush3.bf16.msra.mxu0 %v10106_v6  ;;  %v10905_v6 = vpack.c.bf16 %v1228_v5, %v1227_v4  ;;  %v10121_v4 = vld [vmem:[#allocation7 + $0x120] sm:$0xff]  }
 0x112   : > { %8724 = vmatprep.subr.bf16.mxu0 %v10107_v7 }
 0x114   : > { %8693 = vmatmul.mubr.bf16.gmra.mrb[12].mxu0 %v10774_v28 }
 0x115   : > { %8696 = vmatprep.mubr.bf16.mxu0 %v10778_v36  ;;  %8725 = vmatpush3.bf16.msra.mxu0 %v10107_v7  ;;  %v10116_v7 = vld [vmem:[#allocation7 + $0xf8] sm:$0xff]  }
 0x116   : > { %8726 = vmatprep.subr.bf16.mxu0 %v10108_v8 }
 0x119   : > { %8727 = vmatpush3.bf16.msra.mxu0 %v10108_v8  ;;  %v1229_v8 = vld [vmem:[#allocation2 + $0xda] sm:$0xff] }
 0x11a   : > { %8760 = vmatprep.subr.bf16.mxu0 %v10109_v9 }
 0x11c   : > { %8697 = vmatmul.mubr.bf16.gmra.mrb[16].mxu0 %v10782_v41 }
 0x11d   : > { %8700 = vmatprep.mubr.bf16.mxu0 %v10788_v52 }
 0x124   : > { %8701 = vmatmul.mubr.bf16.gmra.mrb[20].mxu0 %v10790_v55 }
 0x125   : > { %8704 = vmatprep.mubr.bf16.mxu0 %v10800_v1 }
 0x12c   : > { %8705 = vmatmul.mubr.bf16.gmra.mrb[24].mxu0 %v10802_v3 }
 0x12d   : > { %8708 = vmatprep.mubr.bf16.mxu0 %v10810_v29 }
 0x134   : > { %8709 = vmatmul.mubr.bf16.gmra.mrb[28].mxu0 %v10812_v31 }
 0x135   : > { %8728 = vmatprep.mubr.bf16.mxu0 %v1275_v16 }
 0x13c   : > { %8729 = vmatmul.mubr.bf16.vlgmr.msra.gmra.mrb[0].mxu0 %v10885_v22 }
 0x13d   : > { %8761 = vmatpush3.bf16.msra.mxu0 %v10109_v9  ;;  %8732 = vmatprep.mubr.bf16.mxu0 %v10887_v23  ;;  %v1230_v9 = vld [vmem:[#allocation2 + $0xe2] sm:$0xff] }
 0x13e   : > { %8762 = vmatprep.subr.bf16.mxu0 %v10110_v25  ;;  %v10909_v16 = vpack.c.bf16 %v1230_v9, %v1229_v8  ;;  %v1958_v9 = vld [vmem:[#allocation2 + $0x69] sm:$0xff] }
 0x141   : > { %8763 = vmatpush3.bf16.msra.mxu0 %v10110_v25  ;;  %v1236_v25 = vld [vmem:[#allocation2 + $0x12a] sm:$0xff] }
 0x142   : > { %8764 = vmatprep.subr.bf16.mxu0 %v10111_v38  ;;  %v10917_v27 = vpack.c.bf16 %v1236_v25, %v1235_v20  ;;  %v10128_v20 = vld [vmem:[#allocation7 + $0x158] sm:$0xff]   ;;  %v10129_v25 = vld [vmem:[#allocation7 + $0x160] sm:$0xff]  }
 0x144   : > { %8733 = vmatmul.mubr.bf16.gmra.mrb[4].mxu0 %v10891_v39 }
 0x145   : > { %8736 = vmatprep.mubr.bf16.mxu0 %v10893_v40  ;;  %8765 = vmatpush3.bf16.msra.mxu0 %v10111_v38  ;;  %v1239_v38 = vld [vmem:[#allocation2 + $0x152] sm:$0xff] }
 0x146   : > { %8766 = vmatprep.subr.bf16.mxu0 %v10112_v42 }
 0x149   : > { %8767 = vmatpush3.bf16.msra.mxu0 %v10112_v42  ;;  %v1240_v42 = vld [vmem:[#allocation2 + $0x15a] sm:$0xff] }
 0x14a   : > { %8768 = vmatprep.subr.bf16.mxu0 %v10113_v51  ;;  %v10923_v48 = vpack.c.bf16 %v1240_v42, %v1239_v38  ;;  %v10132_v38 = vld [vmem:[#allocation7 + $0x178] sm:$0xff]   ;;  %v10133_v42 = vld [vmem:[#allocation7 + $0x180] sm:$0xff]  }
 0x14c   : > { %8737 = vmatmul.mubr.bf16.gmra.mrb[8].mxu0 %v10897_v53 }
 0x14d   : > { %8740 = vmatprep.mubr.bf16.mxu0 %v10899_v56  ;;  %8769 = vmatpush3.bf16.msra.mxu0 %v10113_v51  ;;  %v10927_v51 = vpack.c.bf16 %v1242_v50, %v1241_v49  ;;  %v2701_v49 = vld [vmem:[#allocation2 + $0x98] sm:$0xff]  ;;  %v10143_v50 = vld [vmem:[#allocation7 + $0x1d0] sm:$0xff]  }
 0x14e   : > { %8770 = vmatprep.subr.bf16.mxu0 %v10114_v58 }
 0x151   : > { %8771 = vmatpush3.bf16.msra.mxu0 %v10114_v58  ;;  %v10118_v58 = vld [vmem:[#allocation7 + $0x108] sm:$0xff]  }
 0x152   : > { %8772 = vmatprep.subr.bf16.mxu0 %v10115_v12 }
 0x154   : > { %8741 = vmatmul.mubr.bf16.gmra.mrb[12].mxu0 %v10903_v19 }
 0x155   : > { %8744 = vmatprep.mubr.bf16.mxu0 %v10905_v6  ;;  %8773 = vmatpush3.bf16.msra.mxu0 %v10115_v12 }
 0x156   : > { %8774 = vmatprep.subr.bf16.mxu0 %v10116_v7 }
 0x159   : > { %8775 = vmatpush3.bf16.msra.mxu0 %v10116_v7 }
 0x15a   : > { %8808 = vmatprep.subr.bf16.mxu0 %v10117_v15 }
 0x15c   : > { %8745 = vmatmul.mubr.bf16.gmra.mrb[16].mxu0 %v10909_v16 }
 0x15d   : > { %8748 = vmatprep.mubr.bf16.mxu0 %v10911_v17 }
 0x164   : > { %8749 = vmatmul.mubr.bf16.gmra.mrb[20].mxu0 %v10915_v26 }
 0x165   : > { %8752 = vmatprep.mubr.bf16.mxu0 %v10917_v27 }
 0x16c   : > { %8753 = vmatmul.mubr.bf16.gmra.mrb[24].mxu0 %v10921_v44 }
 0x16d   : > { %8756 = vmatprep.mubr.bf16.mxu0 %v10923_v48 }
 0x174   : > { %8757 = vmatmul.mubr.bf16.gmra.mrb[28].mxu0 %v10927_v51 }
 0x175   : > { %8776 = vmatprep.mubr.bf16.mxu0 %v10792_v59  ;;  %v10122_v59 = vld [vmem:[#allocation7 + $0x128] sm:$0xff]  }
 0x17c   : > { %8777 = vmatmul.mubr.bf16.vlgmr.msra.gmra.mrb[0].mxu0 %v10796_v62  ;;  %v10123_v62 = vld [vmem:[#allocation7 + $0x130] sm:$0xff]  }
 0x17d   : > { %8809 = vmatpush3.bf16.msra.mxu0 %v10117_v15  ;;  %8780 = vmatprep.mubr.bf16.mxu0 %v10814_v32  ;;  %v10124_v32 = vld [vmem:[#allocation7 + $0x138] sm:$0xff]   ;;  %v10127_v15 = vld [vmem:[#allocation7 + $0x150] sm:$0xff]  }
 0x17e   : > { %8810 = vmatprep.subr.bf16.mxu0 %v10118_v58 }
 0x181   : > { %8811 = vmatpush3.bf16.msra.mxu0 %v10118_v58 }
 0x182   : > { %8812 = vmatprep.subr.bf16.mxu0 %v10119_v60 }
 0x184   : > { %8781 = vmatmul.mubr.bf16.gmra.mrb[4].mxu0 %v10816_v34  ;;  %v10125_v34 = vld [vmem:[#allocation7 + $0x140] sm:$0xff]  }
 0x185   : > { %8784 = vmatprep.mubr.bf16.mxu0 %v10820_v46  ;;  %8813 = vmatpush3.bf16.msra.mxu0 %v10119_v60  ;;  %v420_v46 = vld [vmem:[#allocation2 + $0x18f] sm:$0x1] }
 0x186   : > { %8814 = vmatprep.subr.bf16.mxu0 %v10120_v63  ;;  %438 = vst [vmem:[#allocation2 + $0x191] sm:$0x1] %v420_v46  ;;  %v10144_v60 = vld [vmem:[#allocation7 + $0x1d8] sm:$0xff]  }
 0x189   : > { %8815 = vmatpush3.bf16.msra.mxu0 %v10120_v63  ;;  %v2702_v63 = vld [vmem:[#allocation2 + $0xa8] sm:$0xff] }
 0x18a   : > { %8816 = vmatprep.subr.bf16.mxu0 %v10121_v4 }
 0x18c   : > { %8785 = vmatmul.mubr.bf16.gmra.mrb[8].mxu0 %v10822_v47  ;;  %v1611_v47 = vld [vmem:[#allocation2 + $0x180] sm:$0xff] }
 0x18d   : > { %8788 = vmatprep.mubr.bf16.mxu0 %v10826_v61  ;;  %8817 = vmatpush3.bf16.msra.mxu0 %v10121_v4  ;;  %v1612_v61 = vld [vmem:[#allocation2 + $0x188] sm:$0xff]  ;;  %v2703_v4 = vld [vmem:[#allocation2 + $0xb0] sm:$0xff] }
 0x18e   : > { %8818 = vmatprep.subr.bf16.mxu0 %v10122_v59  ;;  %v10945_v5 = vpack.c.bf16 %v1612_v61, %v1611_v47  ;;  %v10146_v47 = vld [vmem:[#allocation7 + $0x1e8] sm:$0xff]  }
 0x18f   : > { %v2706_v61 = vld [vmem:[#allocation2 + $0xd8] sm:$0xff] }
 0x191   : > { %8819 = vmatpush3.bf16.msra.mxu0 %v10122_v59  ;;  %v2704_v59 = vld [vmem:[#allocation2 + $0xc0] sm:$0xff] }
 0x192   : > { %8820 = vmatprep.subr.bf16.mxu0 %v10123_v62 }
 0x194   : > { %8789 = vmatmul.mubr.bf16.gmra.mrb[12].mxu0 %v10828_v0  ;;  %v1951_v0 = vld [vmem:[#allocation2 + $0x19] sm:$0xff] }
 0x195   : > { %8792 = vmatprep.mubr.bf16.mxu0 %v10832_v30  ;;  %8821 = vmatpush3.bf16.msra.mxu0 %v10123_v62  ;;  %v1952_v30 = vld [vmem:[#allocation2 + $0x21] sm:$0xff] }
 0x196   : > { %8822 = vmatprep.subr.bf16.mxu0 %v10124_v32  ;;  %v2015_v12 = vpack.c.bf16 %v1952_v30, %v1951_v0  ;;  %v2705_v62 = vld [vmem:[#allocation2 + $0xc8] sm:$0xff]  ;;  %v2707_v0 = vld [vmem:[#allocation2 + $0xe0] sm:$0xff]  ;;  %v2708_v30 = vld [vmem:[#allocation2 + $0xf0] sm:$0xff] }
 0x197   : > { %v2762_v46 = vpack.c.bf16 %v2705_v62, %v2704_v59  ;;  %v3084_v59 = vld [vmem:[#allocation2 + $0x139] sm:$0xff]  ;;  %v3085_v62 = vld [vmem:[#allocation2 + $0x141] sm:$0xff] }
 0x199   : > { %8823 = vmatpush3.bf16.msra.mxu0 %v10124_v32  ;;  %v10145_v32 = vld [vmem:[#allocation7 + $0x1e0] sm:$0xff]  }
 0x19a   : > { %8856 = vmatprep.subr.bf16.mxu0 %v10125_v34 }
 0x19c   : > { %8793 = vmatmul.mubr.bf16.gmra.mrb[16].mxu0 %v10834_v33  ;;  %v1953_v33 = vld [vmem:[#allocation2 + $0x31] sm:$0xff] }
 0x19d   : > { %8796 = vmatprep.mubr.bf16.mxu0 %v10838_v43  ;;  %v1954_v43 = vld [vmem:[#allocation2 + $0x39] sm:$0xff] }
 0x19e   : > { %v10948_v7 = vpack.c.bf16 %v1954_v43, %v1953_v33  ;;  %v10147_v33 = vld [vmem:[#allocation7 + $0x1f0] sm:$0xff]   ;;  %v2763_v43 = vpack.c.bf16 %v2707_v0, %v2706_v61  ;;  %v3088_v61 = vld [vmem:[#allocation2 + $0x169] sm:$0xff]  ;;  %v3089_v0 = vld [vmem:[#allocation2 + $0x171] sm:$0xff] }
 0x1a4   : > { %8797 = vmatmul.mubr.bf16.gmra.mrb[20].mxu0 %v10840_v45  ;;  %v1955_v45 = vld [vmem:[#allocation2 + $0x49] sm:$0xff] }
 0x1a5   : > { %8800 = vmatprep.mubr.bf16.mxu0 %v10844_v54  ;;  %v1956_v54 = vld [vmem:[#allocation2 + $0x51] sm:$0xff] }
 0x1a6   : > { %v10950_v8 = vpack.c.bf16 %v1956_v54, %v1955_v45  ;;  %v10148_v54 = vld [vmem:[#allocation7 + $0x1f8] sm:$0xff]  }
 0x1ac   : > { %8801 = vmatmul.mubr.bf16.gmra.mrb[24].mxu0 %v10846_v57  ;;  %v10126_v57 = vld [vmem:[#allocation7 + $0x148] sm:$0xff]  }
 0x1ad   : > { %8804 = vmatprep.mubr.bf16.mxu0 %v10850_v2  ;;  %v1957_v2 = vld [vmem:[#allocation2 + $0x61] sm:$0xff] }
 0x1ae   : > { %v10954_v18 = vpack.c.bf16 %v1958_v9, %v1957_v2  ;;  %v2711_v2 = vld [vmem:[#allocation2 + $0x110] sm:$0xff]  ;;  %v2712_v9 = vld [vmem:[#allocation2 + $0x120] sm:$0xff] }
 0x1b4   : > { %8805 = vmatmul.mubr.bf16.gmra.mrb[28].mxu0 %v10945_v5 }
 0x1b5   : > { %8824 = vmatprep.mubr.bf16.mxu0 %v2015_v12  ;;  %v2709_v12 = vld [vmem:[#allocation2 + $0xf8] sm:$0xff] }
 0x1b6   : > { %v2764_v45 = vpack.c.bf16 %v2709_v12, %v2708_v30  ;;  %v3139_v30 = vpack.c.bf16 %v3089_v0, %v3088_v61  ;;  %v3092_v12 = vld [vmem:[#allocation2 + $0x199] sm:$0xff] }
 0x1bc   : > { %8825 = vmatmul.mubr.bf16.vlgmr.msra.gmra.mrb[0].mxu0 %v10948_v7 }
 0x1bd   : > { %8857 = vmatpush3.bf16.msra.mxu0 %v10125_v34  ;;  %8828 = vmatprep.mubr.bf16.mxu0 %v10950_v8  ;;  %v2761_v34 = vpack.c.bf16 %v2703_v4, %v2702_v63 }
 0x1be   : > { %8858 = vmatprep.subr.bf16.mxu0 %v10126_v57 }
 0x1c1   : > { %8859 = vmatpush3.bf16.msra.mxu0 %v10126_v57  ;;  %v2710_v57 = vld [vmem:[#allocation2 + $0x108] sm:$0xff] }
 0x1c2   : > { %8860 = vmatprep.subr.bf16.mxu0 %v10127_v15 }
 0x1c4   : > { %8829 = vmatmul.mubr.bf16.gmra.mrb[4].mxu0 %v10954_v18 }
 0x1c5   : > { %8832 = vmatprep.mubr.bf16.mxu0 %v10956_v21  ;;  %8861 = vmatpush3.bf16.msra.mxu0 %v10127_v15  ;;  %v2765_v15 = vpack.c.bf16 %v2711_v2, %v2710_v57  ;;  %v3434_v2 = vld [vmem:[#allocation2 + $0x4a] sm:$0xff] }
 0x1c6   : > { %8862 = vmatprep.subr.bf16.mxu0 %v10128_v20 }
 0x1c9   : > { %8863 = vmatpush3.bf16.msra.mxu0 %v10128_v20  ;;  %v2766_v20 = vpack.c.bf16 %v2713_v13, %v2712_v9  ;;  %v3435_v9 = vld [vmem:[#allocation2 + $0x52] sm:$0xff]  ;;  %v3436_v13 = vld [vmem:[#allocation2 + $0x62] sm:$0xff] }
 0x1ca   : > { %8864 = vmatprep.subr.bf16.mxu0 %v10129_v25 }
 0x1cc   : > { %8833 = vmatmul.mubr.bf16.gmra.mrb[8].mxu0 %v10772_v24  ;;  %v385_v24 = vld [vmem:[#allocation2 + $0x19a] sm:$0x1] }
 0x1cd   : > { %8836 = vmatprep.mubr.bf16.mxu0 %v10774_v28  ;;  %8865 = vmatpush3.bf16.msra.mxu0 %v10129_v25  ;;  %403 = vst [vmem:[#allocation2 + $0x198] sm:$0x1] %v385_v24  ;;  %v10972_v28 = vpack.c.bf16 %v10879_v11, %v10873_v10  ;;  %v2351_v10 = vld [vmem:[#allocation2 + $0x182] sm:$0xff]  ;;  %v2352_v11 = vld [vmem:[#allocation2 + $0x18a] sm:$0xff]  ;;  %v2714_v25 = vld [vmem:[#allocation2 + $0x138] sm:$0xff] }
 0x1ce   : > { %8866 = vmatprep.subr.bf16.mxu0 %v10130_v35 }
 0x1d1   : > { %8867 = vmatpush3.bf16.msra.mxu0 %v10130_v35  ;;  %v2715_v35 = vld [vmem:[#allocation2 + $0x140] sm:$0xff] }
 0x1d2   : > { %8868 = vmatprep.subr.bf16.mxu0 %v10131_v37 }
 0x1d4   : > { %8837 = vmatmul.mubr.bf16.gmra.mrb[12].mxu0 %v10778_v36  ;;  %v10134_v36 = vld [vmem:[#allocation7 + $0x188] sm:$0xff]  }
 0x1d5   : > { %8840 = vmatprep.mubr.bf16.mxu0 %v10782_v41  ;;  %8869 = vmatpush3.bf16.msra.mxu0 %v10131_v37  ;;  %v10135_v41 = vld [vmem:[#allocation7 + $0x190] sm:$0xff]   ;;  %v2716_v37 = vld [vmem:[#allocation2 + $0x150] sm:$0xff] }
 0x1d6   : > { %8870 = vmatprep.subr.bf16.mxu0 %v10132_v38 }
 0x1d9   : > { %8871 = vmatpush3.bf16.msra.mxu0 %v10132_v38  ;;  %v2717_v38 = vld [vmem:[#allocation2 + $0x158] sm:$0xff] }
 0x1da   : > { %8904 = vmatprep.subr.bf16.mxu0 %v10133_v42  ;;  %v2768_v24 = vpack.c.bf16 %v2717_v38, %v2716_v37  ;;  %v3440_v37 = vld [vmem:[#allocation2 + $0x92] sm:$0xff] }
 0x1dc   : > { %8841 = vmatmul.mubr.bf16.gmra.mrb[16].mxu0 %v10788_v52  ;;  %v10136_v52 = vld [vmem:[#allocation7 + $0x198] sm:$0xff]  }
 0x1dd   : > { %8844 = vmatprep.mubr.bf16.mxu0 %v10790_v55  ;;  %v10137_v55 = vld [vmem:[#allocation7 + $0x1a0] sm:$0xff]  }
 0x1e4   : > { %8845 = vmatmul.mubr.bf16.gmra.mrb[20].mxu0 %v10800_v1  ;;  %v10138_v1 = vld [vmem:[#allocation7 + $0x1a8] sm:$0xff]  }
 0x1e5   : > { %8848 = vmatprep.mubr.bf16.mxu0 %v10802_v3  ;;  %v10139_v3 = vld [vmem:[#allocation7 + $0x1b0] sm:$0xff]  }
 0x1ec   : > { %8849 = vmatmul.mubr.bf16.gmra.mrb[24].mxu0 %v10810_v29  ;;  %v10140_v29 = vld [vmem:[#allocation7 + $0x1b8] sm:$0xff]  }
 0x1ed   : > { %8852 = vmatprep.mubr.bf16.mxu0 %v10812_v31  ;;  %v10141_v31 = vld [vmem:[#allocation7 + $0x1c0] sm:$0xff]  }
 0x1f4   : > { %8853 = vmatmul.mubr.bf16.gmra.mrb[28].mxu0 %v10972_v28 }
 0x1f5   : > { %8872 = vmatprep.mubr.bf16.mxu0 %v10885_v22  ;;  %v2692_v22 = vld [vmem:[#allocation2 + $0x30] sm:$0xff] }
 0x1fc   : > { %8873 = vmatmul.mubr.bf16.vlgmr.msra.gmra.mrb[0].mxu0 %v10887_v23  ;;  %v2693_v23 = vld [vmem:[#allocation2 + $0x38] sm:$0xff] }
 0x1fd   : > { %8905 = vmatpush3.bf16.msra.mxu0 %v10133_v42  ;;  %8876 = vmatprep.mubr.bf16.mxu0 %v10891_v39  ;;  %v10990_v39 = vpack.c.bf16 %v2352_v11, %v2351_v10  ;;  %v2767_v42 = vpack.c.bf16 %v2715_v35, %v2714_v25  ;;  %v3070_v10 = vld [vmem:[#allocation2 + $0x91] sm:$0xff]  ;;  %v3071_v11 = vld [vmem:[#allocation2 + $0x99] sm:$0xff]  ;;  %v3439_v35 = vld [vmem:[#allocation2 + $0x82] sm:$0xff] }
 0x1fe   : > { %8906 = vmatprep.subr.bf16.mxu0 %v10134_v36  ;;  %v3438_v25 = vld [vmem:[#allocation2 + $0x7a] sm:$0xff] }
 0x1ff   : > { %v3499_v38 = vpack.c.bf16 %v3439_v35, %v3438_v25 }
 0x201   : > { %8907 = vmatpush3.bf16.msra.mxu0 %v10134_v36  ;;  %v2718_v36 = vld [vmem:[#allocation2 + $0x168] sm:$0xff] }
 0x202   : > { %8908 = vmatprep.subr.bf16.mxu0 %v10135_v41 }
 0x204   : > { %8877 = vmatmul.mubr.bf16.gmra.mrb[4].mxu0 %v10893_v40  ;;  %v2756_v40 = vpack.c.bf16 %v2693_v23, %v2692_v22  ;;  %v10151_v22 = vld [vmem:[#allocation7 + $0x210] sm:$0xff]   ;;  %v3130_v23 = vpack.c.bf16 %v3071_v11, %v3070_v10 }
 0x205   : > { %8880 = vmatprep.mubr.bf16.mxu0 %v10897_v53  ;;  %8909 = vmatpush3.bf16.msra.mxu0 %v10135_v41  ;;  %v2694_v53 = vld [vmem:[#allocation2 + $0x48] sm:$0xff]  ;;  %v2719_v41 = vld [vmem:[#allocation2 + $0x170] sm:$0xff]  ;;  %v3449_v10 = vld [vmem:[#allocation2 + $0xfa] sm:$0xff] }
 0x206   : > { %8910 = vmatprep.subr.bf16.mxu0 %v10136_v52 }
 0x209   : > { %8911 = vmatpush3.bf16.msra.mxu0 %v10136_v52  ;;  %v2769_v52 = vpack.c.bf16 %v2719_v41, %v2718_v36  ;;  %v3443_v36 = vld [vmem:[#allocation2 + $0xb2] sm:$0xff]  ;;  %v3444_v41 = vld [vmem:[#allocation2 + $0xc2] sm:$0xff] }
 0x20a   : > { %8912 = vmatprep.subr.bf16.mxu0 %v10137_v55 }
 0x20c   : > { %8881 = vmatmul.mubr.bf16.gmra.mrb[8].mxu0 %v10899_v56  ;;  %v2695_v56 = vld [vmem:[#allocation2 + $0x50] sm:$0xff] }
 0x20d   : > { %8884 = vmatprep.mubr.bf16.mxu0 %v10903_v19  ;;  %8913 = vmatpush3.bf16.msra.mxu0 %v10137_v55  ;;  %v2696_v19 = vld [vmem:[#allocation2 + $0x60] sm:$0xff] }
 0x20e   : > { %8914 = vmatprep.subr.bf16.mxu0 %v10138_v1  ;;  %v421_v55 = vld [vmem:[#allocation2 + $0x1a7] sm:$0x1] }
 0x20f   : > { %439 = vst [vmem:[#allocation2 + $0x1a9] sm:$0x1] %v421_v55 }
 0x211   : > { %8915 = vmatpush3.bf16.msra.mxu0 %v10138_v1  ;;  %v2722_v1 = vld [vmem:[#allocation2 + $0x198] sm:$0xff] }
 0x212   : > { %8916 = vmatprep.subr.bf16.mxu0 %v10139_v3 }
 0x214   : > { %8885 = vmatmul.mubr.bf16.gmra.mrb[12].mxu0 %v10905_v6  ;;  %v2697_v6 = vld [vmem:[#allocation2 + $0x68] sm:$0xff] }
 0x215   : > { %8888 = vmatprep.mubr.bf16.mxu0 %v10909_v16  ;;  %8917 = vmatpush3.bf16.msra.mxu0 %v10139_v3  ;;  %v2757_v16 = vpack.c.bf16 %v2695_v56, %v2694_v53  ;;  %v2723_v3 = vld [vmem:[#allocation2 + $0x1a0] sm:$0xff]  ;;  %v3073_v53 = vld [vmem:[#allocation2 + $0xb1] sm:$0xff]  ;;  %v3075_v56 = vld [vmem:[#allocation2 + $0xc9] sm:$0xff] }
 0x216   : > { %8918 = vmatprep.subr.bf16.mxu0 %v10140_v29 }
 0x219   : > { %8919 = vmatpush3.bf16.msra.mxu0 %v10140_v29  ;;  %v2771_v29 = vpack.c.bf16 %v2723_v3, %v2722_v1  ;;  %v3446_v3 = vld [vmem:[#allocation2 + $0xda] sm:$0xff] }
 0x21a   : > { %8952 = vmatprep.subr.bf16.mxu0 %v10141_v31 }
 0x21c   : > { %8889 = vmatmul.mubr.bf16.gmra.mrb[16].mxu0 %v10911_v17  ;;  %v2758_v17 = vpack.c.bf16 %v2697_v6, %v2696_v19  ;;  %v10154_v6 = vld [vmem:[#allocation7 + $0x228] sm:$0xff]  }
 0x21d   : > { %8892 = vmatprep.mubr.bf16.mxu0 %v10915_v26  ;;  %v10142_v26 = vld [vmem:[#allocation7 + $0x1c8] sm:$0xff]  }
 0x224   : > { %8893 = vmatmul.mubr.bf16.gmra.mrb[20].mxu0 %v10917_v27  ;;  %v2698_v27 = vld [vmem:[#allocation2 + $0x78] sm:$0xff] }
 0x225   : > { %8896 = vmatprep.mubr.bf16.mxu0 %v10921_v44  ;;  %v2699_v44 = vld [vmem:[#allocation2 + $0x80] sm:$0xff] }
 0x22c   : > { %8897 = vmatmul.mubr.bf16.gmra.mrb[24].mxu0 %v10923_v48  ;;  %v2700_v48 = vld [vmem:[#allocation2 + $0x90] sm:$0xff] }
 0x22d   : > { %8900 = vmatprep.mubr.bf16.mxu0 %v10927_v51  ;;  %v2759_v51 = vpack.c.bf16 %v2699_v44, %v2698_v27  ;;  %v2760_v58 = vpack.c.bf16 %v2701_v49, %v2700_v48  ;;  %v10155_v27 = vld [vmem:[#allocation7 + $0x230] sm:$0xff]   ;;  %v10156_v49 = vld [vmem:[#allocation7 + $0x238] sm:$0xff]  }
 0x234   : > { %8901 = vmatmul.mubr.bf16.gmra.mrb[28].mxu0 %v10990_v39 }
 0x235   : > { %8920 = vmatprep.mubr.bf16.mxu0 %v2756_v40  ;;  %v3072_v40 = vld [vmem:[#allocation2 + $0xa9] sm:$0xff] }
 0x236   : > { %v3131_v19 = vpack.c.bf16 %v3073_v53, %v3072_v40  ;;  %v3452_v40 = vld [vmem:[#allocation2 + $0x122] sm:$0xff]  ;;  %v3453_v53 = vld [vmem:[#allocation2 + $0x12a] sm:$0xff] }
 0x23c   : > { %8921 = vmatmul.mubr.bf16.vlgmr.msra.gmra.mrb[0].mxu0 %v2757_v16  ;;  %v3076_v16 = vld [vmem:[#allocation2 + $0xd9] sm:$0xff] }
 0x23d   : > { %8953 = vmatpush3.bf16.msra.mxu0 %v10141_v31  ;;  %8924 = vmatprep.mubr.bf16.mxu0 %v2758_v17  ;;  %v10150_v31 = vld [vmem:[#allocation7 + $0x208] sm:$0xff]   ;;  %v3077_v17 = vld [vmem:[#allocation2 + $0xe1] sm:$0xff] }
 0x23e   : > { %8954 = vmatprep.subr.bf16.mxu0 %v10142_v26  ;;  %v3133_v44 = vpack.c.bf16 %v3077_v17, %v3076_v16 }
 0x241   : > { %8955 = vmatpush3.bf16.msra.mxu0 %v10142_v26  ;;  %v3078_v26 = vld [vmem:[#allocation2 + $0xf1] sm:$0xff] }
 0x242   : > { %8956 = vmatprep.subr.bf16.mxu0 %v10143_v50 }
 0x244   : > { %8925 = vmatmul.mubr.bf16.gmra.mrb[4].mxu0 %v2759_v51  ;;  %v3081_v51 = vld [vmem:[#allocation2 + $0x111] sm:$0xff] }
 0x245   : > { %8928 = vmatprep.mubr.bf16.mxu0 %v2760_v58  ;;  %8957 = vmatpush3.bf16.msra.mxu0 %v10143_v50  ;;  %v3080_v50 = vld [vmem:[#allocation2 + $0x109] sm:$0xff]  ;;  %v3082_v58 = vld [vmem:[#allocation2 + $0x121] sm:$0xff] }
 0x246   : > { %8958 = vmatprep.subr.bf16.mxu0 %v10144_v60  ;;  %v3135_v63 = vpack.c.bf16 %v3081_v51, %v3080_v50  ;;  %v11000_v51 = vld [vmem:[#allocation9] ss:$0 sm:$0xff] }
 0x249   : > { %8959 = vmatpush3.bf16.msra.mxu0 %v10144_v60  ;;  %v3083_v60 = vld [vmem:[#allocation2 + $0x129] sm:$0xff] }
 0x24a   : > { %8960 = vmatprep.subr.bf16.mxu0 %v10145_v32  ;;  %v3136_v4 = vpack.c.bf16 %v3083_v60, %v3082_v58 }
 0x24c   : > { %8929 = vmatmul.mubr.bf16.gmra.mrb[8].mxu0 %v2761_v34  ;;  %v3087_v34 = vld [vmem:[#allocation2 + $0x159] sm:$0xff] }
 0x24d   : > { %8932 = vmatprep.mubr.bf16.mxu0 %v2762_v46  ;;  %8961 = vmatpush3.bf16.msra.mxu0 %v10145_v32  ;;  %v3086_v32 = vld [vmem:[#allocation2 + $0x151] sm:$0xff]  ;;  %v3137_v46 = vpack.c.bf16 %v3085_v62, %v3084_v59 }
 0x24e   : > { %8962 = vmatprep.subr.bf16.mxu0 %v10146_v47 }
 0x251   : > { %8963 = vmatpush3.bf16.msra.mxu0 %v10146_v47  ;;  %v3138_v47 = vpack.c.bf16 %v3087_v34, %v3086_v32 }
 0x252   : > { %8964 = vmatprep.subr.bf16.mxu0 %v10147_v33 }
 0x254   : > { %8933 = vmatmul.mubr.bf16.gmra.mrb[12].mxu0 %v2763_v43  ;;  %v3432_v43 = vld [vmem:[#allocation2 + $0x32] sm:$0xff] }
 0x255   : > { %8936 = vmatprep.mubr.bf16.mxu0 %v2764_v45  ;;  %8965 = vmatpush3.bf16.msra.mxu0 %v10147_v33  ;;  %v3093_v33 = vld [vmem:[#allocation2 + $0x1a1] sm:$0xff] }
 0x256   : > { %8966 = vmatprep.subr.bf16.mxu0 %v10148_v54  ;;  %v3433_v45 = vld [vmem:[#allocation2 + $0x3a] sm:$0xff] }
 0x257   : > { %v3496_v57 = vpack.c.bf16 %v3433_v45, %v3432_v43 }
 0x259   : > { %8967 = vmatpush3.bf16.msra.mxu0 %v10148_v54  ;;  %v3141_v54 = vpack.c.bf16 %v3093_v33, %v3092_v12 }
 0x25a   : > { %9000 = vmatprep.subr.bf16.mxu0 %v10149_v14 }
 0x25c   : > { %8937 = vmatmul.mubr.bf16.gmra.mrb[16].mxu0 %v2765_v15  ;;  %v3497_v15 = vpack.c.bf16 %v3435_v9, %v3434_v2 }
 0x25d   : > { %8940 = vmatprep.mubr.bf16.mxu0 %v2766_v20 }
 0x264   : > { %8941 = vmatmul.mubr.bf16.gmra.mrb[20].mxu0 %v2767_v42 }
 0x265   : > { %8944 = vmatprep.mubr.bf16.mxu0 %v2768_v24  ;;  %v3442_v24 = vld [vmem:[#allocation2 + $0xaa] sm:$0xff] }
 0x266   : > { %v3501_v55 = vpack.c.bf16 %v3443_v36, %v3442_v24 }
 0x26c   : > { %8945 = vmatmul.mubr.bf16.gmra.mrb[24].mxu0 %v2769_v52  ;;  %v3445_v52 = vld [vmem:[#allocation2 + $0xca] sm:$0xff] }
 0x26d   : > { %8948 = vmatprep.mubr.bf16.mxu0 %v10945_v5  ;;  %v10152_v5 = vld [vmem:[#allocation7 + $0x218] sm:$0xff]   ;;  %v3502_v1 = vpack.c.bf16 %v3445_v52, %v3444_v41 }
 0x274   : > { %8949 = vmatmul.mubr.bf16.gmra.mrb[28].mxu0 %v2771_v29  ;;  %v3447_v29 = vld [vmem:[#allocation2 + $0xe2] sm:$0xff] }
 0x275   : > { %8968 = vmatprep.mubr.bf16.mxu0 %v10948_v7  ;;  %v3074_v7 = vld [vmem:[#allocation2 + $0xc1] sm:$0xff]  ;;  %v3503_v11 = vpack.c.bf16 %v3447_v29, %v3446_v3 }
 0x27c   : > { %8969 = vmatmul.mubr.bf16.vlgmr.msra.gmra.mrb[0].mxu0 %v10950_v8  ;;  %v10153_v8 = vld [vmem:[#allocation7 + $0x220] sm:$0xff]  }
 0x27d   : > { %9001 = vmatpush3.bf16.msra.mxu0 %v10149_v14  ;;  %8972 = vmatprep.mubr.bf16.mxu0 %v10954_v18  ;;  %v3132_v18 = vpack.c.bf16 %v3075_v56, %v3074_v7  ;;  %v3437_v14 = vld [vmem:[#allocation2 + $0x6a] sm:$0xff]  ;;  %v3506_v56 = vpack.c.bf16 %v3453_v53, %v3452_v40 }
 0x27e   : > { %9002 = vmatprep.subr.bf16.mxu0 %v10150_v31  ;;  %v3498_v20 = vpack.c.bf16 %v3437_v14, %v3436_v13 }
 0x281   : > { %9003 = vmatpush3.bf16.msra.mxu0 %v10150_v31  ;;  %v3448_v31 = vld [vmem:[#allocation2 + $0xf2] sm:$0xff] }
 0x282   : > { %9004 = vmatprep.subr.bf16.mxu0 %v10151_v22 }
 0x284   : > { %8973 = vmatmul.mubr.bf16.gmra.mrb[4].mxu0 %v10956_v21  ;;  %v3079_v21 = vld [vmem:[#allocation2 + $0xf9] sm:$0xff] }
 0x285   : > { %8976 = vmatprep.mubr.bf16.mxu0 %v3130_v23  ;;  %9005 = vmatpush3.bf16.msra.mxu0 %v10151_v22  ;;  %v3134_v48 = vpack.c.bf16 %v3079_v21, %v3078_v26  ;;  %v3504_v22 = vpack.c.bf16 %v3449_v10, %v3448_v31  ;;  %v3450_v23 = vld [vmem:[#allocation2 + $0x10a] sm:$0xff]  ;;  %v3459_v21 = vld [vmem:[#allocation2 + $0x172] sm:$0xff] }
 0x286   : > { %9006 = vmatprep.subr.bf16.mxu0 %v10152_v5  ;;  %v3458_v26 = vld [vmem:[#allocation2 + $0x16a] sm:$0xff] }
 0x289   : > { %9007 = vmatpush3.bf16.msra.mxu0 %v10152_v5  ;;  %v3451_v5 = vld [vmem:[#allocation2 + $0x112] sm:$0xff] }
 0x28a   : > { %9008 = vmatprep.subr.bf16.mxu0 %v10153_v8  ;;  %v3505_v7 = vpack.c.bf16 %v3451_v5, %v3450_v23 }
 0x28c   : > { %8977 = vmatmul.mubr.bf16.gmra.mrb[8].mxu0 %v3131_v19  ;;  %v3455_v19 = vld [vmem:[#allocation2 + $0x142] sm:$0xff] }
 0x28d   : > { %8980 = vmatprep.mubr.bf16.mxu0 %v3132_v18  ;;  %9009 = vmatpush3.bf16.msra.mxu0 %v10153_v8  ;;  %v3454_v8 = vld [vmem:[#allocation2 + $0x13a] sm:$0xff]  ;;  %v3456_v18 = vld [vmem:[#allocation2 + $0x152] sm:$0xff] }
 0x28e   : > { %9010 = vmatprep.subr.bf16.mxu0 %v10154_v6  ;;  %v3507_v16 = vpack.c.bf16 %v3455_v19, %v3454_v8 }
 0x291   : > { %9011 = vmatpush3.bf16.msra.mxu0 %v10154_v6  ;;  %v3457_v6 = vld [vmem:[#allocation2 + $0x15a] sm:$0xff] }
 0x292   : > { %9012 = vmatprep.subr.bf16.mxu0 %v10155_v27  ;;  %v3508_v17 = vpack.c.bf16 %v3457_v6, %v3456_v18 }
 0x294   : > { %8981 = vmatmul.mubr.bf16.gmra.mrb[12].mxu0 %v3133_v44  ;;  %v3462_v44 = vld [vmem:[#allocation2 + $0x19a] sm:$0xff] }
 0x295   : > { %8984 = vmatprep.mubr.bf16.mxu0 %v3134_v48  ;;  %9013 = vmatpush3.bf16.msra.mxu0 %v10155_v27  ;;  %v3509_v27 = vpack.c.bf16 %v3459_v21, %v3458_v26  ;;  %v3463_v48 = vld [vmem:[#allocation2 + $0x1a2] sm:$0xff] }
 0x296   : > { %9014 = vmatprep.subr.bf16.mxu0 %v10156_v49 }
 0x299   : > { %9015 = vmatpush3.bf16.msra.mxu0 %v10156_v49  ;;  %v3511_v49 = vpack.c.bf16 %v3463_v48, %v3462_v44 }
 0x29c   : > { %8985 = vmatmul.mubr.bf16.gmra.mrb[16].mxu0 %v3135_v63 }
 0x29d   : > { %8988 = vmatprep.mubr.bf16.mxu0 %v3136_v4 }
 0x2a4   : > { %8989 = vmatmul.mubr.bf16.gmra.mrb[20].mxu0 %v3137_v46 }
 0x2a5   : > { %8992 = vmatprep.mubr.bf16.mxu0 %v3138_v47 }
 0x2ac   : > { %8993 = vmatmul.mubr.bf16.gmra.mrb[24].mxu0 %v3139_v30 }
 0x2ad   : > { %8996 = vmatprep.mubr.bf16.mxu0 %v10972_v28  ;;  %v3441_v28 = vld [vmem:[#allocation2 + $0x9a] sm:$0xff] }
 0x2ae   : > { %v3500_v42 = vpack.c.bf16 %v3441_v28, %v3440_v37 }
 0x2b4   : > { %8997 = vmatmul.mubr.bf16.gmra.mrb[28].mxu0 %v3141_v54 }
 0x2b5   : > { %9016 = vmatprep.mubr.bf16.mxu0 %v3496_v57 }
 0x2bc   : > { %9017 = vmatmul.mubr.bf16.vlgmr.msra.gmra.mrb[0].mxu0 %v3497_v15 }
 0x2bd   : > { %9020 = vmatprep.mubr.bf16.mxu0 %v3498_v20 }
 0x2c4   : > { %9021 = vmatmul.mubr.bf16.gmra.mrb[4].mxu0 %v3499_v38 }
 0x2c5   : > { %9024 = vmatprep.mubr.bf16.mxu0 %v3500_v42 }
 0x2cc   : > { %9025 = vmatmul.mubr.bf16.gmra.mrb[8].mxu0 %v3501_v55 }
 0x2cd   : > { %9028 = vmatprep.mubr.bf16.mxu0 %v3502_v1 }
 0x2d4   : > { %9029 = vmatmul.mubr.bf16.gmra.mrb[12].mxu0 %v3503_v11 }
 0x2d5   : > { %9032 = vmatprep.mubr.bf16.mxu0 %v3504_v22 }
 0x2dc   : > { %9033 = vmatmul.mubr.bf16.gmra.mrb[16].mxu0 %v3505_v7 }
 0x2dd   : > { %9036 = vmatprep.mubr.bf16.mxu0 %v3506_v56 }
 0x2e4   : > { %9037 = vmatmul.mubr.bf16.gmra.mrb[20].mxu0 %v3507_v16 }
 0x2e5   : > { %9040 = vmatprep.mubr.bf16.mxu0 %v3508_v17 }
 0x2ec   : > { %9041 = vmatmul.mubr.bf16.gmra.mrb[24].mxu0 %v3509_v27 }
 0x2ed   : > { %9044 = vmatprep.mubr.bf16.mxu0 %v10990_v39 }
 0x2f4   : > { %9045 = vmatmul.mubr.bf16.gmra.mrb[28].mxu0 %v3511_v49 }
 0x38f   : > { %v9018_v50 = vpop.f32.mrb[0].mxu0 }
 0x390   : > { %v3611_v58 = vpop.f32.mrb[1].mxu0  ;;  %v11009_v62 = vadd.f32 %v9018_v50, %v11000_v51 }
 0x391   : > { %v9019_v60 = vpop.f32.mrb[2].mxu0  ;;  %v11003_v4 = vadd.f32 %v11000_v51, %v3611_v58 }
 0x392   : > { %v3614_v63 = vpop.f32.mrb[3].mxu0  ;;  %v11014_v32 = vadd.f32 %v9019_v60, %v11000_v51 }
 0x393   : > { %v11006_v59 = vadd.f32 %v11000_v51, %v3614_v63 }
 0x395   : > { %v3873_v39 = vadd.f32 %v11006_v59, %v11003_v4 }
 0x397   : > { %v3874_v34 = vadd.f32 %v3873_v39, %v11009_v62  ;;  %v9022_v46 = vpop.f32.mrb[4].mxu0 }
 0x398   : > { %v3627_v47 = vpop.f32.mrb[5].mxu0  ;;  %v11026_v45 = vadd.f32 %v9022_v46, %v11000_v51 }
 0x399   : > { %v11018_v61 = vadd.f32 %v11000_v51, %v3627_v47  ;;  %v3875_v0 = vadd.f32 %v3874_v34, %v11014_v32  ;;  %v9023_v30 = vpop.f32.mrb[6].mxu0 }
 0x39a   : > { %v3630_v12 = vpop.f32.mrb[7].mxu0  ;;  %v11030_v57 = vadd.f32 %v9023_v30, %v11000_v51 }
 0x39b   : > { %v3876_v33 = vadd.f32 %v3875_v0, %v11018_v61  ;;  %v11023_v43 = vadd.f32 %v11000_v51, %v3630_v12 }
 0x39d   : > { %v3877_v54 = vadd.f32 %v3876_v33, %v11023_v43 }
 0x39f   : > { %v3878_v2 = vadd.f32 %v3877_v54, %v11026_v45  ;;  %v9026_v9 = vpop.f32.mrb[8].mxu0 }
 0x3a0   : > { %v3643_v13 = vpop.f32.mrb[9].mxu0  ;;  %v11042_v28 = vadd.f32 %v9026_v9, %v11000_v51 }
 0x3a1   : > { %v11034_v14 = vadd.f32 %v11000_v51, %v3643_v13  ;;  %v3879_v15 = vadd.f32 %v3878_v2, %v11030_v57  ;;  %v9027_v20 = vpop.f32.mrb[10].mxu0 }
 0x3a2   : > { %v3646_v25 = vpop.f32.mrb[11].mxu0  ;;  %v11046_v42 = vadd.f32 %v9027_v20, %v11000_v51 }
 0x3a3   : > { %v3880_v35 = vadd.f32 %v3879_v15, %v11034_v14  ;;  %v11039_v37 = vadd.f32 %v11000_v51, %v3646_v25 }
 0x3a5   : > { %v3881_v38 = vadd.f32 %v3880_v35, %v11039_v37 }
 0x3a7   : > { %v3882_v24 = vadd.f32 %v3881_v38, %v11042_v28  ;;  %v9030_v36 = vpop.f32.mrb[12].mxu0 }
 0x3a8   : > { %v3659_v41 = vpop.f32.mrb[13].mxu0  ;;  %v11058_v10 = vadd.f32 %v9030_v36, %v11000_v51 }
 0x3a9   : > { %v11050_v52 = vadd.f32 %v11000_v51, %v3659_v41  ;;  %v3883_v55 = vadd.f32 %v3882_v24, %v11046_v42  ;;  %v9031_v1 = vpop.f32.mrb[14].mxu0 }
 0x3aa   : > { %v3662_v3 = vpop.f32.mrb[15].mxu0  ;;  %v11062_v22 = vadd.f32 %v9031_v1, %v11000_v51 }
 0x3ab   : > { %v3884_v29 = vadd.f32 %v3883_v55, %v11050_v52  ;;  %v11055_v31 = vadd.f32 %v11000_v51, %v3662_v3 }
 0x3ad   : > { %v3885_v11 = vadd.f32 %v3884_v29, %v11055_v31  ;;  %v10157_v29 = vld [vmem:[#allocation10] sm:$0xff]  }
 0x3ae   : > { %9048 = vmatprep.subr.bf16.mxu1 %v10157_v29 }
 0x3af   : > { %v3886_v23 = vadd.f32 %v3885_v11, %v11058_v10  ;;  %v9034_v5 = vpop.f32.mrb[16].mxu0  ;;  %9049 = vmatpush3.bf16.msra.mxu1 %v10157_v29 }
 0x3b0   : > { %v3675_v40 = vpop.f32.mrb[17].mxu0  ;;  %v11074_v6 = vadd.f32 %v9034_v5, %v11000_v51 }
 0x3b1   : > { %v11066_v53 = vadd.f32 %v11000_v51, %v3675_v40  ;;  %v3887_v7 = vadd.f32 %v3886_v23, %v11062_v22  ;;  %v9035_v56 = vpop.f32.mrb[18].mxu0 }
 0x3b2   : > { %v3678_v8 = vpop.f32.mrb[19].mxu0  ;;  %v11078_v17 = vadd.f32 %v9035_v56, %v11000_v51 }
 0x3b3   : > { %v3888_v19 = vadd.f32 %v3887_v7, %v11066_v53  ;;  %v11071_v18 = vadd.f32 %v11000_v51, %v3678_v8  ;;  %v10158_v7 = vld [vmem:[#allocation10 + $0x8] sm:$0xff]  }
 0x3b4   : > { %9050 = vmatprep.subr.bf16.mxu1 %v10158_v7 }
 0x3b5   : > { %v3889_v16 = vadd.f32 %v3888_v19, %v11071_v18  ;;  %9051 = vmatpush3.bf16.msra.mxu1 %v10158_v7  ;;  %v10159_v19 = vld [vmem:[#allocation10 + $0x10] sm:$0xff]  }
 0x3b6   : > { %9052 = vmatprep.subr.bf16.mxu1 %v10159_v19 }
 0x3b7   : > { %v3890_v26 = vadd.f32 %v3889_v16, %v11074_v6  ;;  %v9038_v21 = vpop.f32.mrb[20].mxu0 }
 0x3b8   : > { %v3691_v27 = vpop.f32.mrb[21].mxu0  ;;  %v11090_v63 = vadd.f32 %v9038_v21, %v11000_v51  ;;  %v10160_v21 = vld [vmem:[#allocation10 + $0x18] sm:$0xff]  }
 0x3b9   : > { %v11082_v44 = vadd.f32 %v11000_v51, %v3691_v27  ;;  %v3891_v48 = vadd.f32 %v3890_v26, %v11078_v17  ;;  %v9039_v49 = vpop.f32.mrb[22].mxu0  ;;  %9053 = vmatpush3.bf16.msra.mxu1 %v10159_v19 }
 0x3ba   : > { %v3694_v50 = vpop.f32.mrb[23].mxu0  ;;  %v11094_v34 = vadd.f32 %v9039_v49, %v11000_v51  ;;  %9054 = vmatprep.subr.bf16.mxu1 %v10160_v21  ;;  %v10161_v49 = vld [vmem:[#allocation10 + $0x20] sm:$0xff]  }
 0x3bb   : > { %v3892_v58 = vadd.f32 %v3891_v48, %v11082_v44  ;;  %v11087_v60 = vadd.f32 %v11000_v51, %v3694_v50  ;;  %v10162_v50 = vld [vmem:[#allocation10 + $0x28] sm:$0xff]  }
 0x3bd   : > { %v3893_v39 = vadd.f32 %v3892_v58, %v11087_v60  ;;  %9055 = vmatpush3.bf16.msra.mxu1 %v10160_v21 }
 0x3be   : > { %9056 = vmatprep.subr.bf16.mxu1 %v10161_v49 }
 0x3bf   : > { %v3894_v46 = vadd.f32 %v3893_v39, %v11090_v63  ;;  %v9042_v47 = vpop.f32.mrb[24].mxu0  ;;  %v10163_v39 = vld [vmem:[#allocation10 + $0x30] sm:$0xff]  }
 0x3c0   : > { %v3707_v0 = vpop.f32.mrb[25].mxu0  ;;  %v11106_v13 = vadd.f32 %v9042_v47, %v11000_v51 }
 0x3c1   : > { %v11098_v30 = vadd.f32 %v11000_v51, %v3707_v0  ;;  %v3895_v12 = vadd.f32 %v3894_v46, %v11094_v34  ;;  %v9043_v33 = vpop.f32.mrb[26].mxu0  ;;  %9057 = vmatpush3.bf16.msra.mxu1 %v10161_v49 }
 0x3c2   : > { %v3710_v54 = vpop.f32.mrb[27].mxu0  ;;  %v3868_v20 = vadd.f32 %v9043_v33, %v11000_v51  ;;  %9058 = vmatprep.subr.bf16.mxu1 %v10162_v50 }
 0x3c3   : > { %v3896_v2 = vadd.f32 %v3895_v12, %v11098_v30  ;;  %v11103_v9 = vadd.f32 %v11000_v51, %v3710_v54 }
 0x3c5   : > { %v3897_v15 = vadd.f32 %v3896_v2, %v11103_v9  ;;  %9059 = vmatpush3.bf16.msra.mxu1 %v10162_v50 }
 0x3c6   : > { %9060 = vmatprep.subr.bf16.mxu1 %v10163_v39 }
 0x3c7   : > { %v3898_v25 = vadd.f32 %v3897_v15, %v11106_v13  ;;  %v9046_v35 = vpop.f32.mrb[28].mxu0 }
 0x3c8   : > { %v3723_v38 = vpop.f32.mrb[29].mxu0  ;;  %v3871_v11 = vadd.f32 %v9046_v35, %v11000_v51 }
 0x3c9   : > { %v3869_v24 = vadd.f32 %v11000_v51, %v3723_v38  ;;  %v3899_v36 = vadd.f32 %v3898_v25, %v3868_v20  ;;  %v9047_v41 = vpop.f32.mrb[30].mxu0  ;;  %9061 = vmatpush3.bf16.msra.mxu1 %v10163_v39 }
 0x3ca   : > { %v3726_v55 = vpop.f32.mrb[31].mxu0  ;;  %v3872_v5 = vadd.f32 %v9047_v41, %v11000_v51 }
 0x3cb   : > { %v3900_v1 = vadd.f32 %v3899_v36, %v3869_v24  ;;  %v3870_v3 = vadd.f32 %v11000_v51, %v3726_v55 }
 0x3cd   : > { %v3901_v23 = vadd.f32 %v3900_v1, %v3870_v3 }
 0x3cf   : > { %v3902_v40 = vadd.f32 %v3901_v23, %v3871_v11 }
 0x3d1   : > { %v3903_v56 = vadd.f32 %v3902_v40, %v3872_v5 }
 0x3d3   : > { %v3904_v8 = vrot.slane %v3903_v56, 4 }
 0x3d5   : > { %v3905_v16 = vadd.f32 %v3904_v8, %v3903_v56 }
 0x3d7   : > { %v3906_v26 = vrot.slane %v3905_v16, 2 }
 0x3d9   : > { %v3907_v27 = vadd.f32 %v3906_v26, %v3905_v16 }
 0x3db   : > { %v3908_v48 = vrot.slane %v3907_v27, 1 }
 0x3dd   : > { %v3909_v51 = vadd.f32 %v3908_v48, %v3907_v27 }
 0x3df   : > { %v3910_v58 = vmul.f32 0.00390625, %v3909_v51 }
 0x3e1   : > { %v11116_v46 = vsub.f32 %v11034_v14, %v3910_v58  ;;  %v11119_v47 = vsub.f32 %v11039_v37, %v3910_v58  ;;  %v11122_v0 = vsub.f32 %v11042_v28, %v3910_v58  ;;  %v11125_v12 = vsub.f32 %v11046_v42, %v3910_v58  ;;  %v10164_v37 = vld [vmem:[#allocation10 + $0x38] sm:$0xff]  }
 0x3e2   : > { %v11128_v33 = vsub.f32 %v11050_v52, %v3910_v58  ;;  %v11131_v54 = vsub.f32 %v11055_v31, %v3910_v58  ;;  %v11134_v2 = vsub.f32 %v11058_v10, %v3910_v58  ;;  %v11137_v14 = vsub.f32 %v11062_v22, %v3910_v58  ;;  %9062 = vmatprep.subr.bf16.mxu1 %v10164_v37 }
 0x3e3   : > { %v11140_v28 = vsub.f32 %v11066_v53, %v3910_v58  ;;  %v11143_v42 = vsub.f32 %v11071_v18, %v3910_v58  ;;  %v11146_v52 = vsub.f32 %v11074_v6, %v3910_v58  ;;  %v11149_v31 = vsub.f32 %v11078_v17, %v3910_v58  ;;  %9063 = vmatpush3.bf16.msra.mxu1 %v10164_v37 }
 0x3e4   : > { %v11152_v10 = vsub.f32 %v11082_v44, %v3910_v58  ;;  %v11155_v22 = vsub.f32 %v11087_v60, %v3910_v58  ;;  %v11158_v15 = vsub.f32 %v11090_v63, %v3910_v58  ;;  %v11161_v53 = vsub.f32 %v11094_v34, %v3910_v58 }
 0x3e5   : > { %v11164_v18 = vsub.f32 %v11098_v30, %v3910_v58  ;;  %v11167_v6 = vsub.f32 %v11103_v9, %v3910_v58  ;;  %v11170_v17 = vsub.f32 %v11106_v13, %v3910_v58  ;;  %v11172_v44 = vsub.f32 %v3868_v20, %v3910_v58  ;;  %v11182_v30 = vld [vmem:[#allocation10 + $0x40] sm:$0xff]  }
 0x3e6   : > { %v11174_v60 = vsub.f32 %v3869_v24, %v3910_v58  ;;  %v11176_v25 = vsub.f32 %v3870_v3, %v3910_v58  ;;  %v11178_v63 = vsub.f32 %v3871_v11, %v3910_v58  ;;  %v11180_v34 = vsub.f32 %v3872_v5, %v3910_v58  ;;  %9096 = vmatprep.subr.bf16.mxu1 %v11182_v30 }
 0x3e7   : > { %v11185_v9 = vsub.f32 %v11003_v4, %v3910_v58  ;;  %v11188_v13 = vsub.f32 %v11006_v59, %v3910_v58  ;;  %v11192_v20 = vsub.f32 %v11009_v62, %v3910_v58  ;;  %v11199_v24 = vsub.f32 %v11014_v32, %v3910_v58 }
 0x3e8   : > { %v11202_v4 = vsub.f32 %v11018_v61, %v3910_v58  ;;  %v11207_v41 = vsub.f32 %v11023_v43, %v3910_v58  ;;  %v11212_v1 = vsub.f32 %v11026_v45, %v3910_v58  ;;  %v11217_v61 = vsub.f32 %v11030_v57, %v3910_v58 }
 0x3e9   : > { %v3943_v35 = vmul.f32 %v11185_v9, %v11185_v9  ;;  %v3944_v38 = vmul.f32 %v11188_v13, %v11188_v13  ;;  %v3945_v59 = vmul.f32 %v11192_v20, %v11192_v20  ;;  %v3946_v62 = vmul.f32 %v11199_v24, %v11199_v24 }
 0x3ea   : > { %v3947_v32 = vmul.f32 %v11202_v4, %v11202_v4  ;;  %v3948_v29 = vmul.f32 %v11207_v41, %v11207_v41  ;;  %v3949_v43 = vmul.f32 %v11212_v1, %v11212_v1  ;;  %v3950_v5 = vmul.f32 %v11217_v61, %v11217_v61 }
 0x3eb   : > { %v3975_v36 = vadd.f32 %v3944_v38, %v3943_v35  ;;  %v3951_v40 = vmul.f32 %v11116_v46, %v11116_v46  ;;  %v3952_v57 = vmul.f32 %v11119_v47, %v11119_v47  ;;  %v3953_v8 = vmul.f32 %v11122_v0, %v11122_v0 }
 0x3ec   : > { %v3954_v16 = vmul.f32 %v11125_v12, %v11125_v12  ;;  %v3955_v21 = vmul.f32 %v11128_v33, %v11128_v33  ;;  %v3956_v48 = vmul.f32 %v11131_v54, %v11131_v54  ;;  %v3957_v50 = vmul.f32 %v11134_v2, %v11134_v2 }
 0x3ed   : > { %v3976_v55 = vadd.f32 %v3975_v36, %v3945_v59  ;;  %v3958_v58 = vmul.f32 %v11137_v14, %v11137_v14  ;;  %v3959_v37 = vmul.f32 %v11140_v28, %v11140_v28  ;;  %v3960_v38 = vmul.f32 %v11143_v42, %v11143_v42 }
 0x3ee   : > { %v3961_v36 = vmul.f32 %v11146_v52, %v11146_v52 }
 0x3ef   : > { %v3977_v3 = vadd.f32 %v3976_v55, %v3946_v62  ;;  %v3962_v55 = vmul.f32 %v11149_v31, %v11149_v31 }
 0x3f1   : > { %v3978_v11 = vadd.f32 %v3977_v3, %v3947_v32  ;;  %v3963_v3 = vmul.f32 %v11152_v10, %v11152_v10 }
 0x3f3   : > { %v3979_v23 = vadd.f32 %v3978_v11, %v3948_v29  ;;  %v3964_v11 = vmul.f32 %v11155_v22, %v11155_v22 }
 0x3f5   : > { %v3980_v45 = vadd.f32 %v3979_v23, %v3949_v43  ;;  %v3965_v23 = vmul.f32 %v11158_v15, %v11158_v15 }
 0x3f7   : > { %v3981_v7 = vadd.f32 %v3980_v45, %v3950_v5  ;;  %v3966_v45 = vmul.f32 %v11161_v53, %v11161_v53 }
 0x3f9   : > { %v3982_v56 = vadd.f32 %v3981_v7, %v3951_v40  ;;  %v3967_v7 = vmul.f32 %v11164_v18, %v11164_v18 }
 0x3fb   : > { %v3983_v19 = vadd.f32 %v3982_v56, %v3952_v57  ;;  %v3968_v56 = vmul.f32 %v11167_v6, %v11167_v6 }
 0x3fd   : > { %v3984_v26 = vadd.f32 %v3983_v19, %v3953_v8  ;;  %v3969_v19 = vmul.f32 %v11170_v17, %v11170_v17 }
 0x3ff   : > { %v3985_v27 = vadd.f32 %v3984_v26, %v3954_v16  ;;  %v3970_v26 = vmul.f32 %v11172_v44, %v11172_v44 }
 0x401   : > { %v3986_v49 = vadd.f32 %v3985_v27, %v3955_v21  ;;  %v3971_v27 = vmul.f32 %v11174_v60, %v11174_v60 }
 0x403   : > { %v3987_v51 = vadd.f32 %v3986_v49, %v3956_v48  ;;  %v3972_v49 = vmul.f32 %v11176_v25, %v11176_v25 }
 0x405   : > { %v3988_v39 = vadd.f32 %v3987_v51, %v3957_v50  ;;  %v3973_v51 = vmul.f32 %v11178_v63, %v11178_v63 }
 0x407   : > { %v3989_v35 = vadd.f32 %v3988_v39, %v3958_v58  ;;  %v3974_v39 = vmul.f32 %v11180_v34, %v11180_v34 }
 0x409   : > { %v3990_v59 = vadd.f32 %v3989_v35, %v3959_v37 }
 0x40b   : > { %v3991_v62 = vadd.f32 %v3990_v59, %v3960_v38 }
 0x40d   : > { %v3992_v32 = vadd.f32 %v3991_v62, %v3961_v36 }
 0x40f   : > { %v3993_v29 = vadd.f32 %v3992_v32, %v3962_v55 }
 0x411   : > { %v3994_v43 = vadd.f32 %v3993_v29, %v3963_v3 }
 0x413   : > { %v3995_v5 = vadd.f32 %v3994_v43, %v3964_v11 }
 0x415   : > { %v3996_v40 = vadd.f32 %v3995_v5, %v3965_v23 }
 0x417   : > { %v3997_v57 = vadd.f32 %v3996_v40, %v3966_v45 }
 0x419   : > { %v3998_v8 = vadd.f32 %v3997_v57, %v3967_v7 }
 0x41b   : > { %v3999_v16 = vadd.f32 %v3998_v8, %v3968_v56 }
 0x41d   : > { %v4000_v21 = vadd.f32 %v3999_v16, %v3969_v19 }
 0x41f   : > { %v4001_v48 = vadd.f32 %v4000_v21, %v3970_v26 }
 0x421   : > { %v4002_v50 = vadd.f32 %v4001_v48, %v3971_v27 }
 0x423   : > { %v4003_v58 = vadd.f32 %v4002_v50, %v3972_v49 }
 0x425   : > { %v4004_v37 = vadd.f32 %v4003_v58, %v3973_v51 }
 0x427   : > { %v4005_v35 = vadd.f32 %v4004_v37, %v3974_v39 }
 0x429   : > { %v4006_v38 = vrot.slane %v4005_v35, 4 }
 0x42b   : > { %v4007_v59 = vadd.f32 %v4006_v38, %v4005_v35 }
 0x42d   : > { %v4008_v36 = vrot.slane %v4007_v59, 2 }
 0x42f   : > { %v4009_v62 = vadd.f32 %v4008_v36, %v4007_v59 }
 0x431   : > { %v4010_v55 = vrot.slane %v4009_v62, 1 }
 0x433   : > { %v4011_v32 = vadd.f32 %v4010_v55, %v4009_v62 }
 0x435   : > { %v4012_v3 = vmul.f32 0.00390625, %v4011_v32 }
 0x437   : > { %v4013_v29 = vadd.f32 1e-05, %v4012_v3 }
 0x439   : > { %10229 = vrsqrt.f32 %v4013_v29 }
 0x443   : > { %v10230_v11 = vpop.eup %10229 }
 0x444   : > { %v4044_v43 = vmul.f32 %v10230_v11, %v11176_v25  ;;  %v11275_v23 = vmul.f32 %v10230_v11, %v11185_v9  ;;  %v11278_v5 = vmul.f32 %v10230_v11, %v11188_v13  ;;  %v4017_v45 = vmul.f32 %v10230_v11, %v11192_v20 }
 0x445   : > { %v4018_v40 = vmul.f32 %v10230_v11, %v11199_v24  ;;  %v11283_v7 = vmul.f32 %v10230_v11, %v11202_v4  ;;  %v11286_v57 = vmul.f32 %v10230_v11, %v11207_v41  ;;  %v11289_v56 = vmul.f32 %v10230_v11, %v11212_v1 }
 0x446   : > { %v11291_v25 = vmax.f32 %v4044_v43, 0.0  ;;  %v11294_v9 = vmul.f32 %v10230_v11, %v11217_v61  ;;  %v11297_v13 = vmul.f32 %v10230_v11, %v11116_v46  ;;  %v11300_v20 = vmul.f32 %v10230_v11, %v11119_v47 }
 0x447   : > { %v11303_v24 = vmul.f32 %v10230_v11, %v11122_v0  ;;  %v11306_v4 = vmul.f32 %v10230_v11, %v11125_v12  ;;  %v11309_v41 = vmul.f32 %v10230_v11, %v11128_v33  ;;  %v11312_v1 = vmul.f32 %v10230_v11, %v11131_v54 }
 0x448   : > { %v11315_v61 = vmul.f32 %v10230_v11, %v11134_v2  ;;  %v11318_v46 = vmul.f32 %v10230_v11, %v11137_v14  ;;  %v11321_v47 = vmul.f32 %v10230_v11, %v11140_v28  ;;  %v11324_v0 = vmul.f32 %v10230_v11, %v11143_v42  ;;  %4108 = vst [vmem:[#allocation2 + $0x171] sm:$0xff] %v11291_v25 }
 0x449   : > { %4114 = vst [vmem:[#allocation2 + $0x1a1] sm:$0xff] %v11291_v25  ;;  %v11329_v12 = vmul.f32 %v10230_v11, %v11146_v52  ;;  %v11332_v33 = vmul.f32 %v10230_v11, %v11149_v31  ;;  %v11335_v54 = vmul.f32 %v10230_v11, %v11152_v10  ;;  %v11338_v2 = vmul.f32 %v10230_v11, %v11155_v22 }
 0x44a   : > { %v11341_v14 = vmul.f32 %v10230_v11, %v11158_v15  ;;  %v11344_v28 = vmul.f32 %v10230_v11, %v11161_v53  ;;  %v11347_v42 = vmul.f32 %v10230_v11, %v11164_v18  ;;  %v11350_v52 = vmul.f32 %v10230_v11, %v11167_v6 }
 0x44b   : > { %v11353_v31 = vmul.f32 %v10230_v11, %v11170_v17  ;;  %v11356_v10 = vmul.f32 %v10230_v11, %v11172_v44  ;;  %v4043_v22 = vmul.f32 %v10230_v11, %v11174_v60  ;;  %v11360_v15 = vmul.f32 %v10230_v11, %v11178_v63 }
 0x44c   : > { %v11363_v53 = vmul.f32 %v10230_v11, %v11180_v34  ;;  %v4047_v18 = vmax.f32 %v11275_v23, 0.0  ;;  %v4048_v8 = vmax.f32 %v11278_v5, 0.0  ;;  %v4049_v6 = vmax.f32 %v4017_v45, 0.0 }
 0x44d   : > { %v4050_v19 = vmax.f32 %v4018_v40, 0.0  ;;  %v4051_v17 = vmax.f32 %v11283_v7, 0.0  ;;  %v4052_v16 = vmax.f32 %v11286_v57, 0.0  ;;  %v4053_v44 = vmax.f32 %v11289_v56, 0.0 }
 0x44e   : > { %v4054_v60 = vmax.f32 %v11294_v9, 0.0  ;;  %v4055_v63 = vmax.f32 %v11297_v13, 0.0  ;;  %v4056_v26 = vmax.f32 %v11300_v20, 0.0  ;;  %v4057_v34 = vmax.f32 %v11303_v24, 0.0  ;;  %4079 = vst [vmem:[#allocation2 + $0x19] sm:$0xff] %v4047_v18  ;;  %4080 = vst [vmem:[#allocation2 + $0x21] sm:$0xff] %v4048_v8 }
 0x44f   : > { %4081 = vst [vmem:[#allocation2 + $0x31] sm:$0xff] %v4049_v6  ;;  %4111 = vst [vmem:[#allocation2 + $0x1] sm:$0xff] %v4049_v6  ;;  %v4058_v21 = vmax.f32 %v11306_v4, 0.0  ;;  %v4059_v27 = vmax.f32 %v11309_v41, 0.0  ;;  %v4060_v48 = vmax.f32 %v11312_v1, 0.0  ;;  %v4061_v49 = vmax.f32 %v11315_v61, 0.0 }
 0x450   : > { %4082 = vst [vmem:[#allocation2 + $0x39] sm:$0xff] %v4050_v19  ;;  %4083 = vst [vmem:[#allocation2 + $0x49] sm:$0xff] %v4051_v17  ;;  %v4166_v50 = vld [vmem:[#allocation2 + $0x177] sm:$0x1]  ;;  %v4062_v51 = vmax.f32 %v11318_v46, 0.0  ;;  %v4063_v58 = vmax.f32 %v11321_v47, 0.0  ;;  %v11405_v7 = vpack.c.bf16 %v4050_v19, %v4049_v6  ;;  %v11411_v57 = vpack.c.bf16 %v4048_v8, %v4047_v18 }
 0x451   : > { %4084 = vst [vmem:[#allocation2 + $0x51] sm:$0xff] %v4052_v16  ;;  %4085 = vst [vmem:[#allocation2 + $0x61] sm:$0xff] %v4053_v44  ;;  %v4064_v39 = vmax.f32 %v11324_v0, 0.0  ;;  %v4065_v37 = vmax.f32 %v11329_v12, 0.0  ;;  %v4066_v35 = vmax.f32 %v11332_v33, 0.0  ;;  %v4067_v38 = vmax.f32 %v11335_v54, 0.0 }
 0x452   : > { %4112 = vst [vmem:[#allocation2 + $0x9] sm:$0xff] %v4050_v19  ;;  %4086 = vst [vmem:[#allocation2 + $0x69] sm:$0xff] %v4054_v60  ;;  %v4068_v59 = vmax.f32 %v11338_v2, 0.0  ;;  %v4069_v36 = vmax.f32 %v11341_v14, 0.0  ;;  %v4070_v62 = vmax.f32 %v11344_v28, 0.0  ;;  %v4071_v55 = vmax.f32 %v11347_v42, 0.0 }
 0x453   : > { %4087 = vst [vmem:[#allocation2 + $0x79] sm:$0xff] %v4055_v63  ;;  %4088 = vst [vmem:[#allocation2 + $0x81] sm:$0xff] %v4056_v26  ;;  %v4072_v32 = vmax.f32 %v11350_v52, 0.0  ;;  %v4073_v3 = vmax.f32 %v11353_v31, 0.0  ;;  %v4168_v29 = vld [vmem:[#allocation2 + $0x1a7] sm:$0x1]  ;;  %v11413_v56 = vpack.c.bf16 %v4052_v16, %v4051_v17  ;;  %v11415_v9 = vpack.c.bf16 %v4054_v60, %v4053_v44 }
 0x454   : > { %4089 = vst [vmem:[#allocation2 + $0x91] sm:$0xff] %v4057_v34  ;;  %4184 = vst [vmem:[#allocation2 + $0x179] sm:$0x1] %v4166_v50  ;;  %v4074_v11 = vmax.f32 %v11356_v10, 0.0  ;;  %v11401_v43 = vmax.f32 %v4043_v22, 0.0  ;;  %v4077_v45 = vmax.f32 %v11360_v15, 0.0  ;;  %v11423_v23 = vpack.c.bf16 %v4056_v26, %v4055_v63 }
 0x455   : > { %4090 = vst [vmem:[#allocation2 + $0x99] sm:$0xff] %v4058_v21  ;;  %4091 = vst [vmem:[#allocation2 + $0xa9] sm:$0xff] %v4059_v27  ;;  %v4078_v40 = vmax.f32 %v11363_v53, 0.0  ;;  %v4116_v41 = vld [vmem:[#allocation2 + $0x1a] sm:$0x1]  ;;  %v11427_v5 = vpack.c.bf16 %v4058_v21, %v4057_v34  ;;  %v11429_v1 = vpack.c.bf16 %v4060_v48, %v4059_v27  ;;  %v11431_v61 = vpack.c.bf16 %v4062_v51, %v4061_v49  ;;  %v4222_v15 = vld [vmem:[#allocation2 + $0x20] sm:$0xff] }
 0x456   : > { %4092 = vst [vmem:[#allocation2 + $0xb1] sm:$0xff] %v4060_v48  ;;  %4093 = vst [vmem:[#allocation2 + $0xc1] sm:$0xff] %v4061_v49  ;;  %v4115_v4 = vld [vmem:[#allocation2 + $0x2] sm:$0x1]  ;;  %v4117_v46 = vld [vmem:[#allocation2 + $0x32] sm:$0x1]  ;;  %v11433_v47 = vpack.c.bf16 %v4064_v39, %v4063_v58  ;;  %v11435_v0 = vpack.c.bf16 %v4066_v35, %v4065_v37  ;;  %v11437_v13 = vpack.c.bf16 %v4068_v59, %v4067_v38 }
 0x457   : > { %4094 = vst [vmem:[#allocation2 + $0xc9] sm:$0xff] %v4062_v51  ;;  %4095 = vst [vmem:[#allocation2 + $0xd9] sm:$0xff] %v4063_v58  ;;  %v11439_v20 = vpack.c.bf16 %v4070_v62, %v4069_v36  ;;  %v4118_v12 = vld [vmem:[#allocation2 + $0x4a] sm:$0x1]  ;;  %v11441_v33 = vpack.c.bf16 %v4072_v32, %v4071_v55  ;;  %v11443_v54 = vpack.c.bf16 %v4074_v11, %v4073_v3  ;;  %v4224_v60 = vld [vmem:[#allocation2 + $0x38] sm:$0xff] }
 0x458   : > { %4096 = vst [vmem:[#allocation2 + $0xe1] sm:$0xff] %v4064_v39  ;;  %4097 = vst [vmem:[#allocation2 + $0xf1] sm:$0xff] %v4065_v37  ;;  %v4119_v24 = vld [vmem:[#allocation2 + $0x62] sm:$0x1]  ;;  %v4667_v2 = vpack.c.bf16 %v11291_v25, %v11401_v43  ;;  %v10166_v63 = vld [vmem:[#allocation10 + $0x48] sm:$0xff]  }
 0x459   : > { %4098 = vst [vmem:[#allocation2 + $0xf9] sm:$0xff] %v4066_v35  ;;  %4099 = vst [vmem:[#allocation2 + $0x109] sm:$0xff] %v4067_v38  ;;  %v4220_v22 = vld [vmem:[#allocation2 + $0x8] sm:$0xff]  ;;  %v4152_v50 = vld [vmem:[#allocation2 + $0x27] sm:$0x1] }
 0x45a   : > { %4100 = vst [vmem:[#allocation2 + $0x111] sm:$0xff] %v4068_v59  ;;  %4101 = vst [vmem:[#allocation2 + $0x121] sm:$0xff] %v4069_v36  ;;  %v4120_v14 = vld [vmem:[#allocation2 + $0x7a] sm:$0x1]  ;;  %v10167_v27 = vld [vmem:[#allocation10 + $0x50] sm:$0xff]  }
 0x45b   : > { %4186 = vst [vmem:[#allocation2 + $0x1a9] sm:$0x1] %v4168_v29  ;;  %4102 = vst [vmem:[#allocation2 + $0x129] sm:$0xff] %v4070_v62  ;;  %v4121_v28 = vld [vmem:[#allocation2 + $0x92] sm:$0x1]  ;;  %v10168_v39 = vld [vmem:[#allocation10 + $0x58] sm:$0xff]  }
 0x45c   : > { %4103 = vst [vmem:[#allocation2 + $0x139] sm:$0xff] %v4071_v55  ;;  %4104 = vst [vmem:[#allocation2 + $0x141] sm:$0xff] %v4072_v32  ;;  %v4122_v42 = vld [vmem:[#allocation2 + $0xaa] sm:$0x1]  ;;  %v4151_v48 = vld [vmem:[#allocation2 + $0xf] sm:$0x1] }
 0x45d   : > { %4105 = vst [vmem:[#allocation2 + $0x151] sm:$0xff] %v4073_v3  ;;  %4106 = vst [vmem:[#allocation2 + $0x159] sm:$0xff] %v4074_v11  ;;  %v4123_v52 = vld [vmem:[#allocation2 + $0xc2] sm:$0x1]  ;;  %v4226_v58 = vld [vmem:[#allocation2 + $0x50] sm:$0xff] }
 0x45e   : > { %4107 = vst [vmem:[#allocation2 + $0x169] sm:$0xff] %v11401_v43  ;;  %4109 = vst [vmem:[#allocation2 + $0x181] sm:$0xff] %v4077_v45  ;;  %v4124_v31 = vld [vmem:[#allocation2 + $0xda] sm:$0x1]  ;;  %v4153_v37 = vld [vmem:[#allocation2 + $0x3f] sm:$0x1] }
 0x45f   : > { %4110 = vst [vmem:[#allocation2 + $0x189] sm:$0xff] %v4078_v40  ;;  %4113 = vst [vmem:[#allocation2 + $0x199] sm:$0xff] %v11401_v43  ;;  %v4125_v10 = vld [vmem:[#allocation2 + $0xf2] sm:$0x1]  ;;  %v4228_v38 = vld [vmem:[#allocation2 + $0x68] sm:$0xff] }
 0x460   : > { %4133 = vst [vmem:[#allocation2] sm:$0x1] %v4115_v4  ;;  %4134 = vst [vmem:[#allocation2 + $0x18] sm:$0x1] %v4116_v41  ;;  %v4126_v53 = vld [vmem:[#allocation2 + $0x10a] sm:$0x1] }
 0x461   : > { %4135 = vst [vmem:[#allocation2 + $0x30] sm:$0x1] %v4117_v46  ;;  %4136 = vst [vmem:[#allocation2 + $0x48] sm:$0x1] %v4118_v12  ;;  %v4127_v6 = vld [vmem:[#allocation2 + $0x122] sm:$0x1] }
 0x462   : > { %4137 = vst [vmem:[#allocation2 + $0x60] sm:$0x1] %v4119_v24  ;;  %4138 = vst [vmem:[#allocation2 + $0x78] sm:$0x1] %v4120_v14  ;;  %v4154_v59 = vld [vmem:[#allocation2 + $0x57] sm:$0x1] }
 0x463   : > { %4139 = vst [vmem:[#allocation2 + $0x90] sm:$0x1] %v4121_v28  ;;  %4140 = vst [vmem:[#allocation2 + $0xa8] sm:$0x1] %v4122_v42  ;;  %v4128_v44 = vld [vmem:[#allocation2 + $0x13a] sm:$0x1] }
 0x464   : > { %4141 = vst [vmem:[#allocation2 + $0xc0] sm:$0x1] %v4123_v52  ;;  %4142 = vst [vmem:[#allocation2 + $0xd8] sm:$0x1] %v4124_v31  ;;  %v4129_v34 = vld [vmem:[#allocation2 + $0x152] sm:$0x1] }
 0x465   : > { %4143 = vst [vmem:[#allocation2 + $0xf0] sm:$0x1] %v4125_v10  ;;  %4144 = vst [vmem:[#allocation2 + $0x108] sm:$0x1] %v4126_v53  ;;  %v4130_v21 = vld [vmem:[#allocation2 + $0x16a] sm:$0x1] }
 0x466   : > { %4145 = vst [vmem:[#allocation2 + $0x120] sm:$0x1] %v4127_v6  ;;  %4146 = vst [vmem:[#allocation2 + $0x138] sm:$0x1] %v4128_v44  ;;  %v4156_v62 = vld [vmem:[#allocation2 + $0x87] sm:$0x1] }
 0x467   : > { %v4219_v18 = vld [vmem:[#allocation2] sm:$0xff]  ;;  %v4221_v8 = vld [vmem:[#allocation2 + $0x18] sm:$0xff]  ;;  %4147 = vst [vmem:[#allocation2 + $0x150] sm:$0x1] %v4129_v34  ;;  %4148 = vst [vmem:[#allocation2 + $0x168] sm:$0x1] %v4130_v21 }
 0x468   : > { %v4283_v19 = vpack.c.bf16 %v4220_v22, %v4219_v18  ;;  %v11447_v17 = vpack.c.bf16 %v4222_v15, %v4221_v8  ;;  %v4223_v16 = vld [vmem:[#allocation2 + $0x30] sm:$0xff]  ;;  %v4225_v49 = vld [vmem:[#allocation2 + $0x48] sm:$0xff]  ;;  %4169 = vst [vmem:[#allocation2 + $0x11] sm:$0x1] %v4151_v48  ;;  %4170 = vst [vmem:[#allocation2 + $0x29] sm:$0x1] %v4152_v50 }
 0x469   : > { %v11449_v26 = vpack.c.bf16 %v4224_v60, %v4223_v16  ;;  %v4227_v51 = vld [vmem:[#allocation2 + $0x60] sm:$0xff]  ;;  %v11454_v35 = vpack.c.bf16 %v4226_v58, %v4225_v49  ;;  %4171 = vst [vmem:[#allocation2 + $0x41] sm:$0x1] %v4153_v37  ;;  %4172 = vst [vmem:[#allocation2 + $0x59] sm:$0x1] %v4154_v59  ;;  %v10169_v3 = vld [vmem:[#allocation10 + $0x60] sm:$0xff]  }
 0x46a   : > { %9064 = vmatprep.mubr.bf16.mxu1 %v4283_v19  ;;  %v11456_v36 = vpack.c.bf16 %v4228_v38, %v4227_v51  ;;  %4174 = vst [vmem:[#allocation2 + $0x89] sm:$0x1] %v4156_v62  ;;  %v4157_v55 = vld [vmem:[#allocation2 + $0x9f] sm:$0x1]  ;;  %v4158_v32 = vld [vmem:[#allocation2 + $0xb7] sm:$0x1] }
 0x46b   : > { %9065 = vmatmul.mubr.bf16.vlgmr.msra.gmra.mrb[0].mxu1 %v11447_v17  ;;  %4175 = vst [vmem:[#allocation2 + $0xa1] sm:$0x1] %v4157_v55  ;;  %4176 = vst [vmem:[#allocation2 + $0xb9] sm:$0x1] %v4158_v32  ;;  %v4159_v29 = vld [vmem:[#allocation2 + $0xcf] sm:$0x1] }
 0x46c   : > { %9068 = vmatprep.mubr.bf16.mxu1 %v11449_v26  ;;  %9097 = vmatpush3.bf16.msra.mxu1 %v11182_v30  ;;  %v4155_v30 = vld [vmem:[#allocation2 + $0x6f] sm:$0x1]  ;;  %v4229_v11 = vld [vmem:[#allocation2 + $0x78] sm:$0xff]  ;;  %4177 = vst [vmem:[#allocation2 + $0xd1] sm:$0x1] %v4159_v29  ;;  %v4231_v40 = vld [vmem:[#allocation2 + $0x90] sm:$0xff] }
 0x46d   : > { %9098 = vmatprep.subr.bf16.mxu1 %v10166_v63  ;;  %4173 = vst [vmem:[#allocation2 + $0x71] sm:$0x1] %v4155_v30  ;;  %v4160_v45 = vld [vmem:[#allocation2 + $0xe7] sm:$0x1]  ;;  %v4161_v4 = vld [vmem:[#allocation2 + $0xff] sm:$0x1] }
 0x46e   : > { %4178 = vst [vmem:[#allocation2 + $0xe9] sm:$0x1] %v4160_v45  ;;  %v4230_v41 = vld [vmem:[#allocation2 + $0x80] sm:$0xff]  ;;  %4179 = vst [vmem:[#allocation2 + $0x101] sm:$0x1] %v4161_v4  ;;  %v4232_v24 = vld [vmem:[#allocation2 + $0x98] sm:$0xff] }
 0x46f   : > { %v4162_v46 = vld [vmem:[#allocation2 + $0x117] sm:$0x1]  ;;  %v11460_v12 = vpack.c.bf16 %v4230_v41, %v4229_v11  ;;  %v10170_v14 = vld [vmem:[#allocation10 + $0x68] sm:$0xff]   ;;  %v4163_v28 = vld [vmem:[#allocation2 + $0x12f] sm:$0x1]  ;;  %v11462_v42 = vpack.c.bf16 %v4232_v24, %v4231_v40 }
 0x470   : > { %9099 = vmatpush3.bf16.msra.mxu1 %v10166_v63  ;;  %4180 = vst [vmem:[#allocation2 + $0x119] sm:$0x1] %v4162_v46  ;;  %4181 = vst [vmem:[#allocation2 + $0x131] sm:$0x1] %v4163_v28  ;;  %v4164_v52 = vld [vmem:[#allocation2 + $0x147] sm:$0x1] }
 0x471   : > { %9100 = vmatprep.subr.bf16.mxu1 %v10167_v27  ;;  %4182 = vst [vmem:[#allocation2 + $0x149] sm:$0x1] %v4164_v52  ;;  %v4165_v31 = vld [vmem:[#allocation2 + $0x15f] sm:$0x1]  ;;  %v10171_v10 = vld [vmem:[#allocation10 + $0x70] sm:$0xff]   ;;  %v4234_v18 = vld [vmem:[#allocation2 + $0xb0] sm:$0xff] }
 0x472   : > { %4183 = vst [vmem:[#allocation2 + $0x161] sm:$0x1] %v4165_v31  ;;  %v4233_v22 = vld [vmem:[#allocation2 + $0xa8] sm:$0xff]  ;;  %v4131_v15 = vld [vmem:[#allocation2 + $0x182] sm:$0x1]  ;;  %v10173_v44 = vld [vmem:[#allocation10 + $0x80] sm:$0xff]  }
 0x473   : > { %9069 = vmatmul.mubr.bf16.gmra.mrb[4].mxu1 %v11454_v35  ;;  %v4235_v53 = vld [vmem:[#allocation2 + $0xc0] sm:$0xff]  ;;  %4149 = vst [vmem:[#allocation2 + $0x180] sm:$0x1] %v4131_v15  ;;  %v11466_v8 = vpack.c.bf16 %v4234_v18, %v4233_v22  ;;  %v4236_v6 = vld [vmem:[#allocation2 + $0xc8] sm:$0xff]  ;;  %v4237_v60 = vld [vmem:[#allocation2 + $0xd8] sm:$0xff] }
 0x474   : > { %9072 = vmatprep.mubr.bf16.mxu1 %v11456_v36  ;;  %9101 = vmatpush3.bf16.msra.mxu1 %v10167_v27  ;;  %v10172_v19 = vld [vmem:[#allocation10 + $0x78] sm:$0xff]   ;;  %v11468_v16 = vpack.c.bf16 %v4236_v6, %v4235_v53  ;;  %v4238_v34 = vld [vmem:[#allocation2 + $0xe0] sm:$0xff]  ;;  %v4240_v27 = vld [vmem:[#allocation2 + $0xf8] sm:$0xff] }
 0x475   : > { %9102 = vmatprep.subr.bf16.mxu1 %v10168_v39  ;;  %v4239_v63 = vld [vmem:[#allocation2 + $0xf0] sm:$0xff]  ;;  %v11472_v21 = vpack.c.bf16 %v4238_v34, %v4237_v60  ;;  %v4167_v49 = vld [vmem:[#allocation2 + $0x18f] sm:$0x1]  ;;  %v4243_v51 = vld [vmem:[#allocation2 + $0x120] sm:$0xff] }
 0x476   : > { %v11474_v48 = vpack.c.bf16 %v4240_v27, %v4239_v63  ;;  %4185 = vst [vmem:[#allocation2 + $0x191] sm:$0x1] %v4167_v49  ;;  %v4241_v50 = vld [vmem:[#allocation2 + $0x108] sm:$0xff]  ;;  %v4242_v58 = vld [vmem:[#allocation2 + $0x110] sm:$0xff]  ;;  %v4245_v59 = vld [vmem:[#allocation2 + $0x138] sm:$0xff] }
 0x477   : > { %v4244_v37 = vld [vmem:[#allocation2 + $0x128] sm:$0xff]  ;;  %v4132_v30 = vld [vmem:[#allocation2 + $0x19a] sm:$0x1]  ;;  %v4247_v62 = vld [vmem:[#allocation2 + $0x150] sm:$0xff] }
 0x478   : > { %9103 = vmatpush3.bf16.msra.mxu1 %v10168_v39  ;;  %v11478_v39 = vpack.c.bf16 %v4242_v58, %v4241_v50  ;;  %v11480_v38 = vpack.c.bf16 %v4244_v37, %v4243_v51  ;;  %4150 = vst [vmem:[#allocation2 + $0x198] sm:$0x1] %v4132_v30  ;;  %v4246_v55 = vld [vmem:[#allocation2 + $0x140] sm:$0xff]  ;;  %v4249_v11 = vld [vmem:[#allocation2 + $0x168] sm:$0xff]  ;;  %v4250_v45 = vld [vmem:[#allocation2 + $0x170] sm:$0xff] }
 0x479   : > { %9104 = vmatprep.subr.bf16.mxu1 %v10169_v3  ;;  %v11484_v32 = vpack.c.bf16 %v4246_v55, %v4245_v59  ;;  %v11490_v40 = vpack.c.bf16 %v4250_v45, %v4249_v11  ;;  %v10174_v4 = vld [vmem:[#allocation10 + $0x88] sm:$0xff]   ;;  %v10175_v41 = vld [vmem:[#allocation10 + $0x90] sm:$0xff]   ;;  %v10176_v46 = vld [vmem:[#allocation10 + $0x98] sm:$0xff]  }
 0x47a   : > { %v10177_v24 = vld [vmem:[#allocation10 + $0xa0] sm:$0xff]   ;;  %v10182_v28 = vld [vmem:[#allocation10 + $0xc8] sm:$0xff]   ;;  %v4967_v25 = vld [vmem:[#allocation2 + $0x6a] sm:$0xff] }
 0x47b   : > { %9073 = vmatmul.mubr.bf16.gmra.mrb[8].mxu1 %v11460_v12  ;;  %v4964_v43 = vld [vmem:[#allocation2 + $0x4a] sm:$0xff]  ;;  %v4966_v52 = vld [vmem:[#allocation2 + $0x62] sm:$0xff]  ;;  %v10185_v22 = vld [vmem:[#allocation10 + $0xe0] sm:$0xff]  }
 0x47c   : > { %9076 = vmatprep.mubr.bf16.mxu1 %v11462_v42  ;;  %9105 = vmatpush3.bf16.msra.mxu1 %v10169_v3  ;;  %v4248_v3 = vld [vmem:[#allocation2 + $0x158] sm:$0xff]  ;;  %v10184_v31 = vld [vmem:[#allocation10 + $0xd8] sm:$0xff]   ;;  %v4969_v15 = vld [vmem:[#allocation2 + $0x82] sm:$0xff] }
 0x47d   : > { %9106 = vmatprep.subr.bf16.mxu1 %v10170_v14  ;;  %v11486_v29 = vpack.c.bf16 %v4248_v3, %v4247_v62  ;;  %v4971_v53 = vld [vmem:[#allocation2 + $0x9a] sm:$0xff]  ;;  %v10187_v63 = vld [vmem:[#allocation10 + $0xf0] sm:$0xff]   ;;  %v4973_v34 = vld [vmem:[#allocation2 + $0xb2] sm:$0xff] }
 0x47e   : > { %v4968_v18 = vld [vmem:[#allocation2 + $0x7a] sm:$0xff]  ;;  %v4975_v27 = vld [vmem:[#allocation2 + $0xca] sm:$0xff]  ;;  %v4974_v51 = vld [vmem:[#allocation2 + $0xc2] sm:$0xff] }
 0x47f   : > { %v11523_v6 = vpack.c.bf16 %v4969_v15, %v4968_v18  ;;  %v4972_v49 = vld [vmem:[#allocation2 + $0xaa] sm:$0xff]  ;;  %v11531_v37 = vpack.c.bf16 %v4975_v27, %v4974_v51  ;;  %v10189_v59 = vld [vmem:[#allocation10 + $0x100] sm:$0xff]   ;;  %v4977_v30 = vld [vmem:[#allocation2 + $0xe2] sm:$0xff] }
 0x480   : > { %9107 = vmatpush3.bf16.msra.mxu1 %v10170_v14  ;;  %v10178_v14 = vld [vmem:[#allocation10 + $0xa8] sm:$0xff]   ;;  %v11529_v50 = vpack.c.bf16 %v4973_v34, %v4972_v49  ;;  %v10188_v58 = vld [vmem:[#allocation10 + $0xf8] sm:$0xff]   ;;  %v4978_v11 = vld [vmem:[#allocation2 + $0xf2] sm:$0xff] }
 0x481   : > { %9108 = vmatprep.subr.bf16.mxu1 %v10171_v10  ;;  %v4979_v62 = vld [vmem:[#allocation2 + $0xfa] sm:$0xff]  ;;  %v5705_v15 = vld [vmem:[#allocation2 + $0x69] sm:$0xff]  ;;  %v10201_v34 = vld [vmem:[#allocation10 + $0x160] sm:$0xff]  }
 0x482   : > { %v4976_v55 = vld [vmem:[#allocation2 + $0xda] sm:$0xff]  ;;  %v11537_v45 = vpack.c.bf16 %v4979_v62, %v4978_v11  ;;  %v5708_v27 = vld [vmem:[#allocation2 + $0x91] sm:$0xff]  ;;  %v5710_v51 = vld [vmem:[#allocation2 + $0xa9] sm:$0xff] }
 0x483   : > { %9077 = vmatmul.mubr.bf16.gmra.mrb[12].mxu1 %v11466_v8  ;;  %v11535_v3 = vpack.c.bf16 %v4977_v30, %v4976_v55  ;;  %v5707_v18 = vld [vmem:[#allocation2 + $0x81] sm:$0xff]  ;;  %v5709_v49 = vld [vmem:[#allocation2 + $0x99] sm:$0xff] }
 0x484   : > { %9080 = vmatprep.mubr.bf16.mxu1 %v11468_v16  ;;  %9109 = vmatpush3.bf16.msra.mxu1 %v10171_v10  ;;  %v11519_v10 = vpack.c.bf16 %v4967_v25, %v4966_v52  ;;  %v10193_v25 = vld [vmem:[#allocation10 + $0x120] sm:$0xff]   ;;  %v5702_v52 = vld [vmem:[#allocation2 + $0x49] sm:$0xff]  ;;  %v10202_v30 = vld [vmem:[#allocation10 + $0x168] sm:$0xff]  }
 0x485   : > { %9110 = vmatprep.subr.bf16.mxu1 %v10172_v19  ;;  %v10203_v55 = vld [vmem:[#allocation10 + $0x170] sm:$0xff]  }
 0x486   : > { %v5712_v11 = vld [vmem:[#allocation2 + $0xc1] sm:$0xff] }
 0x488   : > { %9111 = vmatpush3.bf16.msra.mxu1 %v10172_v19  ;;  %v4970_v19 = vld [vmem:[#allocation2 + $0x92] sm:$0xff] }
 0x489   : > { %9144 = vmatprep.subr.bf16.mxu1 %v10173_v44  ;;  %v11525_v60 = vpack.c.bf16 %v4971_v53, %v4970_v19  ;;  %v5706_v53 = vld [vmem:[#allocation2 + $0x79] sm:$0xff] }
 0x48b   : > { %9081 = vmatmul.mubr.bf16.gmra.mrb[16].mxu1 %v11472_v21 }
 0x48c   : > { %9084 = vmatprep.mubr.bf16.mxu1 %v11474_v48 }
 0x493   : > { %9085 = vmatmul.mubr.bf16.gmra.mrb[20].mxu1 %v11478_v39 }
 0x494   : > { %9088 = vmatprep.mubr.bf16.mxu1 %v11480_v38 }
 0x49b   : > { %9089 = vmatmul.mubr.bf16.gmra.mrb[24].mxu1 %v11484_v32 }
 0x49c   : > { %9092 = vmatprep.mubr.bf16.mxu1 %v11486_v29 }
 0x4a3   : > { %9093 = vmatmul.mubr.bf16.gmra.mrb[28].mxu1 %v11490_v40 }
 0x4a4   : > { %9112 = vmatprep.mubr.bf16.mxu1 %v11405_v7 }
 0x4ab   : > { %9113 = vmatmul.mubr.bf16.vlgmr.msra.gmra.mrb[0].mxu1 %v11411_v57  ;;  %v10180_v57 = vld [vmem:[#allocation10 + $0xb8] sm:$0xff]  }
 0x4ac   : > { %9116 = vmatprep.mubr.bf16.mxu1 %v11405_v7  ;;  %9145 = vmatpush3.bf16.msra.mxu1 %v10173_v44  ;;  %v10179_v7 = vld [vmem:[#allocation10 + $0xb0] sm:$0xff]   ;;  %v10186_v44 = vld [vmem:[#allocation10 + $0xe8] sm:$0xff]  }
 0x4ad   : > { %9146 = vmatprep.subr.bf16.mxu1 %v10174_v4 }
 0x4b0   : > { %9147 = vmatpush3.bf16.msra.mxu1 %v10174_v4  ;;  %v4981_v4 = vld [vmem:[#allocation2 + $0x112] sm:$0xff] }
 0x4b1   : > { %9148 = vmatprep.subr.bf16.mxu1 %v10175_v41 }
 0x4b3   : > { %9117 = vmatmul.mubr.bf16.gmra.mrb[4].mxu1 %v11413_v56  ;;  %v10181_v56 = vld [vmem:[#allocation10 + $0xc0] sm:$0xff]  }
 0x4b4   : > { %9120 = vmatprep.mubr.bf16.mxu1 %v11415_v9  ;;  %9149 = vmatpush3.bf16.msra.mxu1 %v10175_v41  ;;  %v4959_v9 = vld [vmem:[#allocation2 + $0xa] sm:$0xff] }
 0x4b5   : > { %9150 = vmatprep.subr.bf16.mxu1 %v10176_v46  ;;  %v4983_v41 = vld [vmem:[#allocation2 + $0x12a] sm:$0xff] }
 0x4b8   : > { %9151 = vmatpush3.bf16.msra.mxu1 %v10176_v46  ;;  %v4980_v46 = vld [vmem:[#allocation2 + $0x10a] sm:$0xff] }
 0x4b9   : > { %9152 = vmatprep.subr.bf16.mxu1 %v10177_v24 }
 0x4bb   : > { %9121 = vmatmul.mubr.bf16.gmra.mrb[8].mxu1 %v11423_v23  ;;  %v4958_v23 = vld [vmem:[#allocation2 + $0x2] sm:$0xff] }
 0x4bc   : > { %9124 = vmatprep.mubr.bf16.mxu1 %v11427_v5  ;;  %9153 = vmatpush3.bf16.msra.mxu1 %v10177_v24  ;;  %v5022_v5 = vpack.c.bf16 %v4959_v9, %v4958_v23  ;;  %v11541_v24 = vpack.c.bf16 %v4981_v4, %v4980_v46  ;;  %v4984_v9 = vld [vmem:[#allocation2 + $0x13a] sm:$0xff]  ;;  %v5713_v4 = vld [vmem:[#allocation2 + $0xc9] sm:$0xff] }
 0x4bd   : > { %9154 = vmatprep.subr.bf16.mxu1 %v10178_v14  ;;  %v5715_v46 = vld [vmem:[#allocation2 + $0xe1] sm:$0xff] }
 0x4c0   : > { %9155 = vmatpush3.bf16.msra.mxu1 %v10178_v14  ;;  %v4982_v14 = vld [vmem:[#allocation2 + $0x122] sm:$0xff] }
 0x4c1   : > { %9156 = vmatprep.subr.bf16.mxu1 %v10179_v7 }
 0x4c3   : > { %9125 = vmatmul.mubr.bf16.gmra.mrb[12].mxu1 %v11429_v1  ;;  %v4961_v1 = vld [vmem:[#allocation2 + $0x22] sm:$0xff] }
 0x4c4   : > { %9128 = vmatprep.mubr.bf16.mxu1 %v11431_v61  ;;  %9157 = vmatpush3.bf16.msra.mxu1 %v10179_v7  ;;  %v4963_v61 = vld [vmem:[#allocation2 + $0x3a] sm:$0xff]  ;;  %v11543_v7 = vpack.c.bf16 %v4983_v41, %v4982_v14  ;;  %v11592_v14 = vpack.c.bf16 %v5713_v4, %v5712_v11  ;;  %v10217_v4 = vld [vmem:[#allocation10 + $0x1e0] sm:$0xff]  }
 0x4c5   : > { %9158 = vmatprep.subr.bf16.mxu1 %v10180_v57  ;;  %v5714_v41 = vld [vmem:[#allocation2 + $0xd9] sm:$0xff] }
 0x4c8   : > { %9159 = vmatpush3.bf16.msra.mxu1 %v10180_v57  ;;  %v4985_v57 = vld [vmem:[#allocation2 + $0x142] sm:$0xff] }
 0x4c9   : > { %9192 = vmatprep.subr.bf16.mxu1 %v10181_v56  ;;  %v11547_v23 = vpack.c.bf16 %v4985_v57, %v4984_v9  ;;  %v10204_v57 = vld [vmem:[#allocation10 + $0x178] sm:$0xff]   ;;  %v10205_v9 = vld [vmem:[#allocation10 + $0x180] sm:$0xff]  }
 0x4cb   : > { %9129 = vmatmul.mubr.bf16.gmra.mrb[16].mxu1 %v11433_v47  ;;  %v4960_v47 = vld [vmem:[#allocation2 + $0x1a] sm:$0xff] }
 0x4cc   : > { %9132 = vmatprep.mubr.bf16.mxu1 %v11435_v0  ;;  %v11511_v0 = vpack.c.bf16 %v4961_v1, %v4960_v47  ;;  %v4988_v47 = vld [vmem:[#allocation2 + $0x16a] sm:$0xff] }
 0x4d3   : > { %9133 = vmatmul.mubr.bf16.gmra.mrb[20].mxu1 %v11437_v13  ;;  %v4962_v13 = vld [vmem:[#allocation2 + $0x32] sm:$0xff] }
 0x4d4   : > { %9136 = vmatprep.mubr.bf16.mxu1 %v11439_v20  ;;  %v11513_v20 = vpack.c.bf16 %v4963_v61, %v4962_v13  ;;  %v4989_v61 = vld [vmem:[#allocation2 + $0x172] sm:$0xff] }
 0x4d5   : > { %v11553_v13 = vpack.c.bf16 %v4989_v61, %v4988_v47  ;;  %v5717_v61 = vld [vmem:[#allocation2 + $0xf9] sm:$0xff]  ;;  %v5718_v47 = vld [vmem:[#allocation2 + $0x109] sm:$0xff] }
 0x4db   : > { %9137 = vmatmul.mubr.bf16.gmra.mrb[24].mxu1 %v11441_v33  ;;  %v10183_v33 = vld [vmem:[#allocation10 + $0xd0] sm:$0xff]  }
 0x4dc   : > { %9140 = vmatprep.mubr.bf16.mxu1 %v11443_v54  ;;  %v4965_v54 = vld [vmem:[#allocation2 + $0x52] sm:$0xff] }
 0x4e3   : > { %9141 = vmatmul.mubr.bf16.gmra.mrb[28].mxu1 %v4667_v2  ;;  %v11517_v2 = vpack.c.bf16 %v4965_v54, %v4964_v43  ;;  %v10192_v54 = vld [vmem:[#allocation10 + $0x118] sm:$0xff]  }
 0x4e4   : > { %9160 = vmatprep.mubr.bf16.mxu1 %v5022_v5  ;;  %v4986_v5 = vld [vmem:[#allocation2 + $0x152] sm:$0xff] }
 0x4eb   : > { %9161 = vmatmul.mubr.bf16.vlgmr.msra.gmra.mrb[0].mxu1 %v11511_v0 }
 0x4ec   : > { %9164 = vmatprep.mubr.bf16.mxu1 %v11513_v20  ;;  %9193 = vmatpush3.bf16.msra.mxu1 %v10181_v56  ;;  %v4987_v56 = vld [vmem:[#allocation2 + $0x15a] sm:$0xff] }
 0x4ed   : > { %9194 = vmatprep.subr.bf16.mxu1 %v10182_v28  ;;  %v11549_v1 = vpack.c.bf16 %v4987_v56, %v4986_v5  ;;  %v11594_v56 = vpack.c.bf16 %v5715_v46, %v5714_v41  ;;  %v5716_v5 = vld [vmem:[#allocation2 + $0xf1] sm:$0xff]  ;;  %v6448_v41 = vld [vmem:[#allocation2 + $0xa8] sm:$0xff]  ;;  %v6450_v46 = vld [vmem:[#allocation2 + $0xc0] sm:$0xff] }
 0x4f0   : > { %9195 = vmatpush3.bf16.msra.mxu1 %v10182_v28  ;;  %v10190_v28 = vld [vmem:[#allocation10 + $0x108] sm:$0xff]  }
 0x4f1   : > { %9196 = vmatprep.subr.bf16.mxu1 %v10183_v33 }
 0x4f3   : > { %9165 = vmatmul.mubr.bf16.gmra.mrb[4].mxu1 %v11517_v2 }
 0x4f4   : > { %9168 = vmatprep.mubr.bf16.mxu1 %v11519_v10  ;;  %9197 = vmatpush3.bf16.msra.mxu1 %v10183_v33  ;;  %v10191_v33 = vld [vmem:[#allocation10 + $0x110] sm:$0xff]  }
 0x4f5   : > { %9198 = vmatprep.subr.bf16.mxu1 %v10184_v31 }
 0x4f8   : > { %9199 = vmatpush3.bf16.msra.mxu1 %v10184_v31 }
 0x4f9   : > { %9200 = vmatprep.subr.bf16.mxu1 %v10185_v22 }
 0x4fb   : > { %9169 = vmatmul.mubr.bf16.gmra.mrb[8].mxu1 %v11523_v6 }
 0x4fc   : > { %9172 = vmatprep.mubr.bf16.mxu1 %v11525_v60  ;;  %9201 = vmatpush3.bf16.msra.mxu1 %v10185_v22  ;;  %v5704_v22 = vld [vmem:[#allocation2 + $0x61] sm:$0xff] }
 0x4fd   : > { %9202 = vmatprep.subr.bf16.mxu1 %v10186_v44  ;;  %v11580_v19 = vpack.c.bf16 %v5705_v15, %v5704_v22  ;;  %v10207_v22 = vld [vmem:[#allocation10 + $0x190] sm:$0xff]   ;;  %v10208_v15 = vld [vmem:[#allocation10 + $0x198] sm:$0xff]  }
 0x500   : > { %9203 = vmatpush3.bf16.msra.mxu1 %v10186_v44  ;;  %v10200_v44 = vld [vmem:[#allocation10 + $0x158] sm:$0xff]  }
 0x501   : > { %9204 = vmatprep.subr.bf16.mxu1 %v10187_v63 }
 0x503   : > { %9173 = vmatmul.mubr.bf16.gmra.mrb[12].mxu1 %v11529_v50 }
 0x504   : > { %9176 = vmatprep.mubr.bf16.mxu1 %v11531_v37  ;;  %9205 = vmatpush3.bf16.msra.mxu1 %v10187_v63  ;;  %v11582_v63 = vpack.c.bf16 %v5707_v18, %v5706_v53  ;;  %v10209_v53 = vld [vmem:[#allocation10 + $0x1a0] sm:$0xff]  }
 0x505   : > { %9206 = vmatprep.subr.bf16.mxu1 %v10188_v58 }
 0x508   : > { %9207 = vmatpush3.bf16.msra.mxu1 %v10188_v58  ;;  %v5711_v58 = vld [vmem:[#allocation2 + $0xb1] sm:$0xff] }
 0x509   : > { %9240 = vmatprep.subr.bf16.mxu1 %v10189_v59  ;;  %v11588_v62 = vpack.c.bf16 %v5711_v58, %v5710_v51  ;;  %v6445_v51 = vld [vmem:[#allocation2 + $0x80] sm:$0xff] }
 0x50b   : > { %9177 = vmatmul.mubr.bf16.gmra.mrb[16].mxu1 %v11535_v3 }
 0x50c   : > { %9180 = vmatprep.mubr.bf16.mxu1 %v11537_v45 }
 0x513   : > { %9181 = vmatmul.mubr.bf16.gmra.mrb[20].mxu1 %v11541_v24 }
 0x514   : > { %9184 = vmatprep.mubr.bf16.mxu1 %v11543_v7 }
 0x51b   : > { %9185 = vmatmul.mubr.bf16.gmra.mrb[24].mxu1 %v11547_v23 }
 0x51c   : > { %9188 = vmatprep.mubr.bf16.mxu1 %v11549_v1 }
 0x523   : > { %9189 = vmatmul.mubr.bf16.gmra.mrb[28].mxu1 %v11553_v13 }
 0x524   : > { %9208 = vmatprep.mubr.bf16.mxu1 %v11447_v17  ;;  %v10194_v17 = vld [vmem:[#allocation10 + $0x128] sm:$0xff]  }
 0x52b   : > { %9209 = vmatmul.mubr.bf16.vlgmr.msra.gmra.mrb[0].mxu1 %v11449_v26  ;;  %v10195_v26 = vld [vmem:[#allocation10 + $0x130] sm:$0xff]  }
 0x52c   : > { %9212 = vmatprep.mubr.bf16.mxu1 %v11454_v35  ;;  %9241 = vmatpush3.bf16.msra.mxu1 %v10189_v59  ;;  %v10196_v35 = vld [vmem:[#allocation10 + $0x138] sm:$0xff]   ;;  %v11586_v59 = vpack.c.bf16 %v5709_v49, %v5708_v27 }
 0x52d   : > { %9242 = vmatprep.subr.bf16.mxu1 %v10190_v28  ;;  %v6446_v49 = vld [vmem:[#allocation2 + $0x90] sm:$0xff] }
 0x530   : > { %9243 = vmatpush3.bf16.msra.mxu1 %v10190_v28  ;;  %v5719_v28 = vld [vmem:[#allocation2 + $0x111] sm:$0xff] }
 0x531   : > { %9244 = vmatprep.subr.bf16.mxu1 %v10191_v33 }
 0x533   : > { %9213 = vmatmul.mubr.bf16.gmra.mrb[4].mxu1 %v11456_v36  ;;  %v10197_v36 = vld [vmem:[#allocation10 + $0x140] sm:$0xff]  }
 0x534   : > { %9216 = vmatprep.mubr.bf16.mxu1 %v11460_v12  ;;  %9245 = vmatpush3.bf16.msra.mxu1 %v10191_v33  ;;  %v5358_v12 = vld [vmem:[#allocation2 + $0x180] sm:$0xff]  ;;  %v11598_v33 = vpack.c.bf16 %v5717_v61, %v5716_v5  ;;  %v6451_v5 = vld [vmem:[#allocation2 + $0xc8] sm:$0xff] }
 0x535   : > { %9246 = vmatprep.subr.bf16.mxu1 %v10192_v54  ;;  %v10218_v61 = vld [vmem:[#allocation10 + $0x1e8] sm:$0xff]  }
 0x538   : > { %9247 = vmatpush3.bf16.msra.mxu1 %v10192_v54  ;;  %v11600_v54 = vpack.c.bf16 %v5719_v28, %v5718_v47  ;;  %v6508_v47 = vpack.c.bf16 %v6451_v5, %v6450_v46  ;;  %v10219_v28 = vld [vmem:[#allocation10 + $0x1f0] sm:$0xff]   ;;  %v7192_v5 = vld [vmem:[#allocation2 + $0xda] sm:$0xff] }
 0x539   : > { %9248 = vmatprep.subr.bf16.mxu1 %v10193_v25 }
 0x53b   : > { %9217 = vmatmul.mubr.bf16.gmra.mrb[8].mxu1 %v11462_v42  ;;  %v5698_v42 = vld [vmem:[#allocation2 + $0x19] sm:$0xff] }
 0x53c   : > { %9220 = vmatprep.mubr.bf16.mxu1 %v11466_v8  ;;  %9249 = vmatpush3.bf16.msra.mxu1 %v10193_v25  ;;  %v5699_v8 = vld [vmem:[#allocation2 + $0x21] sm:$0xff] }
 0x53d   : > { %9250 = vmatprep.subr.bf16.mxu1 %v10194_v17  ;;  %v5762_v43 = vpack.c.bf16 %v5699_v8, %v5698_v42  ;;  %v5720_v25 = vld [vmem:[#allocation2 + $0x121] sm:$0xff]  ;;  %v5724_v42 = vld [vmem:[#allocation2 + $0x151] sm:$0xff]  ;;  %v5725_v8 = vld [vmem:[#allocation2 + $0x159] sm:$0xff] }
 0x540   : > { %9251 = vmatpush3.bf16.msra.mxu1 %v10194_v17  ;;  %v5721_v17 = vld [vmem:[#allocation2 + $0x129] sm:$0xff] }
 0x541   : > { %9252 = vmatprep.subr.bf16.mxu1 %v10195_v26 }
 0x543   : > { %9221 = vmatmul.mubr.bf16.gmra.mrb[12].mxu1 %v11468_v16  ;;  %v5359_v16 = vld [vmem:[#allocation2 + $0x188] sm:$0xff] }
 0x544   : > { %9224 = vmatprep.mubr.bf16.mxu1 %v11472_v21  ;;  %9253 = vmatpush3.bf16.msra.mxu1 %v10195_v26  ;;  %v11571_v21 = vpack.c.bf16 %v5359_v16, %v5358_v12  ;;  %v5722_v26 = vld [vmem:[#allocation2 + $0x139] sm:$0xff]  ;;  %v5726_v16 = vld [vmem:[#allocation2 + $0x169] sm:$0xff] }
 0x545   : > { %9254 = vmatprep.subr.bf16.mxu1 %v10196_v35 }
 0x548   : > { %9255 = vmatpush3.bf16.msra.mxu1 %v10196_v35  ;;  %v5723_v35 = vld [vmem:[#allocation2 + $0x141] sm:$0xff] }
 0x549   : > { %9288 = vmatprep.subr.bf16.mxu1 %v10197_v36  ;;  %v11606_v12 = vpack.c.bf16 %v5723_v35, %v5722_v26  ;;  %v6453_v26 = vld [vmem:[#allocation2 + $0xe0] sm:$0xff] }
 0x54b   : > { %9225 = vmatmul.mubr.bf16.gmra.mrb[16].mxu1 %v11474_v48  ;;  %v5700_v48 = vld [vmem:[#allocation2 + $0x31] sm:$0xff] }
 0x54c   : > { %9228 = vmatprep.mubr.bf16.mxu1 %v11478_v39  ;;  %v5701_v39 = vld [vmem:[#allocation2 + $0x39] sm:$0xff] }
 0x54d   : > { %v11574_v31 = vpack.c.bf16 %v5701_v39, %v5700_v48  ;;  %v11610_v48 = vpack.c.bf16 %v5725_v8, %v5724_v42  ;;  %v6455_v42 = vld [vmem:[#allocation2 + $0xf8] sm:$0xff]  ;;  %v10220_v8 = vld [vmem:[#allocation10 + $0x1f8] sm:$0xff]  }
 0x553   : > { %9229 = vmatmul.mubr.bf16.gmra.mrb[20].mxu1 %v11480_v38  ;;  %v5703_v38 = vld [vmem:[#allocation2 + $0x51] sm:$0xff] }
 0x554   : > { %9232 = vmatprep.mubr.bf16.mxu1 %v11484_v32  ;;  %v10198_v32 = vld [vmem:[#allocation10 + $0x148] sm:$0xff]  }
 0x55b   : > { %9233 = vmatmul.mubr.bf16.gmra.mrb[24].mxu1 %v11486_v29  ;;  %v11576_v29 = vpack.c.bf16 %v5703_v38, %v5702_v52  ;;  %v5728_v52 = vld [vmem:[#allocation2 + $0x181] sm:$0xff]  ;;  %v5729_v38 = vld [vmem:[#allocation2 + $0x189] sm:$0xff] }
 0x55c   : > { %9236 = vmatprep.mubr.bf16.mxu1 %v11490_v40  ;;  %v10199_v40 = vld [vmem:[#allocation10 + $0x150] sm:$0xff]  }
 0x563   : > { %9237 = vmatmul.mubr.bf16.gmra.mrb[28].mxu1 %v11571_v21 }
 0x564   : > { %9256 = vmatprep.mubr.bf16.mxu1 %v5762_v43  ;;  %v5727_v43 = vld [vmem:[#allocation2 + $0x171] sm:$0xff] }
 0x565   : > { %v11612_v39 = vpack.c.bf16 %v5727_v43, %v5726_v16  ;;  %v10221_v43 = vld [vmem:[#allocation10 + $0x200] sm:$0xff]  }
 0x56b   : > { %9257 = vmatmul.mubr.bf16.vlgmr.msra.gmra.mrb[0].mxu1 %v11574_v31 }
 0x56c   : > { %9260 = vmatprep.mubr.bf16.mxu1 %v11576_v29  ;;  %9289 = vmatpush3.bf16.msra.mxu1 %v10197_v36  ;;  %v11604_v36 = vpack.c.bf16 %v5721_v17, %v5720_v25  ;;  %v6452_v25 = vld [vmem:[#allocation2 + $0xd8] sm:$0xff]  ;;  %v6454_v17 = vld [vmem:[#allocation2 + $0xf0] sm:$0xff] }
 0x56d   : > { %9290 = vmatprep.subr.bf16.mxu1 %v10198_v32  ;;  %v6509_v35 = vpack.c.bf16 %v6453_v26, %v6452_v25  ;;  %v6510_v16 = vpack.c.bf16 %v6455_v42, %v6454_v17  ;;  %v7197_v25 = vld [vmem:[#allocation2 + $0x112] sm:$0xff]  ;;  %v7199_v17 = vld [vmem:[#allocation2 + $0x12a] sm:$0xff]  ;;  %v7198_v42 = vld [vmem:[#allocation2 + $0x122] sm:$0xff] }
 0x56e   : > { %v7196_v26 = vld [vmem:[#allocation2 + $0x10a] sm:$0xff] }
 0x570   : > { %9291 = vmatpush3.bf16.msra.mxu1 %v10198_v32  ;;  %v11616_v32 = vpack.c.bf16 %v5729_v38, %v5728_v52  ;;  %v6456_v52 = vld [vmem:[#allocation2 + $0x108] sm:$0xff]  ;;  %v6458_v38 = vld [vmem:[#allocation2 + $0x120] sm:$0xff] }
 0x571   : > { %9292 = vmatprep.subr.bf16.mxu1 %v10199_v40 }
 0x573   : > { %9261 = vmatmul.mubr.bf16.gmra.mrb[4].mxu1 %v11580_v19 }
 0x574   : > { %9264 = vmatprep.mubr.bf16.mxu1 %v11582_v63  ;;  %9293 = vmatpush3.bf16.msra.mxu1 %v10199_v40  ;;  %v10206_v40 = vld [vmem:[#allocation10 + $0x188] sm:$0xff]  }
 0x575   : > { %9294 = vmatprep.subr.bf16.mxu1 %v10200_v44 }
 0x578   : > { %9295 = vmatpush3.bf16.msra.mxu1 %v10200_v44  ;;  %v6441_v44 = vld [vmem:[#allocation2 + $0x50] sm:$0xff] }
 0x579   : > { %9296 = vmatprep.subr.bf16.mxu1 %v10201_v34 }
 0x57b   : > { %9265 = vmatmul.mubr.bf16.gmra.mrb[8].mxu1 %v11586_v59 }
 0x57c   : > { %9268 = vmatprep.mubr.bf16.mxu1 %v11588_v62  ;;  %9297 = vmatpush3.bf16.msra.mxu1 %v10201_v34  ;;  %v6443_v34 = vld [vmem:[#allocation2 + $0x68] sm:$0xff] }
 0x57d   : > { %9298 = vmatprep.subr.bf16.mxu1 %v10202_v30 }
 0x580   : > { %9299 = vmatpush3.bf16.msra.mxu1 %v10202_v30  ;;  %v6447_v30 = vld [vmem:[#allocation2 + $0x98] sm:$0xff] }
 0x581   : > { %9300 = vmatprep.subr.bf16.mxu1 %v10203_v55  ;;  %v6506_v11 = vpack.c.bf16 %v6447_v30, %v6446_v49  ;;  %v7184_v49 = vld [vmem:[#allocation2 + $0x7a] sm:$0xff]  ;;  %v7189_v30 = vld [vmem:[#allocation2 + $0xb2] sm:$0xff] }
 0x583   : > { %9269 = vmatmul.mubr.bf16.gmra.mrb[12].mxu1 %v11592_v14 }
 0x584   : > { %9272 = vmatprep.mubr.bf16.mxu1 %v11594_v56  ;;  %9301 = vmatpush3.bf16.msra.mxu1 %v10203_v55  ;;  %v10216_v55 = vld [vmem:[#allocation10 + $0x1d8] sm:$0xff]  }
 0x585   : > { %9302 = vmatprep.subr.bf16.mxu1 %v10204_v57 }
 0x588   : > { %9303 = vmatpush3.bf16.msra.mxu1 %v10204_v57  ;;  %v6449_v57 = vld [vmem:[#allocation2 + $0xb0] sm:$0xff] }
 0x589   : > { %9336 = vmatprep.subr.bf16.mxu1 %v10205_v9 }
 0x58b   : > { %9273 = vmatmul.mubr.bf16.gmra.mrb[16].mxu1 %v11598_v33 }
 0x58c   : > { %9276 = vmatprep.mubr.bf16.mxu1 %v11600_v54 }
 0x593   : > { %9277 = vmatmul.mubr.bf16.gmra.mrb[20].mxu1 %v11604_v36 }
 0x594   : > { %9280 = vmatprep.mubr.bf16.mxu1 %v11606_v12 }
 0x59b   : > { %9281 = vmatmul.mubr.bf16.gmra.mrb[24].mxu1 %v11610_v48 }
 0x59c   : > { %9284 = vmatprep.mubr.bf16.mxu1 %v11612_v39 }
 0x5a3   : > { %9285 = vmatmul.mubr.bf16.gmra.mrb[28].mxu1 %v11616_v32 }
 0x5a4   : > { %9304 = vmatprep.mubr.bf16.mxu1 %v11511_v0  ;;  %v10210_v0 = vld [vmem:[#allocation10 + $0x1a8] sm:$0xff]  }
 0x5ab   : > { %9305 = vmatmul.mubr.bf16.vlgmr.msra.gmra.mrb[0].mxu1 %v11513_v20  ;;  %v10211_v20 = vld [vmem:[#allocation10 + $0x1b0] sm:$0xff]  }
 0x5ac   : > { %9308 = vmatprep.mubr.bf16.mxu1 %v11517_v2  ;;  %9337 = vmatpush3.bf16.msra.mxu1 %v10205_v9  ;;  %v10212_v2 = vld [vmem:[#allocation10 + $0x1b8] sm:$0xff]   ;;  %v6507_v9 = vpack.c.bf16 %v6449_v57, %v6448_v41  ;;  %v7190_v41 = vld [vmem:[#allocation2 + $0xc2] sm:$0xff] }
 0x5ad   : > { %9338 = vmatprep.subr.bf16.mxu1 %v10206_v40  ;;  %v7193_v57 = vld [vmem:[#allocation2 + $0xe2] sm:$0xff] }
 0x5b0   : > { %9339 = vmatpush3.bf16.msra.mxu1 %v10206_v40  ;;  %v6457_v40 = vld [vmem:[#allocation2 + $0x110] sm:$0xff] }
 0x5b1   : > { %9340 = vmatprep.subr.bf16.mxu1 %v10207_v22 }
 0x5b3   : > { %9309 = vmatmul.mubr.bf16.gmra.mrb[4].mxu1 %v11519_v10  ;;  %v10213_v10 = vld [vmem:[#allocation10 + $0x1c0] sm:$0xff]  }
 0x5b4   : > { %9312 = vmatprep.mubr.bf16.mxu1 %v11523_v6  ;;  %9341 = vmatpush3.bf16.msra.mxu1 %v10207_v22  ;;  %v6099_v6 = vld [vmem:[#allocation2 + $0x18a] sm:$0xff]  ;;  %v6511_v22 = vpack.c.bf16 %v6457_v40, %v6456_v52  ;;  %v7200_v52 = vld [vmem:[#allocation2 + $0x13a] sm:$0xff]  ;;  %v7202_v40 = vld [vmem:[#allocation2 + $0x152] sm:$0xff] }
 0x5b5   : > { %9342 = vmatprep.subr.bf16.mxu1 %v10208_v15 }
 0x5b8   : > { %9343 = vmatpush3.bf16.msra.mxu1 %v10208_v15  ;;  %v6459_v15 = vld [vmem:[#allocation2 + $0x128] sm:$0xff] }
 0x5b9   : > { %9344 = vmatprep.subr.bf16.mxu1 %v10209_v53 }
 0x5bb   : > { %9313 = vmatmul.mubr.bf16.gmra.mrb[8].mxu1 %v11525_v60  ;;  %v6438_v60 = vld [vmem:[#allocation2 + $0x30] sm:$0xff] }
 0x5bc   : > { %9316 = vmatprep.mubr.bf16.mxu1 %v11529_v50  ;;  %9345 = vmatpush3.bf16.msra.mxu1 %v10209_v53  ;;  %v6098_v50 = vld [vmem:[#allocation2 + $0x182] sm:$0xff]  ;;  %v6512_v53 = vpack.c.bf16 %v6459_v15, %v6458_v38  ;;  %v7205_v15 = vld [vmem:[#allocation2 + $0x172] sm:$0xff] }
 0x5bd   : > { %9346 = vmatprep.subr.bf16.mxu1 %v10210_v0 }
 0x5c0   : > { %9347 = vmatpush3.bf16.msra.mxu1 %v10210_v0  ;;  %v6460_v0 = vld [vmem:[#allocation2 + $0x138] sm:$0xff] }
 0x5c1   : > { %9348 = vmatprep.subr.bf16.mxu1 %v10211_v20 }
 0x5c3   : > { %9317 = vmatmul.mubr.bf16.gmra.mrb[12].mxu1 %v11531_v37  ;;  %v11634_v37 = vpack.c.bf16 %v6099_v6, %v6098_v50  ;;  %v6463_v6 = vld [vmem:[#allocation2 + $0x158] sm:$0xff]  ;;  %v6464_v50 = vld [vmem:[#allocation2 + $0x168] sm:$0xff] }
 0x5c4   : > { %9320 = vmatprep.mubr.bf16.mxu1 %v11535_v3  ;;  %9349 = vmatpush3.bf16.msra.mxu1 %v10211_v20  ;;  %v6439_v3 = vld [vmem:[#allocation2 + $0x38] sm:$0xff]  ;;  %v6462_v20 = vld [vmem:[#allocation2 + $0x150] sm:$0xff] }
 0x5c5   : > { %9350 = vmatprep.subr.bf16.mxu1 %v10212_v2  ;;  %v6502_v18 = vpack.c.bf16 %v6439_v3, %v6438_v60  ;;  %v6514_v60 = vpack.c.bf16 %v6463_v6, %v6462_v20  ;;  %v6465_v3 = vld [vmem:[#allocation2 + $0x170] sm:$0xff]  ;;  %v7209_v20 = vld [vmem:[#allocation2 + $0x1a2] sm:$0xff] }
 0x5c8   : > { %9351 = vmatpush3.bf16.msra.mxu1 %v10212_v2  ;;  %v6461_v2 = vld [vmem:[#allocation2 + $0x140] sm:$0xff] }
 0x5c9   : > { %9384 = vmatprep.subr.bf16.mxu1 %v10213_v10 }
 0x5cb   : > { %9321 = vmatmul.mubr.bf16.gmra.mrb[16].mxu1 %v11537_v45  ;;  %v6440_v45 = vld [vmem:[#allocation2 + $0x48] sm:$0xff] }
 0x5cc   : > { %9324 = vmatprep.mubr.bf16.mxu1 %v11541_v24  ;;  %v6442_v24 = vld [vmem:[#allocation2 + $0x60] sm:$0xff] }
 0x5cd   : > { %v6504_v27 = vpack.c.bf16 %v6443_v34, %v6442_v24  ;;  %v6469_v24 = vld [vmem:[#allocation2 + $0x1a0] sm:$0xff] }
 0x5ce   : > { %v10223_v34 = vld [vmem:[#allocation10 + $0x210] sm:$0xff]  }
 0x5d3   : > { %9325 = vmatmul.mubr.bf16.gmra.mrb[20].mxu1 %v11543_v7  ;;  %v6503_v7 = vpack.c.bf16 %v6441_v44, %v6440_v45  ;;  %v6468_v45 = vld [vmem:[#allocation2 + $0x198] sm:$0xff] }
 0x5d4   : > { %9328 = vmatprep.mubr.bf16.mxu1 %v11547_v23  ;;  %v10214_v23 = vld [vmem:[#allocation10 + $0x1c8] sm:$0xff]   ;;  %v6517_v44 = vpack.c.bf16 %v6469_v24, %v6468_v45 }
 0x5db   : > { %9329 = vmatmul.mubr.bf16.gmra.mrb[24].mxu1 %v11549_v1  ;;  %v10215_v1 = vld [vmem:[#allocation10 + $0x1d0] sm:$0xff]  }
 0x5dc   : > { %9332 = vmatprep.mubr.bf16.mxu1 %v11553_v13  ;;  %v6444_v13 = vld [vmem:[#allocation2 + $0x78] sm:$0xff] }
 0x5dd   : > { %v6505_v58 = vpack.c.bf16 %v6445_v51, %v6444_v13  ;;  %v7182_v13 = vld [vmem:[#allocation2 + $0x62] sm:$0xff]  ;;  %v7186_v51 = vld [vmem:[#allocation2 + $0x92] sm:$0xff] }
 0x5e3   : > { %9333 = vmatmul.mubr.bf16.gmra.mrb[28].mxu1 %v11634_v37 }
 0x5e4   : > { %9352 = vmatprep.mubr.bf16.mxu1 %v6502_v18  ;;  %v6515_v18 = vpack.c.bf16 %v6465_v3, %v6464_v50 }
 0x5eb   : > { %9353 = vmatmul.mubr.bf16.vlgmr.msra.gmra.mrb[0].mxu1 %v6503_v7  ;;  %v10222_v7 = vld [vmem:[#allocation10 + $0x208] sm:$0xff]  }
 0x5ec   : > { %9356 = vmatprep.mubr.bf16.mxu1 %v6504_v27  ;;  %9385 = vmatpush3.bf16.msra.mxu1 %v10213_v10  ;;  %v6513_v10 = vpack.c.bf16 %v6461_v2, %v6460_v0  ;;  %v7181_v27 = vld [vmem:[#allocation2 + $0x52] sm:$0xff]  ;;  %v7208_v2 = vld [vmem:[#allocation2 + $0x19a] sm:$0xff] }
 0x5ed   : > { %9386 = vmatprep.subr.bf16.mxu1 %v10214_v23 }
 0x5f0   : > { %9387 = vmatpush3.bf16.msra.mxu1 %v10214_v23  ;;  %v10224_v23 = vld [vmem:[#allocation10 + $0x218] sm:$0xff]  }
 0x5f1   : > { %9388 = vmatprep.subr.bf16.mxu1 %v10215_v1 }
 0x5f3   : > { %9357 = vmatmul.mubr.bf16.gmra.mrb[4].mxu1 %v6505_v58 }
 0x5f4   : > { %9360 = vmatprep.mubr.bf16.mxu1 %v6506_v11  ;;  %9389 = vmatpush3.bf16.msra.mxu1 %v10215_v1  ;;  %v7180_v1 = vld [vmem:[#allocation2 + $0x4a] sm:$0xff] }
 0x5f5   : > { %9390 = vmatprep.subr.bf16.mxu1 %v10216_v55  ;;  %v7188_v11 = vld [vmem:[#allocation2 + $0xaa] sm:$0xff] }
 0x5f8   : > { %9391 = vmatpush3.bf16.msra.mxu1 %v10216_v55  ;;  %v7191_v55 = vld [vmem:[#allocation2 + $0xca] sm:$0xff] }
 0x5f9   : > { %9392 = vmatprep.subr.bf16.mxu1 %v10217_v4  ;;  %v7248_v46 = vpack.c.bf16 %v7191_v55, %v7190_v41 }
 0x5fb   : > { %9361 = vmatmul.mubr.bf16.gmra.mrb[8].mxu1 %v6507_v9  ;;  %v7195_v9 = vld [vmem:[#allocation2 + $0xfa] sm:$0xff] }
 0x5fc   : > { %9364 = vmatprep.mubr.bf16.mxu1 %v6508_v47  ;;  %9393 = vmatpush3.bf16.msra.mxu1 %v10217_v4  ;;  %v7247_v4 = vpack.c.bf16 %v7189_v30, %v7188_v11  ;;  %v7194_v47 = vld [vmem:[#allocation2 + $0xf2] sm:$0xff] }
 0x5fd   : > { %9394 = vmatprep.subr.bf16.mxu1 %v10218_v61 }
 0x600   : > { %9395 = vmatpush3.bf16.msra.mxu1 %v10218_v61  ;;  %v7249_v61 = vpack.c.bf16 %v7193_v57, %v7192_v5 }
 0x601   : > { %9396 = vmatprep.subr.bf16.mxu1 %v10219_v28 }
 0x603   : > { %9365 = vmatmul.mubr.bf16.gmra.mrb[12].mxu1 %v6509_v35  ;;  %v7251_v35 = vpack.c.bf16 %v7197_v25, %v7196_v26 }
 0x604   : > { %9368 = vmatprep.mubr.bf16.mxu1 %v6510_v16  ;;  %9397 = vmatpush3.bf16.msra.mxu1 %v10219_v28  ;;  %v7250_v28 = vpack.c.bf16 %v7195_v9, %v7194_v47  ;;  %v7201_v16 = vld [vmem:[#allocation2 + $0x142] sm:$0xff] }
 0x605   : > { %9398 = vmatprep.subr.bf16.mxu1 %v10220_v8  ;;  %v7253_v38 = vpack.c.bf16 %v7201_v16, %v7200_v52 }
 0x608   : > { %9399 = vmatpush3.bf16.msra.mxu1 %v10220_v8  ;;  %v7252_v8 = vpack.c.bf16 %v7199_v17, %v7198_v42 }
 0x609   : > { %9432 = vmatprep.subr.bf16.mxu1 %v10221_v43 }
 0x60b   : > { %9369 = vmatmul.mubr.bf16.gmra.mrb[16].mxu1 %v6511_v22 }
 0x60c   : > { %9372 = vmatprep.mubr.bf16.mxu1 %v6512_v53  ;;  %v7204_v53 = vld [vmem:[#allocation2 + $0x16a] sm:$0xff] }
 0x60d   : > { %v7255_v0 = vpack.c.bf16 %v7205_v15, %v7204_v53 }
 0x613   : > { %9373 = vmatmul.mubr.bf16.gmra.mrb[20].mxu1 %v6513_v10  ;;  %v7257_v10 = vpack.c.bf16 %v7209_v20, %v7208_v2 }
 0x614   : > { %9376 = vmatprep.mubr.bf16.mxu1 %v6514_v60  ;;  %v11654_v60 = vld [vmem:[#allocation12] ss:$0 sm:$0xff] }
 0x61b   : > { %9377 = vmatmul.mubr.bf16.gmra.mrb[24].mxu1 %v6515_v18 }
 0x61c   : > { %9380 = vmatprep.mubr.bf16.mxu1 %v11571_v21  ;;  %v10225_v21 = vld [vmem:[#allocation10 + $0x220] sm:$0xff]  }
 0x623   : > { %9381 = vmatmul.mubr.bf16.gmra.mrb[28].mxu1 %v6517_v44 }
 0x624   : > { %9400 = vmatprep.mubr.bf16.mxu1 %v11574_v31  ;;  %v10226_v31 = vld [vmem:[#allocation10 + $0x228] sm:$0xff]  }
 0x62b   : > { %9401 = vmatmul.mubr.bf16.vlgmr.msra.gmra.mrb[0].mxu1 %v11576_v29  ;;  %v10227_v29 = vld [vmem:[#allocation10 + $0x230] sm:$0xff]  }
 0x62c   : > { %9404 = vmatprep.mubr.bf16.mxu1 %v11580_v19  ;;  %9433 = vmatpush3.bf16.msra.mxu1 %v10221_v43  ;;  %v10228_v19 = vld [vmem:[#allocation10 + $0x238] sm:$0xff]   ;;  %v7203_v43 = vld [vmem:[#allocation2 + $0x15a] sm:$0xff] }
 0x62d   : > { %9434 = vmatprep.subr.bf16.mxu1 %v10222_v7  ;;  %v7254_v22 = vpack.c.bf16 %v7203_v43, %v7202_v40 }
 0x630   : > { %9435 = vmatpush3.bf16.msra.mxu1 %v10222_v7 }
 0x631   : > { %9436 = vmatprep.subr.bf16.mxu1 %v10223_v34 }
 0x633   : > { %9405 = vmatmul.mubr.bf16.gmra.mrb[4].mxu1 %v11582_v63  ;;  %v6838_v63 = vld [vmem:[#allocation2 + $0x199] sm:$0xff] }
 0x634   : > { %9408 = vmatprep.mubr.bf16.mxu1 %v11586_v59  ;;  %9437 = vmatpush3.bf16.msra.mxu1 %v10223_v34  ;;  %v6839_v59 = vld [vmem:[#allocation2 + $0x1a1] sm:$0xff] }
 0x635   : > { %9438 = vmatprep.subr.bf16.mxu1 %v10224_v23 }
 0x638   : > { %9439 = vmatpush3.bf16.msra.mxu1 %v10224_v23 }
 0x639   : > { %9440 = vmatprep.subr.bf16.mxu1 %v10225_v21 }
 0x63b   : > { %9409 = vmatmul.mubr.bf16.gmra.mrb[8].mxu1 %v11588_v62  ;;  %v7179_v62 = vld [vmem:[#allocation2 + $0x3a] sm:$0xff] }
 0x63c   : > { %9412 = vmatprep.mubr.bf16.mxu1 %v11592_v14  ;;  %9441 = vmatpush3.bf16.msra.mxu1 %v10225_v21  ;;  %v6887_v14 = vpack.c.bf16 %v6839_v59, %v6838_v63 }
 0x63d   : > { %9442 = vmatprep.subr.bf16.mxu1 %v10226_v31 }
 0x640   : > { %9443 = vmatpush3.bf16.msra.mxu1 %v10226_v31 }
 0x641   : > { %9444 = vmatprep.subr.bf16.mxu1 %v10227_v29 }
 0x643   : > { %9413 = vmatmul.mubr.bf16.gmra.mrb[12].mxu1 %v11594_v56  ;;  %v7178_v56 = vld [vmem:[#allocation2 + $0x32] sm:$0xff] }
 0x644   : > { %9416 = vmatprep.mubr.bf16.mxu1 %v11598_v33  ;;  %9445 = vmatpush3.bf16.msra.mxu1 %v10227_v29  ;;  %v7242_v33 = vpack.c.bf16 %v7179_v62, %v7178_v56 }
 0x645   : > { %9446 = vmatprep.subr.bf16.mxu1 %v10228_v19 }
 0x648   : > { %9447 = vmatpush3.bf16.msra.mxu1 %v10228_v19 }
 0x64b   : > { %9417 = vmatmul.mubr.bf16.gmra.mrb[16].mxu1 %v11600_v54  ;;  %v7183_v54 = vld [vmem:[#allocation2 + $0x6a] sm:$0xff] }
 0x64c   : > { %9420 = vmatprep.mubr.bf16.mxu1 %v11604_v36  ;;  %v7243_v36 = vpack.c.bf16 %v7181_v27, %v7180_v1 }
 0x653   : > { %9421 = vmatmul.mubr.bf16.gmra.mrb[20].mxu1 %v11606_v12  ;;  %v7244_v12 = vpack.c.bf16 %v7183_v54, %v7182_v13 }
 0x654   : > { %9424 = vmatprep.mubr.bf16.mxu1 %v11610_v48  ;;  %v7185_v48 = vld [vmem:[#allocation2 + $0x82] sm:$0xff] }
 0x65b   : > { %9425 = vmatmul.mubr.bf16.gmra.mrb[24].mxu1 %v11612_v39  ;;  %v7187_v39 = vld [vmem:[#allocation2 + $0x9a] sm:$0xff] }
 0x65c   : > { %9428 = vmatprep.mubr.bf16.mxu1 %v11616_v32  ;;  %v7245_v32 = vpack.c.bf16 %v7185_v48, %v7184_v49  ;;  %v7246_v58 = vpack.c.bf16 %v7187_v39, %v7186_v51 }
 0x663   : > { %9429 = vmatmul.mubr.bf16.gmra.mrb[28].mxu1 %v6887_v14 }
 0x664   : > { %9448 = vmatprep.mubr.bf16.mxu1 %v7242_v33 }
 0x66b   : > { %9449 = vmatmul.mubr.bf16.vlgmr.msra.gmra.mrb[0].mxu1 %v7243_v36 }
 0x66c   : > { %9452 = vmatprep.mubr.bf16.mxu1 %v7244_v12 }
 0x673   : > { %9453 = vmatmul.mubr.bf16.gmra.mrb[4].mxu1 %v7245_v32 }
 0x674   : > { %9456 = vmatprep.mubr.bf16.mxu1 %v7246_v58 }
 0x67b   : > { %9457 = vmatmul.mubr.bf16.gmra.mrb[8].mxu1 %v7247_v4 }
 0x67c   : > { %9460 = vmatprep.mubr.bf16.mxu1 %v7248_v46 }
 0x683   : > { %9461 = vmatmul.mubr.bf16.gmra.mrb[12].mxu1 %v7249_v61 }
 0x684   : > { %9464 = vmatprep.mubr.bf16.mxu1 %v7250_v28 }
 0x68b   : > { %9465 = vmatmul.mubr.bf16.gmra.mrb[16].mxu1 %v7251_v35 }
 0x68c   : > { %9468 = vmatprep.mubr.bf16.mxu1 %v7252_v8 }
 0x693   : > { %9469 = vmatmul.mubr.bf16.gmra.mrb[20].mxu1 %v7253_v38 }
 0x694   : > { %9472 = vmatprep.mubr.bf16.mxu1 %v7254_v22 }
 0x69b   : > { %9473 = vmatmul.mubr.bf16.gmra.mrb[24].mxu1 %v7255_v0 }
 0x69c   : > { %9476 = vmatprep.mubr.bf16.mxu1 %v11634_v37 }
 0x6a3   : > { %9477 = vmatmul.mubr.bf16.gmra.mrb[28].mxu1 %v7257_v10 }
 0x73e   : > { %v9450_v6 = vpop.f32.mrb[0].mxu1 }
 0x73f   : > { %v7357_v50 = vpop.f32.mrb[1].mxu1  ;;  %v11663_v44 = vadd.f32 %v9450_v6, %v11654_v60 }
 0x740   : > { %v9451_v3 = vpop.f32.mrb[2].mxu1  ;;  %v11657_v45 = vadd.f32 %v11654_v60, %v7357_v50 }
 0x741   : > { %v7360_v18 = vpop.f32.mrb[3].mxu1  ;;  %v11668_v7 = vadd.f32 %v9451_v3, %v11654_v60 }
 0x742   : > { %v11660_v24 = vadd.f32 %v11654_v60, %v7360_v18 }
 0x744   : > { %v7619_v37 = vadd.f32 %v11660_v24, %v11657_v45 }
 0x746   : > { %v7620_v34 = vadd.f32 %v7619_v37, %v11663_v44  ;;  %v9454_v23 = vpop.f32.mrb[4].mxu1 }
 0x747   : > { %v7373_v21 = vpop.f32.mrb[5].mxu1  ;;  %v11680_v14 = vadd.f32 %v9454_v23, %v11654_v60 }
 0x748   : > { %v11672_v31 = vadd.f32 %v11654_v60, %v7373_v21  ;;  %v7621_v29 = vadd.f32 %v7620_v34, %v11668_v7  ;;  %v9455_v19 = vpop.f32.mrb[6].mxu1 }
 0x749   : > { %v7376_v63 = vpop.f32.mrb[7].mxu1  ;;  %v11684_v33 = vadd.f32 %v9455_v19, %v11654_v60 }
 0x74a   : > { %v7622_v59 = vadd.f32 %v7621_v29, %v11672_v31  ;;  %v11677_v62 = vadd.f32 %v11654_v60, %v7376_v63 }
 0x74c   : > { %v7623_v56 = vadd.f32 %v7622_v59, %v11677_v62 }
 0x74e   : > { %v7624_v27 = vadd.f32 %v7623_v56, %v11680_v14  ;;  %v9458_v54 = vpop.f32.mrb[8].mxu1 }
 0x74f   : > { %v7389_v1 = vpop.f32.mrb[9].mxu1  ;;  %v11696_v32 = vadd.f32 %v9458_v54, %v11654_v60 }
 0x750   : > { %v11688_v36 = vadd.f32 %v11654_v60, %v7389_v1  ;;  %v7625_v13 = vadd.f32 %v7624_v27, %v11684_v33  ;;  %v9459_v12 = vpop.f32.mrb[10].mxu1 }
 0x751   : > { %v7392_v48 = vpop.f32.mrb[11].mxu1  ;;  %v11700_v58 = vadd.f32 %v9459_v12, %v11654_v60 }
 0x752   : > { %v7626_v39 = vadd.f32 %v7625_v13, %v11688_v36  ;;  %v11693_v49 = vadd.f32 %v11654_v60, %v7392_v48 }
 0x754   : > { %v7627_v51 = vadd.f32 %v7626_v39, %v11693_v49 }
 0x756   : > { %v7628_v30 = vadd.f32 %v7627_v51, %v11696_v32  ;;  %v9462_v55 = vpop.f32.mrb[12].mxu1 }
 0x757   : > { %v7405_v11 = vpop.f32.mrb[13].mxu1  ;;  %v11712_v61 = vadd.f32 %v9462_v55, %v11654_v60 }
 0x758   : > { %v11704_v4 = vadd.f32 %v11654_v60, %v7405_v11  ;;  %v7629_v41 = vadd.f32 %v7628_v30, %v11700_v58  ;;  %v9463_v46 = vpop.f32.mrb[14].mxu1 }
 0x759   : > { %v7408_v57 = vpop.f32.mrb[15].mxu1  ;;  %v11716_v28 = vadd.f32 %v9463_v46, %v11654_v60 }
 0x75a   : > { %v7630_v9 = vadd.f32 %v7629_v41, %v11704_v4  ;;  %v11709_v5 = vadd.f32 %v11654_v60, %v7408_v57 }
 0x75c   : > { %v7631_v47 = vadd.f32 %v7630_v9, %v11709_v5 }
 0x75e   : > { %v7632_v25 = vadd.f32 %v7631_v47, %v11712_v61  ;;  %v9466_v17 = vpop.f32.mrb[16].mxu1 }
 0x75f   : > { %v7421_v26 = vpop.f32.mrb[17].mxu1  ;;  %v7605_v38 = vadd.f32 %v9466_v17, %v11654_v60 }
 0x760   : > { %v7603_v35 = vadd.f32 %v11654_v60, %v7421_v26  ;;  %v7633_v42 = vadd.f32 %v7632_v25, %v11716_v28  ;;  %v9467_v8 = vpop.f32.mrb[18].mxu1 }
 0x761   : > { %v7424_v16 = vpop.f32.mrb[19].mxu1  ;;  %v7606_v22 = vadd.f32 %v9467_v8, %v11654_v60 }
 0x762   : > { %v7634_v43 = vadd.f32 %v7633_v42, %v7603_v35  ;;  %v7604_v52 = vadd.f32 %v11654_v60, %v7424_v16 }
 0x764   : > { %v7635_v40 = vadd.f32 %v7634_v43, %v7604_v52 }
 0x766   : > { %v7636_v15 = vadd.f32 %v7635_v40, %v7605_v38  ;;  %v9470_v53 = vpop.f32.mrb[20].mxu1 }
 0x767   : > { %v7437_v0 = vpop.f32.mrb[21].mxu1  ;;  %v7609_v18 = vadd.f32 %v9470_v53, %v11654_v60 }
 0x768   : > { %v7607_v20 = vadd.f32 %v11654_v60, %v7437_v0  ;;  %v7637_v2 = vadd.f32 %v7636_v15, %v7606_v22  ;;  %v9471_v10 = vpop.f32.mrb[22].mxu1 }
 0x769   : > { %v7440_v6 = vpop.f32.mrb[23].mxu1  ;;  %v7610_v34 = vadd.f32 %v9471_v10, %v11654_v60 }
 0x76a   : > { %v7638_v50 = vadd.f32 %v7637_v2, %v7607_v20  ;;  %v7608_v3 = vadd.f32 %v11654_v60, %v7440_v6 }
 0x76c   : > { %v7639_v37 = vadd.f32 %v7638_v50, %v7608_v3 }
 0x76e   : > { %v7640_v23 = vadd.f32 %v7639_v37, %v7609_v18  ;;  %v9474_v21 = vpop.f32.mrb[24].mxu1 }
 0x76f   : > { %v7453_v29 = vpop.f32.mrb[25].mxu1  ;;  %v7613_v1 = vadd.f32 %v9474_v21, %v11654_v60 }
 0x770   : > { %v7611_v19 = vadd.f32 %v11654_v60, %v7453_v29  ;;  %v7641_v63 = vadd.f32 %v7640_v23, %v7610_v34  ;;  %v9475_v59 = vpop.f32.mrb[26].mxu1 }
 0x771   : > { %v7456_v56 = vpop.f32.mrb[27].mxu1  ;;  %v7614_v12 = vadd.f32 %v9475_v59, %v11654_v60 }
 0x772   : > { %v7642_v27 = vadd.f32 %v7641_v63, %v7611_v19  ;;  %v7612_v54 = vadd.f32 %v11654_v60, %v7456_v56 }
 0x774   : > { %v7643_v13 = vadd.f32 %v7642_v27, %v7612_v54 }
 0x776   : > { %v7644_v48 = vadd.f32 %v7643_v13, %v7613_v1  ;;  %v9478_v39 = vpop.f32.mrb[28].mxu1 }
 0x777   : > { %v7469_v51 = vpop.f32.mrb[29].mxu1  ;;  %v7617_v9 = vadd.f32 %v9478_v39, %v11654_v60 }
 0x778   : > { %v7615_v30 = vadd.f32 %v11654_v60, %v7469_v51  ;;  %v7645_v55 = vadd.f32 %v7644_v48, %v7614_v12  ;;  %v9479_v11 = vpop.f32.mrb[30].mxu1 }
 0x779   : > { %v7472_v41 = vpop.f32.mrb[31].mxu1  ;;  %v7618_v25 = vadd.f32 %v9479_v11, %v11654_v60 }
 0x77a   : > { %v7646_v46 = vadd.f32 %v7645_v55, %v7615_v30  ;;  %v7616_v57 = vadd.f32 %v11654_v60, %v7472_v41 }
 0x77c   : > { %v7647_v47 = vadd.f32 %v7646_v46, %v7616_v57 }
 0x77e   : > { %v7648_v17 = vadd.f32 %v7647_v47, %v7617_v9 }
 0x780   : > { %v7649_v26 = vadd.f32 %v7648_v17, %v7618_v25 }
 0x782   : > { %v7650_v42 = vrot.slane %v7649_v26, 4 }
 0x784   : > { %v7651_v8 = vadd.f32 %v7650_v42, %v7649_v26 }
 0x786   : > { %v7652_v16 = vrot.slane %v7651_v8, 2 }
 0x788   : > { %v7653_v43 = vadd.f32 %v7652_v16, %v7651_v8 }
 0x78a   : > { %v7654_v40 = vrot.slane %v7653_v43, 1 }
 0x78c   : > { %v7655_v15 = vadd.f32 %v7654_v40, %v7653_v43 }
 0x78e   : > { %v7656_v53 = vmul.f32 0.00390625, %v7655_v15 }
 0x790   : > { %v11737_v0 = vsub.f32 %v11688_v36, %v7656_v53  ;;  %v11740_v2 = vsub.f32 %v11693_v49, %v7656_v53  ;;  %v11743_v10 = vsub.f32 %v11696_v32, %v7656_v53  ;;  %v11746_v60 = vsub.f32 %v11700_v58, %v7656_v53 }
 0x791   : > { %v11749_v6 = vsub.f32 %v11704_v4, %v7656_v53  ;;  %v11752_v50 = vsub.f32 %v11709_v5, %v7656_v53  ;;  %v11755_v37 = vsub.f32 %v11712_v61, %v7656_v53  ;;  %v11758_v36 = vsub.f32 %v11716_v28, %v7656_v53 }
 0x792   : > { %v11760_v49 = vsub.f32 %v7603_v35, %v7656_v53  ;;  %v11762_v23 = vsub.f32 %v7604_v52, %v7656_v53  ;;  %v11764_v32 = vsub.f32 %v7605_v38, %v7656_v53  ;;  %v11766_v58 = vsub.f32 %v7606_v22, %v7656_v53 }
 0x793   : > { %v11768_v21 = vsub.f32 %v7607_v20, %v7656_v53  ;;  %v11770_v4 = vsub.f32 %v7608_v3, %v7656_v53  ;;  %v11772_v5 = vsub.f32 %v7609_v18, %v7656_v53  ;;  %v11774_v29 = vsub.f32 %v7610_v34, %v7656_v53 }
 0x794   : > { %v11776_v61 = vsub.f32 %v7611_v19, %v7656_v53  ;;  %v11778_v28 = vsub.f32 %v7612_v54, %v7656_v53  ;;  %v11780_v35 = vsub.f32 %v7613_v1, %v7656_v53  ;;  %v11782_v52 = vsub.f32 %v7614_v12, %v7656_v53 }
 0x795   : > { %v11784_v38 = vsub.f32 %v7615_v30, %v7656_v53  ;;  %v11786_v22 = vsub.f32 %v7616_v57, %v7656_v53  ;;  %v11788_v20 = vsub.f32 %v7617_v9, %v7656_v53  ;;  %v11790_v3 = vsub.f32 %v7618_v25, %v7656_v53 }
 0x796   : > { %v11793_v18 = vsub.f32 %v11657_v45, %v7656_v53  ;;  %v11796_v34 = vsub.f32 %v11660_v24, %v7656_v53  ;;  %v11799_v19 = vsub.f32 %v11663_v44, %v7656_v53  ;;  %v11806_v56 = vsub.f32 %v11668_v7, %v7656_v53 }
 0x797   : > { %v11809_v27 = vsub.f32 %v11672_v31, %v7656_v53  ;;  %v11814_v54 = vsub.f32 %v11677_v62, %v7656_v53  ;;  %v11819_v13 = vsub.f32 %v11680_v14, %v7656_v53  ;;  %v11824_v31 = vsub.f32 %v11684_v33, %v7656_v53 }
 0x798   : > { %v7689_v63 = vmul.f32 %v11793_v18, %v11793_v18  ;;  %v7690_v59 = vmul.f32 %v11796_v34, %v11796_v34  ;;  %v7691_v45 = vmul.f32 %v11799_v19, %v11799_v19  ;;  %v7692_v44 = vmul.f32 %v11806_v56, %v11806_v56 }
 0x799   : > { %v7693_v7 = vmul.f32 %v11809_v27, %v11809_v27  ;;  %v7694_v48 = vmul.f32 %v11814_v54, %v11814_v54  ;;  %v7695_v62 = vmul.f32 %v11819_v13, %v11819_v13  ;;  %v7696_v30 = vmul.f32 %v11824_v31, %v11824_v31 }
 0x79a   : > { %v7721_v24 = vadd.f32 %v7690_v59, %v7689_v63  ;;  %v7697_v55 = vmul.f32 %v11737_v0, %v11737_v0  ;;  %v7698_v33 = vmul.f32 %v11740_v2, %v11740_v2  ;;  %v7699_v46 = vmul.f32 %v11743_v10, %v11743_v10 }
 0x79b   : > { %v7700_v9 = vmul.f32 %v11746_v60, %v11746_v60  ;;  %v7701_v25 = vmul.f32 %v11749_v6, %v11749_v6  ;;  %v7702_v26 = vmul.f32 %v11752_v50, %v11752_v50  ;;  %v7703_v8 = vmul.f32 %v11755_v37, %v11755_v37 }
 0x79c   : > { %v7722_v1 = vadd.f32 %v7721_v24, %v7691_v45  ;;  %v7704_v43 = vmul.f32 %v11758_v36, %v11758_v36  ;;  %v7705_v15 = vmul.f32 %v11760_v49, %v11760_v49  ;;  %v7706_v63 = vmul.f32 %v11762_v23, %v11762_v23 }
 0x79d   : > { %v7707_v45 = vmul.f32 %v11764_v32, %v11764_v32 }
 0x79e   : > { %v7723_v12 = vadd.f32 %v7722_v1, %v7692_v44  ;;  %v7708_v44 = vmul.f32 %v11766_v58, %v11766_v58 }
 0x7a0   : > { %v7724_v39 = vadd.f32 %v7723_v12, %v7693_v7  ;;  %v7709_v7 = vmul.f32 %v11768_v21, %v11768_v21 }
 0x7a2   : > { %v7725_v51 = vadd.f32 %v7724_v39, %v7694_v48  ;;  %v7710_v48 = vmul.f32 %v11770_v4, %v11770_v4 }
 0x7a4   : > { %v7726_v14 = vadd.f32 %v7725_v51, %v7695_v62  ;;  %v7711_v62 = vmul.f32 %v11772_v5, %v11772_v5 }
 0x7a6   : > { %v7727_v11 = vadd.f32 %v7726_v14, %v7696_v30  ;;  %v7712_v30 = vmul.f32 %v11774_v29, %v11774_v29 }
 0x7a8   : > { %v7728_v41 = vadd.f32 %v7727_v11, %v7697_v55  ;;  %v7713_v55 = vmul.f32 %v11776_v61, %v11776_v61 }
 0x7aa   : > { %v7729_v57 = vadd.f32 %v7728_v41, %v7698_v33  ;;  %v7714_v33 = vmul.f32 %v11778_v28, %v11778_v28 }
 0x7ac   : > { %v7730_v47 = vadd.f32 %v7729_v57, %v7699_v46  ;;  %v7715_v46 = vmul.f32 %v11780_v35, %v11780_v35 }
 0x7ae   : > { %v7731_v17 = vadd.f32 %v7730_v47, %v7700_v9  ;;  %v7716_v9 = vmul.f32 %v11782_v52, %v11782_v52 }
 0x7b0   : > { %v7732_v42 = vadd.f32 %v7731_v17, %v7701_v25  ;;  %v7717_v25 = vmul.f32 %v11784_v38, %v11784_v38 }
 0x7b2   : > { %v7733_v16 = vadd.f32 %v7732_v42, %v7702_v26  ;;  %v7718_v26 = vmul.f32 %v11786_v22, %v11786_v22 }
 0x7b4   : > { %v7734_v40 = vadd.f32 %v7733_v16, %v7703_v8  ;;  %v7719_v8 = vmul.f32 %v11788_v20, %v11788_v20 }
 0x7b6   : > { %v7735_v53 = vadd.f32 %v7734_v40, %v7704_v43  ;;  %v7720_v43 = vmul.f32 %v11790_v3, %v11790_v3 }
 0x7b8   : > { %v7736_v59 = vadd.f32 %v7735_v53, %v7705_v15 }
 0x7ba   : > { %v7737_v24 = vadd.f32 %v7736_v59, %v7706_v63 }
 0x7bc   : > { %v7738_v1 = vadd.f32 %v7737_v24, %v7707_v45 }
 0x7be   : > { %v7739_v12 = vadd.f32 %v7738_v1, %v7708_v44 }
 0x7c0   : > { %v7740_v39 = vadd.f32 %v7739_v12, %v7709_v7 }
 0x7c2   : > { %v7741_v51 = vadd.f32 %v7740_v39, %v7710_v48  ;;  %v7822_v48 = vld [vmem:[%s10710_s17 + $0xe8] sm:$0xff] }
 0x7c4   : > { %v7742_v14 = vadd.f32 %v7741_v51, %v7711_v62 }
 0x7c6   : > { %v7743_v11 = vadd.f32 %v7742_v14, %v7712_v30 }
 0x7c8   : > { %v7744_v41 = vadd.f32 %v7743_v11, %v7713_v55 }
 0x7ca   : > { %v7745_v57 = vadd.f32 %v7744_v41, %v7714_v33 }
 0x7cc   : > { %v7746_v47 = vadd.f32 %v7745_v57, %v7715_v46  ;;  %v7793_v46 = vld [vmem:[%s10710_s17] sm:$0xff]  ;;  %v7796_v57 = vld [vmem:[%s10710_s17 + $0x18] sm:$0xff] }
 0x7ce   : > { %v7747_v17 = vadd.f32 %v7746_v47, %v7716_v9  ;;  %v7799_v9 = vld [vmem:[%s10710_s17 + $0x30] sm:$0xff]  ;;  %v7798_v47 = vld [vmem:[%s10710_s17 + $0x28] sm:$0xff] }
 0x7d0   : > { %v7748_v42 = vadd.f32 %v7747_v17, %v7717_v25  ;;  %v7803_v25 = vld [vmem:[%s10710_s17 + $0x50] sm:$0xff]  ;;  %v7801_v17 = vld [vmem:[%s10710_s17 + $0x40] sm:$0xff] }
 0x7d2   : > { %v7749_v16 = vadd.f32 %v7748_v42, %v7718_v26  ;;  %v7802_v42 = vld [vmem:[%s10710_s17 + $0x48] sm:$0xff] }
 0x7d4   : > { %v7750_v40 = vadd.f32 %v7749_v16, %v7719_v8  ;;  %v7807_v8 = vld [vmem:[%s10710_s17 + $0x70] sm:$0xff] }
 0x7d6   : > { %v7751_v15 = vadd.f32 %v7750_v40, %v7720_v43  ;;  %v7806_v40 = vld [vmem:[%s10710_s17 + $0x68] sm:$0xff] }
 0x7d8   : > { %v7752_v53 = vrot.slane %v7751_v15, 4 }
 0x7da   : > { %v7753_v63 = vadd.f32 %v7752_v53, %v7751_v15  ;;  %v7809_v53 = vld [vmem:[%s10710_s17 + $0x80] sm:$0xff] }
 0x7dc   : > { %v7754_v59 = vrot.slane %v7753_v63, 2 }
 0x7de   : > { %v7755_v45 = vadd.f32 %v7754_v59, %v7753_v63  ;;  %v7812_v63 = vld [vmem:[%s10710_s17 + $0x98] sm:$0xff] }
 0x7e0   : > { %v7756_v24 = vrot.slane %v7755_v45, 1 }
 0x7e2   : > { %v7757_v44 = vadd.f32 %v7756_v24, %v7755_v45  ;;  %v7810_v24 = vld [vmem:[%s10710_s17 + $0x88] sm:$0xff] }
 0x7e4   : > { %v7758_v1 = vmul.f32 0.00390625, %v7757_v44  ;;  %v7813_v44 = vld [vmem:[%s10710_s17 + $0xa0] sm:$0xff] }
 0x7e6   : > { %v7759_v7 = vadd.f32 1e-05, %v7758_v1 }
 0x7e8   : > { %10231 = vrsqrt.f32 %v7759_v7 }
 0x7f2   : > { %v10232_v12 = vpop.eup %10231 }
 0x7f3   : > { %v7790_v39 = vmul.f32 %v10232_v12, %v11786_v22  ;;  %v7761_v62 = vmul.f32 %v10232_v12, %v11793_v18  ;;  %v7762_v51 = vmul.f32 %v10232_v12, %v11796_v34  ;;  %v7763_v30 = vmul.f32 %v10232_v12, %v11799_v19  ;;  %v7795_v19 = vld [vmem:[%s10710_s17 + $0x10] sm:$0xff] }
 0x7f4   : > { %v7764_v14 = vmul.f32 %v10232_v12, %v11806_v56  ;;  %v7765_v55 = vmul.f32 %v10232_v12, %v11809_v27  ;;  %v7766_v11 = vmul.f32 %v10232_v12, %v11814_v54  ;;  %v7767_v33 = vmul.f32 %v10232_v12, %v11819_v13 }
 0x7f5   : > { %v7854_v22 = vadd.f32 %v7822_v48, %v7790_v39  ;;  %v7768_v18 = vmul.f32 %v10232_v12, %v11824_v31  ;;  %v7769_v34 = vmul.f32 %v10232_v12, %v11737_v0  ;;  %v7770_v41 = vmul.f32 %v10232_v12, %v11740_v2  ;;  %v7794_v31 = vld [vmem:[%s10710_s17 + $0x8] sm:$0xff]  ;;  %v7797_v0 = vld [vmem:[%s10710_s17 + $0x20] sm:$0xff]  ;;  %v7816_v39 = vld [vmem:[%s10710_s17 + $0xb8] sm:$0xff] }
 0x7f6   : > { %v7771_v56 = vmul.f32 %v10232_v12, %v11743_v10  ;;  %v7772_v27 = vmul.f32 %v10232_v12, %v11746_v60  ;;  %v7773_v54 = vmul.f32 %v10232_v12, %v11749_v6  ;;  %v7774_v13 = vmul.f32 %v10232_v12, %v11752_v50  ;;  %v7800_v50 = vld [vmem:[%s10710_s17 + $0x38] sm:$0xff] }
 0x7f7   : > { %7886 = vst [vmem:[%s11904_s24 + $0xe8] sm:$0xff] %v7854_v22  ;;  %v7775_v2 = vmul.f32 %v10232_v12, %v11755_v37  ;;  %v11909_v10 = vmul.f32 %v10232_v12, %v11758_v36  ;;  %v11912_v60 = vmul.f32 %v10232_v12, %v11760_v49  ;;  %v11915_v6 = vmul.f32 %v10232_v12, %v11762_v23  ;;  %v7804_v23 = vld [vmem:[%s10710_s17 + $0x58] sm:$0xff]  ;;  %v7814_v22 = vld [vmem:[%s10710_s17 + $0xa8] sm:$0xff] }
 0x7f8   : > { %v7779_v26 = vmul.f32 %v10232_v12, %v11764_v32  ;;  %v11923_v37 = vmul.f32 %v10232_v12, %v11766_v58  ;;  %v11926_v36 = vmul.f32 %v10232_v12, %v11768_v21  ;;  %v11929_v49 = vmul.f32 %v10232_v12, %v11770_v4  ;;  %v7805_v21 = vld [vmem:[%s10710_s17 + $0x60] sm:$0xff]  ;;  %v7808_v4 = vld [vmem:[%s10710_s17 + $0x78] sm:$0xff] }
 0x7f9   : > { %v7783_v16 = vmul.f32 %v10232_v12, %v11772_v5  ;;  %v11936_v43 = vmul.f32 %v10232_v12, %v11774_v29  ;;  %v11939_v32 = vmul.f32 %v10232_v12, %v11776_v61  ;;  %v11942_v58 = vmul.f32 %v10232_v12, %v11778_v28  ;;  %v7811_v28 = vld [vmem:[%s10710_s17 + $0x90] sm:$0xff] }
 0x7fa   : > { %v11948_v15 = vmul.f32 %v10232_v12, %v11780_v35  ;;  %v11951_v5 = vmul.f32 %v10232_v12, %v11782_v52  ;;  %v11954_v29 = vmul.f32 %v10232_v12, %v11784_v38  ;;  %v11957_v61 = vmul.f32 %v10232_v12, %v11788_v20  ;;  %v7815_v38 = vld [vmem:[%s10710_s17 + $0xb0] sm:$0xff] }
 0x7fb   : > { %v11963_v59 = vmul.f32 %v10232_v12, %v11790_v3  ;;  %v7825_v35 = vadd.f32 %v7793_v46, %v7761_v62  ;;  %v7826_v45 = vadd.f32 %v7794_v31, %v7762_v51  ;;  %v7827_v52 = vadd.f32 %v7795_v19, %v7763_v30  ;;  %v7819_v3 = vld [vmem:[%s10710_s17 + $0xd0] sm:$0xff]  ;;  %v7821_v46 = vld [vmem:[%s10710_s17 + $0xe0] sm:$0xff] }
 0x7fc   : > { %v7828_v20 = vadd.f32 %v7796_v57, %v7764_v14  ;;  %v7829_v1 = vadd.f32 %v7797_v0, %v7765_v55  ;;  %v7830_v7 = vadd.f32 %v7798_v47, %v7766_v11  ;;  %v7831_v48 = vadd.f32 %v7799_v9, %v7767_v33  ;;  %v7817_v14 = vld [vmem:[%s10710_s17 + $0xc0] sm:$0xff]  ;;  %v7820_v55 = vld [vmem:[%s10710_s17 + $0xd8] sm:$0xff]  ;;  %v7818_v11 = vld [vmem:[%s10710_s17 + $0xc8] sm:$0xff] }
 0x7fd   : > { %v7832_v12 = vadd.f32 %v7800_v50, %v7768_v18  ;;  %v7833_v62 = vadd.f32 %v7801_v17, %v7769_v34  ;;  %v7834_v51 = vadd.f32 %v7802_v42, %v7770_v41  ;;  %v7835_v30 = vadd.f32 %v7803_v25, %v7771_v56  ;;  %7857 = vst [vmem:[%s11904_s24] sm:$0xff] %v7825_v35  ;;  %v7823_v41 = vld [vmem:[%s10710_s17 + $0xf0] sm:$0xff]  ;;  %v7824_v56 = vld [vmem:[%s10710_s17 + $0xf8] sm:$0xff] }
 0x7fe   : > { %7858 = vst [vmem:[%s11904_s24 + $0x8] sm:$0xff] %v7826_v45  ;;  %7859 = vst [vmem:[%s11904_s24 + $0x10] sm:$0xff] %v7827_v52  ;;  %v7836_v33 = vadd.f32 %v7804_v23, %v7772_v27  ;;  %v7837_v19 = vadd.f32 %v7805_v21, %v7773_v54  ;;  %v7838_v18 = vadd.f32 %v7806_v40, %v7774_v13 }
 0x7ff   : > { %v7839_v34 = vadd.f32 %v7807_v8, %v7775_v2  ;;  %7860 = vst [vmem:[%s11904_s24 + $0x18] sm:$0xff] %v7828_v20  ;;  %7861 = vst [vmem:[%s11904_s24 + $0x20] sm:$0xff] %v7829_v1  ;;  %v7840_v27 = vadd.f32 %v7808_v4, %v11909_v10  ;;  %v7841_v54 = vadd.f32 %v7809_v53, %v11912_v60 }
 0x800   : > { %7862 = vst [vmem:[%s11904_s24 + $0x28] sm:$0xff] %v7830_v7  ;;  %7863 = vst [vmem:[%s11904_s24 + $0x30] sm:$0xff] %v7831_v48  ;;  %v7842_v13 = vadd.f32 %v7810_v24, %v11915_v6  ;;  %v7843_v57 = vadd.f32 %v7811_v28, %v7779_v26  ;;  %v7844_v31 = vadd.f32 %v7812_v63, %v11923_v37 }
 0x801   : > { %7864 = vst [vmem:[%s11904_s24 + $0x38] sm:$0xff] %v7832_v12  ;;  %7865 = vst [vmem:[%s11904_s24 + $0x40] sm:$0xff] %v7833_v62  ;;  %v7845_v9 = vadd.f32 %v7813_v44, %v11926_v36  ;;  %v7846_v0 = vadd.f32 %v7814_v22, %v11929_v49  ;;  %v7847_v2 = vadd.f32 %v7815_v38, %v7783_v16 }
 0x802   : > { %7866 = vst [vmem:[%s11904_s24 + $0x48] sm:$0xff] %v7834_v51  ;;  %7867 = vst [vmem:[%s11904_s24 + $0x50] sm:$0xff] %v7835_v30  ;;  %v7848_v10 = vadd.f32 %v7816_v39, %v11936_v43  ;;  %v7849_v60 = vadd.f32 %v7817_v14, %v11939_v32  ;;  %v7850_v6 = vadd.f32 %v7818_v11, %v11942_v58 }
 0x803   : > { %7868 = vst [vmem:[%s11904_s24 + $0x58] sm:$0xff] %v7836_v33  ;;  %7869 = vst [vmem:[%s11904_s24 + $0x60] sm:$0xff] %v7837_v19  ;;  %v7851_v50 = vadd.f32 %v7819_v3, %v11948_v15  ;;  %v7852_v47 = vadd.f32 %v7820_v55, %v11951_v5  ;;  %v7853_v25 = vadd.f32 %v7821_v46, %v11954_v29 }
 0x804   : > { %7870 = vst [vmem:[%s11904_s24 + $0x68] sm:$0xff] %v7838_v18  ;;  %7871 = vst [vmem:[%s11904_s24 + $0x70] sm:$0xff] %v7839_v34  ;;  %v7855_v17 = vadd.f32 %v7823_v41, %v11957_v61  ;;  %v7856_v26 = vadd.f32 %v7824_v56, %v11963_v59 }
 0x805   : > { %7872 = vst [vmem:[%s11904_s24 + $0x78] sm:$0xff] %v7840_v27  ;;  %7873 = vst [vmem:[%s11904_s24 + $0x80] sm:$0xff] %v7841_v54 }
 0x806   : > { %7874 = vst [vmem:[%s11904_s24 + $0x88] sm:$0xff] %v7842_v13  ;;  %7875 = vst [vmem:[%s11904_s24 + $0x90] sm:$0xff] %v7843_v57 }
 0x807   : > { %7876 = vst [vmem:[%s11904_s24 + $0x98] sm:$0xff] %v7844_v31  ;;  %7877 = vst [vmem:[%s11904_s24 + $0xa0] sm:$0xff] %v7845_v9 }
 0x808   : > { %7878 = vst [vmem:[%s11904_s24 + $0xa8] sm:$0xff] %v7846_v0  ;;  %7879 = vst [vmem:[%s11904_s24 + $0xb0] sm:$0xff] %v7847_v2 }
 0x809   : > { %7880 = vst [vmem:[%s11904_s24 + $0xb8] sm:$0xff] %v7848_v10  ;;  %7881 = vst [vmem:[%s11904_s24 + $0xc0] sm:$0xff] %v7849_v60 }
 0x80a   : > { %7882 = vst [vmem:[%s11904_s24 + $0xc8] sm:$0xff] %v7850_v6  ;;  %7883 = vst [vmem:[%s11904_s24 + $0xd0] sm:$0xff] %v7851_v50 }
 0x80b   : > { %7884 = vst [vmem:[%s11904_s24 + $0xd8] sm:$0xff] %v7852_v47  ;;  %7885 = vst [vmem:[%s11904_s24 + $0xe0] sm:$0xff] %v7853_v25 }
 0x80c   : > { %7887 = vst [vmem:[%s11904_s24 + $0xf0] sm:$0xff] %v7855_v17  ;;  %7888 = vst [vmem:[%s11904_s24 + $0xf8] sm:$0xff] %v7856_v26 }
 0x80d   : > { %10388 = shalt.err (!%p10385_p13)
}
 0x80e   : > { %s10389_s16 = scalar_lea.hbm %s12013_s15, 4096  ;;  %s10393_s7 = scalar_lea.hbm %s12082_s5, 8192 }
 0x80f   : > { %p10390_p9 = scmp.ne.s32.totalorder %s12013_s15, %s10389_s16  ;;  %p10394_p6 = scmp.lt.u32.totalorder %s12013_s15, %s12082_s5 }
 0x810   : > { %p10395_p4 = scmp.lt.u32.totalorder %s10393_s7, %s10389_s16  ;;  %p10397_p3 = scmp.lt.u32.totalorder %s10389_s16, %s12013_s15 }
 0x811   : > { %p10391_p0 = pnand %p10390_p9, %p10652_p10 }
 0x812   : > { %p10396_p8 = por %p10395_p4, %p10394_p6 }
 0x813   : > { %p10392_p11 = pneg %p10391_p0 }
 0x814   : > { %p10398_p5 = por %p10397_p3, %p10396_p8 }
 0x816   : > { %p10399_p7 = pnand %p10398_p5, %p10392_p11 }
 0x818   : > { %10402 = shalt.err (!%p10399_p7)
}
 0x819   : > { %s10461_s26 = smov 128   ;;  %s10462_s13 = smov 8  }
 0x81a   : > { %10010 = dma.vmem_to_hbm [thread:$0]  (%p10652_p10), %s12017_s11, 4096, %s12013_s15, %s7890_s22, %s10461_s26, %s10461_s26, %s10462_s13  }
 0x81b PF: > { %s7918_s8 = sand.u32 1, %s10437_s18   ;;  %p12100_p12 = scmp.ne.s32.totalorder %s12087_s25, 0 }
 0x81c   : > { %p12101_p2 = scmp.ge.s32.totalorder %s10449_s21, 2  ;;  %s7919_s30 = scalar_lea.sflag [#allocation6], %s7918_s8 }
 0x81e   : > { %p10030_p1 = pnand %p12101_p2, %p12100_p12 }
 0x820   : > { %10432 = dma.done.wait (!%p10030_p1), %s7919_s30, 4096  }
 0x821   : > { %10434 = vsyncadd (!%p10030_p1), %s7919_s30, 4294963200  ;;  %p20_p13 = scmp.ge.s32.totalorder %s10642_s14, 4   ;;  %s12102_s18 = smov %s10441_s19 }
 0x822   : > { %s12103_s19 = smov %s10445_s20  ;;  %s12104_s20 = smov %s10658_s28 }
 0x823   : > { %s12105_s21 = smov %s10642_s14  ;;  %22 = sbr.rel (!%p20_p13) target bundleno = 7 (0x7), region = 120 }
 0x82a   :  { %7924 = vsyncpa [#allocation5], 1 }
 0x82b   :  { %7926 = vsyncpa [#allocation5 + $0x1], 1 }
 0x82c   :  { %7927 = vsyncpa [#allocation8], 1 }
 0x82d   :  { %7928 = vsyncpa [#allocation11], 1 }
 0x82e   :  { %7929 = vsyncpa [#allocation6], 1 }
 0x82f   :  { %7931 = vsyncpa [#allocation6 + $0x1], 1 }

</bundles_post_ra>
